<compile_context>
chip_gen: v6e
topology: v6e:2x2x1
jax: 0.10.0
libtpu: 0.0.40
codegen_flags: <defaults>
</compile_context>

<pallas_src>
import functools
import math

import jax
import jax.numpy as jnp
from jax.experimental import pallas as pl
from jax.experimental.pallas import tpu as pltpu


def _round_up(x, m):
    return (x + m - 1) // m * m


def decoder_step_kernel(
    # ---------------- inputs ----------------
    enc_ref,    # (Bp, Tp, H)  encoder outputs, batch-first, zero-padded
    emb_ref,    # (Bp, E)      embedded input token
    hid_ref,    # (Bp, H)      last_hidden[-1]
    wah_ref,    # (H, H)       attention weight, hidden part
    wae_ref,    # (H, H)       attention weight, encoder part
    ba_ref,     # (1, H)       attention bias
    v_ref,      # (1, H)       attention v vector
    wie_ref,    # (E, 3H)      GRU W_ih (embedded columns), gates r|z|n fused
    wic_ref,    # (H, 3H)      GRU W_ih (context columns),  gates r|z|n fused
    whh_ref,    # (H, 3H)      GRU W_hh, gates r|z|n fused
    bi_ref,     # (1, 3H)      GRU b_ih
    bh_ref,     # (1, 3H)      GRU b_hh
    woh_ref,    # (H, tV)      out weight tile, GRU-output part
    woc_ref,    # (H, tV)      out weight tile, context part
    bo_ref,     # (1, tV)      out bias tile (padded lanes hold -1e30)
    # ---------------- outputs ----------------
    logp_ref,   # (Bp, Vp)     log-probabilities (resident across the V grid)
    hnew_ref,   # (Bp, H)      new hidden state
    attn_ref,   # (Bp, Tp)     attention weights
    # ---------------- scratch ----------------
    ctx_sc,     # (Bp, H) f32  context (persists across V tiles)
    hnew_sc,    # (Bp, H) f32  new hidden (persists across V tiles)
    m_sc,       # (Bp, 1) f32  running max for logsumexp
    l_sc,       # (Bp, 1) f32  running sum-exp for logsumexp
    *,
    t_real,     # true encoder length T (static)
    v_tile,     # vocab tile width (static, multiple of 128)
):
    j = pl.program_id(0)
    n_vt = pl.num_programs(0)
    Bp, Tp, H = enc_ref.shape

    # ---- attention + GRU: computed once, on the first V tile ----
    @pl.when(j == 0)
    def _attention_and_gru():
        enc = enc_ref[...]
        emb = emb_ref[...]
        hid = hid_ref[...]

        # relu(W_a [h; enc] + b_a) == relu(h @ Wah + enc @ Wae + b_a)
        h_proj = jnp.dot(hid, wah_ref[...], preferred_element_type=jnp.float32)   # (Bp,H)
        e_proj = jnp.dot(enc.reshape(Bp * Tp, H), wae_ref[...],
                         preferred_element_type=jnp.float32).reshape(Bp, Tp, H)   # (Bp,Tp,H)
        energy = jnp.maximum(h_proj[:, None, :] + e_proj + ba_ref[...][None, :, :], 0.0)
        scores = jnp.sum(energy * v_ref[...][None, :, :], axis=-1)                # (Bp,Tp)

        # mask padded time steps, softmax over T
        t_idx = jax.lax.broadcasted_iota(jnp.int32, (Bp, Tp), 1)
        scores = jnp.where(t_idx < t_real, scores, -1e30)
        m = jnp.max(scores, axis=-1, keepdims=True)
        ex = jnp.exp(scores - m)
        denom = jnp.sum(ex, axis=-1, keepdims=True)
        inv = pl.reciprocal(denom, approx=True)
        inv = inv * (2.0 - denom * inv)        # one Newton step -> fp32 accuracy
        attn = ex * inv
        attn_ref[...] = attn.astype(attn_ref.dtype)

        # context = attn @ enc  (padded T rows of enc are zero, attn there ~0)
        context = jnp.sum(attn[:, :, None] * enc, axis=1)                         # (Bp,H)
        ctx_sc[...] = context

        # GRU cell, gates r|z|n fused along the 3H lane axis
        gi = (jnp.dot(emb, wie_ref[...], preferred_element_type=jnp.float32)
              + jnp.dot(context, wic_ref[...], preferred_element_type=jnp.float32)
              + bi_ref[...])                                                      # (Bp,3H)
        gh = jnp.dot(hid, whh_ref[...], preferred_element_type=jnp.float32) + bh_ref[...]
        r = jax.nn.sigmoid(gi[:, :H] + gh[:, :H])
        z = jax.nn.sigmoid(gi[:, H:2 * H] + gh[:, H:2 * H])
        n = jnp.tanh(gi[:, 2 * H:] + r * gh[:, 2 * H:])
        h_new = (1.0 - z) * n + z * hid                                           # (Bp,H)
        hnew_sc[...] = h_new
        hnew_ref[...] = h_new.astype(hnew_ref.dtype)

        # init online logsumexp accumulators
        m_sc[...] = jnp.full(m_sc.shape, -jnp.inf, m_sc.dtype)
        l_sc[...] = jnp.zeros(l_sc.shape, l_sc.dtype)

    # ---- output projection for this V tile + online logsumexp ----
    logits = (jnp.dot(hnew_sc[...], woh_ref[...], preferred_element_type=jnp.float32)
              + jnp.dot(ctx_sc[...], woc_ref[...], preferred_element_type=jnp.float32)
              + bo_ref[...])                                                      # (Bp,tV)
    off = pl.multiple_of(j * v_tile, 128)
    logp_ref[:, pl.ds(off, v_tile)] = logits.astype(logp_ref.dtype)

    tile_max = jnp.max(logits, axis=-1, keepdims=True)
    m_new = jnp.maximum(m_sc[...], tile_max)
    l_sc[...] = (l_sc[...] * jnp.exp(m_sc[...] - m_new)
                 + jnp.sum(jnp.exp(logits - m_new), axis=-1, keepdims=True))
    m_sc[...] = m_new

    # ---- after the last V tile: subtract logsumexp in place ----
    @pl.when(j == n_vt - 1)
    def _finalize_log_softmax():
        logz = m_sc[...] + jnp.log(l_sc[...])
        logp_ref[...] = logp_ref[...] - logz


def init_params(key, embed_size, hidden_size, output_size):
    """PyTorch-shaped parameters, deterministically initialized."""
    E, H, V = embed_size, hidden_size, output_size
    ks = jax.random.split(key, 10)
    u = lambda k, shape, s: jax.random.uniform(k, shape, jnp.float32, -s, s)
    return {
        'embed':  jax.random.normal(ks[0], (V, E), jnp.float32),          # nn.Embedding
        'attn_w': u(ks[1], (H, 2 * H), 1.0 / math.sqrt(2 * H)),           # nn.Linear(2H, H)
        'attn_b': u(ks[2], (H,),       1.0 / math.sqrt(2 * H)),
        'v':      u(ks[3], (H,),       1.0 / math.sqrt(H)),
        'w_ih':   u(ks[4], (3 * H, H + E), 1.0 / math.sqrt(H)),           # nn.GRU weight_ih_l0
        'w_hh':   u(ks[5], (3 * H, H),     1.0 / math.sqrt(H)),           # nn.GRU weight_hh_l0
        'b_ih':   u(ks[6], (3 * H,),       1.0 / math.sqrt(H)),
        'b_hh':   u(ks[7], (3 * H,),       1.0 / math.sqrt(H)),
        'w_out':  u(ks[8], (V, 2 * H), 1.0 / math.sqrt(2 * H)),           # nn.Linear(2H, V)
        'b_out':  u(ks[9], (V,),       1.0 / math.sqrt(2 * H)),
    }


def prepack_params(params):
    """One-time weight re-packing (transposes / gate fusion / vocab padding).

    Done once and reused for every decode step so the per-step call path
    does zero weight traffic outside the kernel.
    """
    E = params['embed'].shape[1]
    H = params['attn_w'].shape[0]
    V = params['w_out'].shape[0]
    V_pad = _round_up(V, 128)
    tV = math.gcd(V_pad, 512)          # multiple of 128 that divides V_pad

    attn_wT = params['attn_w'].T       # (2H, H)
    w_ihT = params['w_ih'].T           # (E+H, 3H) -- rows [emb ; context]
    w_outT = params['w_out'].T         # (2H, V)   -- rows [gru_out ; context]

    woh = jnp.pad(w_outT[:H], ((0, 0), (0, V_pad - V)))
    woc = jnp.pad(w_outT[H:], ((0, 0), (0, V_pad - V)))
    # padded vocab lanes get a huge negative bias so they never affect logsumexp
    bo = jnp.full((1, V_pad), -1e30, jnp.float32).at[:, :V].set(params['b_out'])

    return {
        'embed': params['embed'],
        'wah': attn_wT[:H], 'wae': attn_wT[H:],
        'ba': params['attn_b'].reshape(1, H),
        'v': params['v'].reshape(1, H),
        'wie': w_ihT[:E], 'wic': w_ihT[E:],      # (E,3H), (H,3H)
        'whh': params['w_hh'].T,                 # (H,3H)
        'bi': params['b_ih'].reshape(1, 3 * H),
        'bh': params['b_hh'].reshape(1, 3 * H),
        'woh': woh, 'woc': woc, 'bo': bo,
        'dims': (E, H, V, V_pad, tV),
    }


def decoder_forward_pallas(kparams, input_ids, last_hidden, encoder_outputs):
    """input_ids: (B,) int32, last_hidden: (1, B, H), encoder_outputs: (T, B, H)."""
    E, H, V, V_pad, tV = kparams['dims']

    # plain-JAX glue: embedding lookup + layout/padding of activations
    embedded = jnp.take(kparams['embed'], input_ids, axis=0)      # (B, E)
    enc_bf = jnp.transpose(encoder_outputs, (1, 0, 2))            # (B, T, H)
    hid = last_hidden[-1]                                         # (B, H)
    B, T, _ = enc_bf.shape
    B_pad = _round_up(B, 8)
    T_pad = _round_up(T, 128)

    enc_p = jnp.pad(enc_bf, ((0, B_pad - B), (0, T_pad - T), (0, 0)))
    emb_p = jnp.pad(embedded, ((0, B_pad - B), (0, 0)))
    hid_p = jnp.pad(hid, ((0, B_pad - B), (0, 0)))

    n_vt = V_pad // tV
    kernel = functools.partial(decoder_step_kernel, t_real=T, v_tile=tV)

    def _full(shape):
        nd = len(shape)
        return pl.BlockSpec(shape, lambda j, _nd=nd: (0,) * _nd)

    in_specs = [
        _full((B_pad, T_pad, H)),                    # enc
        _full((B_pad, E)),                           # emb
        _full((B_pad, H)),                           # hid
        _full((H, H)),                               # wah
        _full((H, H)),                               # wae
        _full((1, H)),                               # ba
        _full((1, H)),                               # v
        _full((E, 3 * H)),                           # wie
        _full((H, 3 * H)),                           # wic
        _full((H, 3 * H)),                           # whh
        _full((1, 3 * H)),                           # bi
        _full((1, 3 * H)),                           # bh
        pl.BlockSpec((H, tV), lambda j: (0, j)),     # woh  (streamed over V)
        pl.BlockSpec((H, tV), lambda j: (0, j)),     # woc  (streamed over V)
        pl.BlockSpec((1, tV), lambda j: (0, j)),     # bo   (streamed over V)
    ]
    out_specs = (
        _full((B_pad, V_pad)),                       # logp (resident accumulator)
        _full((B_pad, H)),                           # h_new
        _full((B_pad, T_pad)),                       # attn
    )
    scratch_shapes = [
        pltpu.VMEM((B_pad, H), jnp.float32),         # context
        pltpu.VMEM((B_pad, H), jnp.float32),         # h_new
        pltpu.VMEM((B_pad, 1), jnp.float32),         # running max
        pltpu.VMEM((B_pad, 1), jnp.float32),         # running sum-exp
    ]

    logp, h_new, attn = pl.pallas_call(
        kernel,
        out_shape=(
            jax.ShapeDtypeStruct((B_pad, V_pad), jnp.float32),
            jax.ShapeDtypeStruct((B_pad, H), jnp.float32),
            jax.ShapeDtypeStruct((B_pad, T_pad), jnp.float32),
        ),
        grid_spec=pltpu.PrefetchScalarGridSpec(
            num_scalar_prefetch=0,
            grid=(n_vt,),
            in_specs=in_specs,
            out_specs=out_specs,
            scratch_shapes=scratch_shapes,
        ),
        compiler_params=pltpu.CompilerParams(
            dimension_semantics=("arbitrary",)),     # V axis carries logsumexp state
    )(enc_p, emb_p, hid_p,
      kparams['wah'], kparams['wae'], kparams['ba'], kparams['v'],
      kparams['wie'], kparams['wic'], kparams['whh'], kparams['bi'], kparams['bh'],
      kparams['woh'], kparams['woc'], kparams['bo'])

    # strip padding; match PyTorch return shapes: (B, V), (1, B, H), (B, 1, T)
    logp = logp[:B, :V]
    h_new = h_new[:B]
    attn = attn[:B, :T]
    return logp, h_new[None, :, :], attn[:, None, :]


def decoder_forward_ref(params, input_ids, last_hidden, encoder_outputs):
    """Pure-JAX reference mirroring the PyTorch module (eval mode)."""
    H = last_hidden.shape[-1]
    embedded = params['embed'][input_ids]                          # (B, E)
    hid = last_hidden[-1]                                          # (B, H)
    enc = jnp.transpose(encoder_outputs, (1, 0, 2))                # (B, T, H)

    h_rep = jnp.broadcast_to(hid[:, None, :], enc.shape)
    cat = jnp.concatenate([h_rep, enc], axis=2)
    energy = jax.nn.relu(cat @ params['attn_w'].T + params['attn_b'])
    scores = jnp.einsum('bth,h->bt', energy, params['v'])
    attn = jax.nn.softmax(scores, axis=1)
    context = jnp.einsum('bt,bth->bh', attn, enc)

    x = jnp.concatenate([embedded, context], axis=1)
    gi = x @ params['w_ih'].T + params['b_ih']
    gh = hid @ params['w_hh'].T + params['b_hh']
    r = jax.nn.sigmoid(gi[:, :H] + gh[:, :H])
    z = jax.nn.sigmoid(gi[:, H:2 * H] + gh[:, H:2 * H])
    n = jnp.tanh(gi[:, 2 * H:] + r * gh[:, 2 * H:])
    h_new = (1.0 - z) * n + z * hid

    logits = jnp.concatenate([h_new, context], axis=1) @ params['w_out'].T + params['b_out']
    logp = jax.nn.log_softmax(logits, axis=1)
    return logp, h_new[None], attn[:, None, :]


if __name__ == "__main__":
    # Small shapes consistent with the module.
    B, T = 2, 8
    embed_size, hidden_size, output_size = 16, 32, 64

    key = jax.random.PRNGKey(0)
    k_par, k_in, k_hid, k_enc = jax.random.split(key, 4)

    params = init_params(k_par, embed_size, hidden_size, output_size)
    input_ids = jax.random.randint(k_in, (B,), 0, output_size, dtype=jnp.int32)
    last_hidden = jax.random.normal(k_hid, (1, B, hidden_size), jnp.float32)
    encoder_outputs = jax.random.normal(k_enc, (T, B, hidden_size), jnp.float32)

    # one-time weight packing, reused for every decode step
    kparams = prepack_params(params)

    fwd = jax.jit(functools.partial(decoder_forward_pallas, kparams))
    logp, hidden, attn_w = fwd(input_ids, last_hidden, encoder_outputs)
    jax.block_until_ready((logp, hidden, attn_w))

    # Correctness check against the pure-JAX reference of the PyTorch module.
    logp_r, hidden_r, attn_r = decoder_forward_ref(params, input_ids, last_hidden, encoder_outputs)
    assert logp.shape == (B, output_size)
    assert hidden.shape == (1, B, hidden_size)
    assert attn_w.shape == (B, 1, T)
    assert jnp.allclose(logp, logp_r, atol=1e-4, rtol=1e-4)
    assert jnp.allclose(hidden, hidden_r, atol=1e-4, rtol=1e-4)
    assert jnp.allclose(attn_w, attn_r, atol=1e-4, rtol=1e-4)

    print("KERNEL_OK")
</pallas_src>

<mosaic_0001>
module attributes {stable_mosaic.version = 11 : i64} {
  func.func @decoder_step_kernel(%arg0: i32, %arg1: memref<8x128x32xf32, #tpu.memory_space<vmem>>, %arg2: memref<8x16xf32, #tpu.memory_space<vmem>>, %arg3: memref<8x32xf32, #tpu.memory_space<vmem>>, %arg4: memref<32x32xf32, #tpu.memory_space<vmem>>, %arg5: memref<32x32xf32, #tpu.memory_space<vmem>>, %arg6: memref<1x32xf32, #tpu.memory_space<vmem>>, %arg7: memref<1x32xf32, #tpu.memory_space<vmem>>, %arg8: memref<16x96xf32, #tpu.memory_space<vmem>>, %arg9: memref<32x96xf32, #tpu.memory_space<vmem>>, %arg10: memref<32x96xf32, #tpu.memory_space<vmem>>, %arg11: memref<1x96xf32, #tpu.memory_space<vmem>>, %arg12: memref<1x96xf32, #tpu.memory_space<vmem>>, %arg13: memref<32x128xf32, #tpu.memory_space<vmem>>, %arg14: memref<32x128xf32, #tpu.memory_space<vmem>>, %arg15: memref<1x128xf32, #tpu.memory_space<vmem>>, %arg16: memref<8x128xf32, #tpu.memory_space<vmem>>, %arg17: memref<8x32xf32, #tpu.memory_space<vmem>>, %arg18: memref<8x128xf32, #tpu.memory_space<vmem>>, %arg19: memref<8x32xf32, #tpu.memory_space<vmem>>, %arg20: memref<8x32xf32, #tpu.memory_space<vmem>>, %arg21: memref<8x1xf32, #tpu.memory_space<vmem>>, %arg22: memref<8x1xf32, #tpu.memory_space<vmem>>) attributes {dimension_semantics = [#tpu.dimension_semantics<arbitrary>], iteration_bounds = array<i64: 1>, scalar_prefetch = 0 : i64, scratch_operands = 4 : i64, tpu.core_type = #tpu.core_type<tc>, window_params = [{pipeline_mode = #tpu.pipeline_mode<synchronous>, transform_indices = @transform_0, window_bounds = array<i64: 8, 128, 32>}, {pipeline_mode = #tpu.pipeline_mode<synchronous>, transform_indices = @transform_1, window_bounds = array<i64: 8, 16>}, {pipeline_mode = #tpu.pipeline_mode<synchronous>, transform_indices = @transform_2, window_bounds = array<i64: 8, 32>}, {pipeline_mode = #tpu.pipeline_mode<synchronous>, transform_indices = @transform_3, window_bounds = array<i64: 32, 32>}, {pipeline_mode = #tpu.pipeline_mode<synchronous>, transform_indices = @transform_4, window_bounds = array<i64: 32, 32>}, {pipeline_mode = #tpu.pipeline_mode<synchronous>, transform_indices = @transform_5, window_bounds = array<i64: 1, 32>}, {pipeline_mode = #tpu.pipeline_mode<synchronous>, transform_indices = @transform_6, window_bounds = array<i64: 1, 32>}, {pipeline_mode = #tpu.pipeline_mode<synchronous>, transform_indices = @transform_7, window_bounds = array<i64: 16, 96>}, {pipeline_mode = #tpu.pipeline_mode<synchronous>, transform_indices = @transform_8, window_bounds = array<i64: 32, 96>}, {pipeline_mode = #tpu.pipeline_mode<synchronous>, transform_indices = @transform_9, window_bounds = array<i64: 32, 96>}, {pipeline_mode = #tpu.pipeline_mode<synchronous>, transform_indices = @transform_10, window_bounds = array<i64: 1, 96>}, {pipeline_mode = #tpu.pipeline_mode<synchronous>, transform_indices = @transform_11, window_bounds = array<i64: 1, 96>}, {transform_indices = @transform_12, window_bounds = array<i64: 32, 128>}, {transform_indices = @transform_13, window_bounds = array<i64: 32, 128>}, {transform_indices = @transform_14, window_bounds = array<i64: 1, 128>}, {pipeline_mode = #tpu.pipeline_mode<synchronous>, transform_indices = @transform_15, window_bounds = array<i64: 8, 128>}, {pipeline_mode = #tpu.pipeline_mode<synchronous>, transform_indices = @transform_16, window_bounds = array<i64: 8, 32>}, {pipeline_mode = #tpu.pipeline_mode<synchronous>, transform_indices = @transform_17, window_bounds = array<i64: 8, 128>}]} {
    %c0_i32 = arith.constant 0 : i32
    %0 = arith.cmpi eq, %arg0, %c0_i32 : i32
    %1 = arith.extui %0 : i1 to i32
    %c0_i32_0 = arith.constant 0 : i32
    %2 = arith.cmpi ne, %1, %c0_i32_0 : i32
    scf.if %2 {
      %c0_26 = arith.constant 0 : index
      %c0_27 = arith.constant 0 : index
      %c0_28 = arith.constant 0 : index
      %37 = vector.load %arg1[%c0_26, %c0_27, %c0_28] : memref<8x128x32xf32, #tpu.memory_space<vmem>>, vector<8x128x32xf32>
      %c0_29 = arith.constant 0 : index
      %c0_30 = arith.constant 0 : index
      %38 = vector.load %arg2[%c0_29, %c0_30] : memref<8x16xf32, #tpu.memory_space<vmem>>, vector<8x16xf32>
      %c0_31 = arith.constant 0 : index
      %c0_32 = arith.constant 0 : index
      %39 = vector.load %arg3[%c0_31, %c0_32] : memref<8x32xf32, #tpu.memory_space<vmem>>, vector<8x32xf32>
      %c0_33 = arith.constant 0 : index
      %c0_34 = arith.constant 0 : index
      %40 = vector.load %arg4[%c0_33, %c0_34] : memref<32x32xf32, #tpu.memory_space<vmem>>, vector<32x32xf32>
      %cst_35 = arith.constant dense<0.000000e+00> : vector<8x32xf32>
      %41 = tpu.matmul %39, %40, %cst_35 {dimension_numbers = #tpu.dot_dimension_numbers<[1], [0], [0], [1], [0, 0, 1, 1], [], []>} : vector<8x32xf32>, vector<32x32xf32>, vector<8x32xf32> -> vector<8x32xf32>
      %42 = vector.shape_cast %37 : vector<8x128x32xf32> to vector<1024x32xf32>
      %c0_36 = arith.constant 0 : index
      %c0_37 = arith.constant 0 : index
      %43 = vector.load %arg5[%c0_36, %c0_37] : memref<32x32xf32, #tpu.memory_space<vmem>>, vector<32x32xf32>
      %cst_38 = arith.constant dense<0.000000e+00> : vector<1024x32xf32>
      %44 = tpu.matmul %42, %43, %cst_38 {dimension_numbers = #tpu.dot_dimension_numbers<[1], [0], [0], [1], [0, 0, 1, 1], [], []>} : vector<1024x32xf32>, vector<32x32xf32>, vector<1024x32xf32> -> vector<1024x32xf32>
      %45 = vector.shape_cast %44 : vector<1024x32xf32> to vector<8x128x32xf32>
      %46 = vector.shape_cast %41 : vector<8x32xf32> to vector<8x1x32xf32>
      %47 = vector.broadcast %46 : vector<8x1x32xf32> to vector<8x128x32xf32>
      %48 = arith.addf %47, %45 : vector<8x128x32xf32>
      %c0_39 = arith.constant 0 : index
      %c0_40 = arith.constant 0 : index
      %49 = vector.load %arg6[%c0_39, %c0_40] : memref<1x32xf32, #tpu.memory_space<vmem>>, vector<1x32xf32>
      %50 = vector.shape_cast %49 : vector<1x32xf32> to vector<1x1x32xf32>
      %51 = vector.broadcast %50 : vector<1x1x32xf32> to vector<8x128x32xf32>
      %52 = arith.addf %48, %51 : vector<8x128x32xf32>
      %cst_41 = arith.constant 0.000000e+00 : f32
      %53 = vector.broadcast %cst_41 : f32 to vector<8x128x32xf32>
      %54 = arith.maximumf %52, %53 : vector<8x128x32xf32>
      %c0_42 = arith.constant 0 : index
      %c0_43 = arith.constant 0 : index
      %55 = vector.load %arg7[%c0_42, %c0_43] : memref<1x32xf32, #tpu.memory_space<vmem>>, vector<1x32xf32>
      %56 = vector.shape_cast %55 : vector<1x32xf32> to vector<1x1x32xf32>
      %57 = vector.broadcast %56 : vector<1x1x32xf32> to vector<8x128x32xf32>
      %58 = arith.mulf %54, %57 : vector<8x128x32xf32>
      %cst_44 = arith.constant dense<0.000000e+00> : vector<8x128xf32>
      %59 = vector.multi_reduction <add>, %58, %cst_44 [2] : vector<8x128x32xf32> to vector<8x128xf32>
      %60 = tpu.iota {dimensions = array<i32: 1>} : vector<8x128xi32>
      %c8_i32 = arith.constant 8 : i32
      %61 = vector.broadcast %c8_i32 : i32 to vector<8x128xi32>
      %62 = arith.cmpi slt, %60, %61 : vector<8x128xi32>
      %cst_45 = arith.constant -1.000000e+30 : f32
      %63 = vector.broadcast %cst_45 : f32 to vector<8x128xf32>
      %64 = arith.select %62, %59, %63 : vector<8x128xi1>, vector<8x128xf32>
      %cst_46 = arith.constant dense<0xFF800000> : vector<8xf32>
      %65 = vector.multi_reduction <maximumf>, %64, %cst_46 [1] : vector<8x128xf32> to vector<8xf32>
      %66 = vector.shape_cast %65 : vector<8xf32> to vector<8x1xf32>
      %67 = vector.broadcast %66 : vector<8x1xf32> to vector<8x128xf32>
      %68 = arith.subf %64, %67 : vector<8x128xf32>
      %69 = math.exp %68 : vector<8x128xf32>
      %cst_47 = arith.constant dense<0.000000e+00> : vector<8xf32>
      %70 = vector.multi_reduction <add>, %69, %cst_47 [1] : vector<8x128xf32> to vector<8xf32>
      %71 = vector.shape_cast %70 : vector<8xf32> to vector<8x1xf32>
      %72 = tpu.reciprocal %71 {approx = true} : vector<8x1xf32> -> vector<8x1xf32>
      %73 = arith.mulf %71, %72 : vector<8x1xf32>
      %cst_48 = arith.constant 2.000000e+00 : f32
      %74 = vector.broadcast %cst_48 : f32 to vector<8x1xf32>
      %75 = arith.subf %74, %73 : vector<8x1xf32>
      %76 = arith.mulf %72, %75 : vector<8x1xf32>
      %77 = vector.broadcast %76 : vector<8x1xf32> to vector<8x128xf32>
      %78 = arith.mulf %69, %77 : vector<8x128xf32>
      %c0_49 = arith.constant 0 : index
      %c0_50 = arith.constant 0 : index
      %79 = vector.load %arg18[%c0_49, %c0_50] : memref<8x128xf32, #tpu.memory_space<vmem>>, vector<8x128xf32>
      tpu.vector_store %arg18[%c0_49, %c0_50], %78 {strides = array<i32>} : memref<8x128xf32, #tpu.memory_space<vmem>>, vector<8x128xf32>,
      %80 = vector.shape_cast %78 : vector<8x128xf32> to vector<8x128x1xf32>
      %81 = vector.broadcast %80 : vector<8x128x1xf32> to vector<8x128x32xf32>
      %82 = arith.mulf %81, %37 : vector<8x128x32xf32>
      %cst_51 = arith.constant dense<0.000000e+00> : vector<8x32xf32>
      %83 = vector.multi_reduction <add>, %82, %cst_51 [1] : vector<8x128x32xf32> to vector<8x32xf32>
      %c0_52 = arith.constant 0 : index
      %c0_53 = arith.constant 0 : index
      %84 = vector.load %arg19[%c0_52, %c0_53] : memref<8x32xf32, #tpu.memory_space<vmem>>, vector<8x32xf32>
      tpu.vector_store %arg19[%c0_52, %c0_53], %83 {strides = array<i32>} : memref<8x32xf32, #tpu.memory_space<vmem>>, vector<8x32xf32>,
      %c0_54 = arith.constant 0 : index
      %c0_55 = arith.constant 0 : index
      %85 = vector.load %arg8[%c0_54, %c0_55] : memref<16x96xf32, #tpu.memory_space<vmem>>, vector<16x96xf32>
      %cst_56 = arith.constant dense<0.000000e+00> : vector<8x96xf32>
      %86 = tpu.matmul %38, %85, %cst_56 {dimension_numbers = #tpu.dot_dimension_numbers<[1], [0], [0], [1], [0, 0, 1, 1], [], []>} : vector<8x16xf32>, vector<16x96xf32>, vector<8x96xf32> -> vector<8x96xf32>
      %c0_57 = arith.constant 0 : index
      %c0_58 = arith.constant 0 : index
      %87 = vector.load %arg9[%c0_57, %c0_58] : memref<32x96xf32, #tpu.memory_space<vmem>>, vector<32x96xf32>
      %cst_59 = arith.constant dense<0.000000e+00> : vector<8x96xf32>
      %88 = tpu.matmul %83, %87, %cst_59 {dimension_numbers = #tpu.dot_dimension_numbers<[1], [0], [0], [1], [0, 0, 1, 1], [], []>} : vector<8x32xf32>, vector<32x96xf32>, vector<8x96xf32> -> vector<8x96xf32>
      %89 = arith.addf %86, %88 : vector<8x96xf32>
      %c0_60 = arith.constant 0 : index
      %c0_61 = arith.constant 0 : index
      %90 = vector.load %arg11[%c0_60, %c0_61] : memref<1x96xf32, #tpu.memory_space<vmem>>, vector<1x96xf32>
      %91 = vector.broadcast %90 : vector<1x96xf32> to vector<8x96xf32>
      %92 = arith.addf %89, %91 : vector<8x96xf32>
      %c0_62 = arith.constant 0 : index
      %c0_63 = arith.constant 0 : index
      %93 = vector.load %arg10[%c0_62, %c0_63] : memref<32x96xf32, #tpu.memory_space<vmem>>, vector<32x96xf32>
      %cst_64 = arith.constant dense<0.000000e+00> : vector<8x96xf32>
      %94 = tpu.matmul %39, %93, %cst_64 {dimension_numbers = #tpu.dot_dimension_numbers<[1], [0], [0], [1], [0, 0, 1, 1], [], []>} : vector<8x32xf32>, vector<32x96xf32>, vector<8x96xf32> -> vector<8x96xf32>
      %c0_65 = arith.constant 0 : index
      %c0_66 = arith.constant 0 : index
      %95 = vector.load %arg12[%c0_65, %c0_66] : memref<1x96xf32, #tpu.memory_space<vmem>>, vector<1x96xf32>
      %96 = vector.broadcast %95 : vector<1x96xf32> to vector<8x96xf32>
      %97 = arith.addf %94, %96 : vector<8x96xf32>
      %98 = vector.extract_strided_slice %92 {offsets = [0, 0], sizes = [8, 32], strides = [1, 1]} : vector<8x96xf32> to vector<8x32xf32>
      %99 = vector.extract_strided_slice %97 {offsets = [0, 0], sizes = [8, 32], strides = [1, 1]} : vector<8x96xf32> to vector<8x32xf32>
      %100 = arith.addf %98, %99 : vector<8x32xf32>
      %101 = arith.negf %100 : vector<8x32xf32>
      %102 = math.exp %101 : vector<8x32xf32>
      %cst_67 = arith.constant 1.000000e+00 : f32
      %103 = vector.broadcast %cst_67 : f32 to vector<8x32xf32>
      %104 = arith.addf %103, %102 : vector<8x32xf32>
      %105 = arith.divf %103, %104 : vector<8x32xf32>
      %106 = vector.extract_strided_slice %92 {offsets = [0, 32], sizes = [8, 32], strides = [1, 1]} : vector<8x96xf32> to vector<8x32xf32>
      %107 = vector.extract_strided_slice %97 {offsets = [0, 32], sizes = [8, 32], strides = [1, 1]} : vector<8x96xf32> to vector<8x32xf32>
      %108 = arith.addf %106, %107 : vector<8x32xf32>
      %109 = arith.negf %108 : vector<8x32xf32>
      %110 = math.exp %109 : vector<8x32xf32>
      %cst_68 = arith.constant 1.000000e+00 : f32
      %111 = vector.broadcast %cst_68 : f32 to vector<8x32xf32>
      %112 = arith.addf %111, %110 : vector<8x32xf32>
      %113 = arith.divf %111, %112 : vector<8x32xf32>
      %114 = vector.extract_strided_slice %92 {offsets = [0, 64], sizes = [8, 32], strides = [1, 1]} : vector<8x96xf32> to vector<8x32xf32>
      %115 = vector.extract_strided_slice %97 {offsets = [0, 64], sizes = [8, 32], strides = [1, 1]} : vector<8x96xf32> to vector<8x32xf32>
      %116 = arith.mulf %105, %115 : vector<8x32xf32>
      %117 = arith.addf %114, %116 : vector<8x32xf32>
      %118 = math.tanh %117 : vector<8x32xf32>
      %cst_69 = arith.constant 1.000000e+00 : f32
      %119 = vector.broadcast %cst_69 : f32 to vector<8x32xf32>
      %120 = arith.subf %119, %113 : vector<8x32xf32>
      %121 = arith.mulf %120, %118 : vector<8x32xf32>
      %122 = arith.mulf %113, %39 : vector<8x32xf32>
      %123 = arith.addf %121, %122 : vector<8x32xf32>
      %c0_70 = arith.constant 0 : index
      %c0_71 = arith.constant 0 : index
      %124 = vector.load %arg20[%c0_70, %c0_71] : memref<8x32xf32, #tpu.memory_space<vmem>>, vector<8x32xf32>
      tpu.vector_store %arg20[%c0_70, %c0_71], %123 {strides = array<i32>} : memref<8x32xf32, #tpu.memory_space<vmem>>, vector<8x32xf32>,
      %c0_72 = arith.constant 0 : index
      %c0_73 = arith.constant 0 : index
      %125 = vector.load %arg17[%c0_72, %c0_73] : memref<8x32xf32, #tpu.memory_space<vmem>>, vector<8x32xf32>
      tpu.vector_store %arg17[%c0_72, %c0_73], %123 {strides = array<i32>} : memref<8x32xf32, #tpu.memory_space<vmem>>, vector<8x32xf32>,
      %cst_74 = arith.constant 0xFF800000 : f32
      %126 = vector.broadcast %cst_74 : f32 to vector<8x1xf32>
      %c0_75 = arith.constant 0 : index
      %c0_76 = arith.constant 0 : index
      %127 = vector.load %arg21[%c0_75, %c0_76] : memref<8x1xf32, #tpu.memory_space<vmem>>, vector<8x1xf32>
      tpu.vector_store %arg21[%c0_75, %c0_76], %126 {strides = array<i32>} : memref<8x1xf32, #tpu.memory_space<vmem>>, vector<8x1xf32>,
      %cst_77 = arith.constant 0.000000e+00 : f32
      %128 = vector.broadcast %cst_77 : f32 to vector<8x1xf32>
      %c0_78 = arith.constant 0 : index
      %c0_79 = arith.constant 0 : index
      %129 = vector.load %arg22[%c0_78, %c0_79] : memref<8x1xf32, #tpu.memory_space<vmem>>, vector<8x1xf32>
      tpu.vector_store %arg22[%c0_78, %c0_79], %128 {strides = array<i32>} : memref<8x1xf32, #tpu.memory_space<vmem>>, vector<8x1xf32>,
    } else {
    }
    %c0 = arith.constant 0 : index
    %c0_1 = arith.constant 0 : index
    %3 = vector.load %arg20[%c0, %c0_1] : memref<8x32xf32, #tpu.memory_space<vmem>>, vector<8x32xf32>
    %c0_2 = arith.constant 0 : index
    %c0_3 = arith.constant 0 : index
    %4 = vector.load %arg13[%c0_2, %c0_3] : memref<32x128xf32, #tpu.memory_space<vmem>>, vector<32x128xf32>
    %cst = arith.constant dense<0.000000e+00> : vector<8x128xf32>
    %5 = tpu.matmul %3, %4, %cst {dimension_numbers = #tpu.dot_dimension_numbers<[1], [0], [0], [1], [0, 0, 1, 1], [], []>} : vector<8x32xf32>, vector<32x128xf32>, vector<8x128xf32> -> vector<8x128xf32>
    %c0_4 = arith.constant 0 : index
    %c0_5 = arith.constant 0 : index
    %6 = vector.load %arg19[%c0_4, %c0_5] : memref<8x32xf32, #tpu.memory_space<vmem>>, vector<8x32xf32>
    %c0_6 = arith.constant 0 : index
    %c0_7 = arith.constant 0 : index
    %7 = vector.load %arg14[%c0_6, %c0_7] : memref<32x128xf32, #tpu.memory_space<vmem>>, vector<32x128xf32>
    %cst_8 = arith.constant dense<0.000000e+00> : vector<8x128xf32>
    %8 = tpu.matmul %6, %7, %cst_8 {dimension_numbers = #tpu.dot_dimension_numbers<[1], [0], [0], [1], [0, 0, 1, 1], [], []>} : vector<8x32xf32>, vector<32x128xf32>, vector<8x128xf32> -> vector<8x128xf32>
    %9 = arith.addf %5, %8 : vector<8x128xf32>
    %c0_9 = arith.constant 0 : index
    %c0_10 = arith.constant 0 : index
    %10 = vector.load %arg15[%c0_9, %c0_10] : memref<1x128xf32, #tpu.memory_space<vmem>>, vector<1x128xf32>
    %11 = vector.broadcast %10 : vector<1x128xf32> to vector<8x128xf32>
    %12 = arith.addf %9, %11 : vector<8x128xf32>
    %c128_i32 = arith.constant 128 : i32
    %13 = arith.muli %arg0, %c128_i32 : i32
    %14 = tpu.assume_multiple %13, 128 : i32
    %c0_11 = arith.constant 0 : index
    %15 = arith.index_cast %14 : i32 to index
    %16 = vector.load %arg16[%c0_11, %15] : memref<8x128xf32, #tpu.memory_space<vmem>>, vector<8x128xf32>
    tpu.vector_store %arg16[%c0_11, %15], %12 {strides = array<i32>} : memref<8x128xf32, #tpu.memory_space<vmem>>, vector<8x128xf32>,
    %cst_12 = arith.constant dense<0xFF800000> : vector<8xf32>
    %17 = vector.multi_reduction <maximumf>, %12, %cst_12 [1] : vector<8x128xf32> to vector<8xf32>
    %18 = vector.shape_cast %17 : vector<8xf32> to vector<8x1xf32>
    %c0_13 = arith.constant 0 : index
    %c0_14 = arith.constant 0 : index
    %19 = vector.load %arg21[%c0_13, %c0_14] : memref<8x1xf32, #tpu.memory_space<vmem>>, vector<8x1xf32>
    %20 = arith.maximumf %19, %18 : vector<8x1xf32>
    %c0_15 = arith.constant 0 : index
    %c0_16 = arith.constant 0 : index
    %21 = vector.load %arg22[%c0_15, %c0_16] : memref<8x1xf32, #tpu.memory_space<vmem>>, vector<8x1xf32>
    %c0_17 = arith.constant 0 : index
    %c0_18 = arith.constant 0 : index
    %22 = vector.load %arg21[%c0_17, %c0_18] : memref<8x1xf32, #tpu.memory_space<vmem>>, vector<8x1xf32>
    %23 = arith.subf %22, %20 : vector<8x1xf32>
    %24 = math.exp %23 : vector<8x1xf32>
    %25 = arith.mulf %21, %24 : vector<8x1xf32>
    %26 = vector.broadcast %20 : vector<8x1xf32> to vector<8x128xf32>
    %27 = arith.subf %12, %26 : vector<8x128xf32>
    %28 = math.exp %27 : vector<8x128xf32>
    %cst_19 = arith.constant dense<0.000000e+00> : vector<8xf32>
    %29 = vector.multi_reduction <add>, %28, %cst_19 [1] : vector<8x128xf32> to vector<8xf32>
    %30 = vector.shape_cast %29 : vector<8xf32> to vector<8x1xf32>
    %31 = arith.addf %25, %30 : vector<8x1xf32>
    %c0_20 = arith.constant 0 : index
    %c0_21 = arith.constant 0 : index
    %32 = vector.load %arg22[%c0_20, %c0_21] : memref<8x1xf32, #tpu.memory_space<vmem>>, vector<8x1xf32>
    tpu.vector_store %arg22[%c0_20, %c0_21], %31 {strides = array<i32>} : memref<8x1xf32, #tpu.memory_space<vmem>>, vector<8x1xf32>,
    %c0_22 = arith.constant 0 : index
    %c0_23 = arith.constant 0 : index
    %33 = vector.load %arg21[%c0_22, %c0_23] : memref<8x1xf32, #tpu.memory_space<vmem>>, vector<8x1xf32>
    tpu.vector_store %arg21[%c0_22, %c0_23], %20 {strides = array<i32>} : memref<8x1xf32, #tpu.memory_space<vmem>>, vector<8x1xf32>,
    %c0_i32_24 = arith.constant 0 : i32
    %34 = arith.cmpi eq, %arg0, %c0_i32_24 : i32
    %35 = arith.extui %34 : i1 to i32
    %c0_i32_25 = arith.constant 0 : i32
    %36 = arith.cmpi ne, %35, %c0_i32_25 : i32
    scf.if %36 {
      %c0_26 = arith.constant 0 : index
      %c0_27 = arith.constant 0 : index
      %37 = vector.load %arg21[%c0_26, %c0_27] : memref<8x1xf32, #tpu.memory_space<vmem>>, vector<8x1xf32>
      %c0_28 = arith.constant 0 : index
      %c0_29 = arith.constant 0 : index
      %38 = vector.load %arg22[%c0_28, %c0_29] : memref<8x1xf32, #tpu.memory_space<vmem>>, vector<8x1xf32>
      %39 = math.log %38 : vector<8x1xf32>
      %40 = arith.addf %37, %39 : vector<8x1xf32>
      %c0_30 = arith.constant 0 : index
      %c0_31 = arith.constant 0 : index
      %41 = vector.load %arg16[%c0_30, %c0_31] : memref<8x128xf32, #tpu.memory_space<vmem>>, vector<8x128xf32>
      %42 = vector.broadcast %40 : vector<8x1xf32> to vector<8x128xf32>
      %43 = arith.subf %41, %42 : vector<8x128xf32>
      %c0_32 = arith.constant 0 : index
      %c0_33 = arith.constant 0 : index
      %44 = vector.load %arg16[%c0_32, %c0_33] : memref<8x128xf32, #tpu.memory_space<vmem>>, vector<8x128xf32>
      tpu.vector_store %arg16[%c0_32, %c0_33], %43 {strides = array<i32>} : memref<8x128xf32, #tpu.memory_space<vmem>>, vector<8x128xf32>,
    } else {
    }
    return
  }
  func.func @transform_0(%arg0: i32) -> (i32, i32, i32) {
    %c0_i32 = arith.constant 0 : i32
    %c0_i32_0 = arith.constant 0 : i32
    %c0_i32_1 = arith.constant 0 : i32
    %c0_i32_2 = arith.constant 0 : i32
    return %c0_i32, %c0_i32_0, %c0_i32_1 : i32, i32, i32
  }
  func.func @transform_1(%arg0: i32) -> (i32, i32) {
    %c0_i32 = arith.constant 0 : i32
    %c0_i32_0 = arith.constant 0 : i32
    %c0_i32_1 = arith.constant 0 : i32
    return %c0_i32, %c0_i32_0 : i32, i32
  }
  func.func @transform_2(%arg0: i32) -> (i32, i32) {
    %c0_i32 = arith.constant 0 : i32
    %c0_i32_0 = arith.constant 0 : i32
    %c0_i32_1 = arith.constant 0 : i32
    return %c0_i32, %c0_i32_0 : i32, i32
  }
  func.func @transform_3(%arg0: i32) -> (i32, i32) {
    %c0_i32 = arith.constant 0 : i32
    %c0_i32_0 = arith.constant 0 : i32
    %c0_i32_1 = arith.constant 0 : i32
    return %c0_i32, %c0_i32_0 : i32, i32
  }
  func.func @transform_4(%arg0: i32) -> (i32, i32) {
    %c0_i32 = arith.constant 0 : i32
    %c0_i32_0 = arith.constant 0 : i32
    %c0_i32_1 = arith.constant 0 : i32
    return %c0_i32, %c0_i32_0 : i32, i32
  }
  func.func @transform_5(%arg0: i32) -> (i32, i32) {
    %c0_i32 = arith.constant 0 : i32
    %c0_i32_0 = arith.constant 0 : i32
    %c0_i32_1 = arith.constant 0 : i32
    return %c0_i32, %c0_i32_0 : i32, i32
  }
  func.func @transform_6(%arg0: i32) -> (i32, i32) {
    %c0_i32 = arith.constant 0 : i32
    %c0_i32_0 = arith.constant 0 : i32
    %c0_i32_1 = arith.constant 0 : i32
    return %c0_i32, %c0_i32_0 : i32, i32
  }
  func.func @transform_7(%arg0: i32) -> (i32, i32) {
    %c0_i32 = arith.constant 0 : i32
    %c0_i32_0 = arith.constant 0 : i32
    %c0_i32_1 = arith.constant 0 : i32
    return %c0_i32, %c0_i32_0 : i32, i32
  }
  func.func @transform_8(%arg0: i32) -> (i32, i32) {
    %c0_i32 = arith.constant 0 : i32
    %c0_i32_0 = arith.constant 0 : i32
    %c0_i32_1 = arith.constant 0 : i32
    return %c0_i32, %c0_i32_0 : i32, i32
  }
  func.func @transform_9(%arg0: i32) -> (i32, i32) {
    %c0_i32 = arith.constant 0 : i32
    %c0_i32_0 = arith.constant 0 : i32
    %c0_i32_1 = arith.constant 0 : i32
    return %c0_i32, %c0_i32_0 : i32, i32
  }
  func.func @transform_10(%arg0: i32) -> (i32, i32) {
    %c0_i32 = arith.constant 0 : i32
    %c0_i32_0 = arith.constant 0 : i32
    %c0_i32_1 = arith.constant 0 : i32
    return %c0_i32, %c0_i32_0 : i32, i32
  }
  func.func @transform_11(%arg0: i32) -> (i32, i32) {
    %c0_i32 = arith.constant 0 : i32
    %c0_i32_0 = arith.constant 0 : i32
    %c0_i32_1 = arith.constant 0 : i32
    return %c0_i32, %c0_i32_0 : i32, i32
  }
  func.func @transform_12(%arg0: i32) -> (i32, i32) {
    %c0_i32 = arith.constant 0 : i32
    %c0_i32_0 = arith.constant 0 : i32
    return %c0_i32, %arg0 : i32, i32
  }
  func.func @transform_13(%arg0: i32) -> (i32, i32) {
    %c0_i32 = arith.constant 0 : i32
    %c0_i32_0 = arith.constant 0 : i32
    return %c0_i32, %arg0 : i32, i32
  }
  func.func @transform_14(%arg0: i32) -> (i32, i32) {
    %c0_i32 = arith.constant 0 : i32
    %c0_i32_0 = arith.constant 0 : i32
    return %c0_i32, %arg0 : i32, i32
  }
  func.func @transform_15(%arg0: i32) -> (i32, i32) {
    %c0_i32 = arith.constant 0 : i32
    %c0_i32_0 = arith.constant 0 : i32
    %c0_i32_1 = arith.constant 0 : i32
    return %c0_i32, %c0_i32_0 : i32, i32
  }
  func.func @transform_16(%arg0: i32) -> (i32, i32) {
    %c0_i32 = arith.constant 0 : i32
    %c0_i32_0 = arith.constant 0 : i32
    %c0_i32_1 = arith.constant 0 : i32
    return %c0_i32, %c0_i32_0 : i32, i32
  }
  func.func @transform_17(%arg0: i32) -> (i32, i32) {
    %c0_i32 = arith.constant 0 : i32
    %c0_i32_0 = arith.constant 0 : i32
    %c0_i32_1 = arith.constant 0 : i32
    return %c0_i32, %c0_i32_0 : i32, i32
  }
}

</mosaic_0001>

<bundles_post_ra>
// kernel: decoder_forward_pallas.1
= control target key start
LH: loop header
LB: loop body
LE: loop exit
PB: predicated region body
PF: predicated region fallthrough
CT: control target
= control target key end

     0   :  { %v8678_v0 = vmov 0.0   ;;  %vm8691_vm0 = vmmov 0   ;;  %vm8696_vm1 = vcmask 261120   ;;  %vm2498_vm2 = vcmask 130112   ;;  %s8658_s3 = inlined_call_operand.vmem [shape: f32[32,32], index: 3, kind: input, shape index: {}]   ;;  %s8659_s4 = inlined_call_operand.vmem [shape: f32[32,32], index: 4, kind: input, shape index: {}]   ;;  %s8660_s2 = inlined_call_operand.vmem [shape: f32[8,32], index: 2, kind: input, shape index: {}]   ;;  %s8661_s0 = inlined_call_operand.vmem [shape: f32[8,128,32], index: 0, kind: input, shape index: {}]   ;;  %s8662_s5 = inlined_call_operand.vmem [shape: f32[1,32], index: 5, kind: input, shape index: {}]   ;;  %s8663_s6 = inlined_call_operand.vmem [shape: f32[1,32], index: 6, kind: input, shape index: {}]   ;;  %s8664_s17 = inlined_call_operand.vmem [shape: f32[8,128], index: 17, kind: output, shape index: {2}]   ;;  %s8665_s8 = inlined_call_operand.vmem [shape: f32[32,96], index: 8, kind: input, shape index: {}]   ;;  %s8666_s7 = inlined_call_operand.vmem [shape: f32[16,96], index: 7, kind: input, shape index: {}]   ;;  %s8667_s1 = inlined_call_operand.vmem [shape: f32[8,16], index: 1, kind: input, shape index: {}]   ;;  %s8668_s9 = inlined_call_operand.vmem [shape: f32[32,96], index: 9, kind: input, shape index: {}]   ;;  %s8669_s13 = inlined_call_operand.vmem [shape: f32[32,128], index: 13, kind: input, shape index: {}]   ;;  %s8670_s11 = inlined_call_operand.vmem [shape: f32[1,96], index: 11, kind: input, shape index: {}]   ;;  %s8671_s10 = inlined_call_operand.vmem [shape: f32[1,96], index: 10, kind: input, shape index: {}]   ;;  %s8672_s12 = inlined_call_operand.vmem [shape: f32[32,128], index: 12, kind: input, shape index: {}]   ;;  %s8673_s16 = inlined_call_operand.vmem [shape: f32[8,32], index: 16, kind: output, shape index: {1}]   ;;  %s8674_s14 = inlined_call_operand.vmem [shape: f32[1,128], index: 14, kind: input, shape index: {}]   ;;  %s8675_s15 = inlined_call_operand.vmem [shape: f32[8,128], index: 15, kind: output, shape index: {0}]  }
   0x1   :  { %8701 = sst [smem:[#allocation49_spill]] %s8658_s3  ;;  %4958 = vmatprep.subr.mxu0 %v8678_v0  ;;  %4966 = vmatprep.mubr.msk.f32.mxu0 %vm8691_vm0, %v8678_v0  ;;  %v186_v9 = vld [vmem:[%s8660_s2] sm:$0xff]  ;;  %v111_v10 = vld [vmem:[%s8661_s0 + $0x1b0] sm:$0xff]  ;;  %v112_v11 = vld [vmem:[%s8661_s0 + $0x1b8] sm:$0xff]  ;;  %vm8697_vm3 = vcmask 195712   ;;  %vm8698_vm4 = vcmask 261312  }
   0x2   :  { %8702 = sst [smem:[#allocation50_spill]] %s8659_s4  ;;  %v113_v12 = vld [vmem:[%s8661_s0 + $0x1c0] sm:$0xff]  ;;  %5058 = vmatprep.mubr.msk.f32.mxu1 %vm8696_vm1, %v111_v10  ;;  %v114_v14 = vld [vmem:[%s8661_s0 + $0x1c8] sm:$0xff]  ;;  %v115_v15 = vld [vmem:[%s8661_s0 + $0x1d0] sm:$0xff]  ;;  %vm8699_vm5 = vcmask 326912   ;;  %vm2526_vm6 = vcmask 392512  }
   0x3   :  { %s8703_s26 = sld [smem:[#allocation49_spill]]  ;;  %v57_v13 = vld [vmem:[%s8661_s0] sm:$0xff]  ;;  %v58_v16 = vld [vmem:[%s8661_s0 + $0x8] sm:$0xff]  ;;  %v116_v17 = vld [vmem:[%s8661_s0 + $0x1d8] sm:$0xff]  ;;  %vm2533_vm7 = vcmask 458112   ;;  %vm2540_vm8 = vcmask 523712  }
   0x4   :  { %s8704_s29 = sld [smem:[#allocation50_spill]]  ;;  %v59_v18 = vld [vmem:[%s8661_s0 + $0x10] sm:$0xff]  ;;  %v117_v19 = vld [vmem:[%s8661_s0 + $0x1e0] sm:$0xff]  ;;  %v60_v20 = vld [vmem:[%s8661_s0 + $0x18] sm:$0xff]  ;;  %vm2547_vm9 = vcmask 589312   ;;  %vm2554_vm10 = vcmask 654912  }
   0x5   :  { %v118_v21 = vld [vmem:[%s8661_s0 + $0x1e8] sm:$0xff]  ;;  %v61_v22 = vld [vmem:[%s8661_s0 + $0x20] sm:$0xff]  ;;  %v119_v23 = vld [vmem:[%s8661_s0 + $0x1f0] sm:$0xff]  ;;  %vm2561_vm11 = vcmask 720512   ;;  %vm2568_vm12 = vcmask 786112   ;;  %vm2575_vm13 = vcmask 851712  }
   0x6   :  { %v62_v24 = vld [vmem:[%s8661_s0 + $0x28] sm:$0xff]  ;;  %v120_v25 = vld [vmem:[%s8661_s0 + $0x1f8] sm:$0xff]  ;;  %v63_v26 = vld [vmem:[%s8661_s0 + $0x30] sm:$0xff]  ;;  %vm2582_vm14 = vcmask 917312   ;;  %vm2589_vm15 = vcmask 982912   ;;  %s5392_s4 = smov 96  }
   0x7   :  { %v121_v27 = vld [vmem:[%s8661_s0 + $0x200] sm:$0xff]  ;;  %v64_v28 = vld [vmem:[%s8661_s0 + $0x38] sm:$0xff]  ;;  %v122_v29 = vld [vmem:[%s8661_s0 + $0x208] sm:$0xff] }
   0x8   :  { %v65_v30 = vld [vmem:[%s8661_s0 + $0x40] sm:$0xff]  ;;  %v123_v31 = vld [vmem:[%s8661_s0 + $0x210] sm:$0xff]  ;;  %v66_v32 = vld [vmem:[%s8661_s0 + $0x48] sm:$0xff] }
   0x9   :  { %v190_v1 = vld [vmem:[%s8703_s26 + $0x18] sm:$0xff]  ;;  %v189_v3 = vld [vmem:[%s8703_s26 + $0x10] sm:$0xff]  ;;  %v188_v5 = vld [vmem:[%s8703_s26 + $0x8] sm:$0xff] }
   0xa   :  { %v268_v2 = vld [vmem:[%s8704_s29 + $0x18] sm:$0xff]  ;;  %4959 = vmatpush3.msra.mxu0 %v190_v1  ;;  %v267_v4 = vld [vmem:[%s8704_s29 + $0x10] sm:$0xff]  ;;  %v266_v6 = vld [vmem:[%s8704_s29 + $0x8] sm:$0xff] }
   0xb   :  { %5220 = vmatprep.subr.mxu1 %v268_v2  ;;  %4960 = vmatprep.subr.mxu0 %v8678_v0  ;;  %v187_v7 = vld [vmem:[%s8703_s26] sm:$0xff]  ;;  %v124_v33 = vld [vmem:[%s8661_s0 + $0x218] sm:$0xff]  ;;  %v67_v34 = vld [vmem:[%s8661_s0 + $0x50] sm:$0xff] }
   0xc   :  { %5224 = vmatpush3.msra.mxu1 %v268_v2  ;;  %4961 = vmatpush3.msra.mxu0 %v189_v3  ;;  %v265_v8 = vld [vmem:[%s8704_s29] sm:$0xff]  ;;  %v68_v36 = vld [vmem:[%s8661_s0 + $0x58] sm:$0xff]  ;;  %v126_v37 = vld [vmem:[%s8661_s0 + $0x228] sm:$0xff] }
   0xd   :  { %5221 = vmatprep.subr.mxu1 %v267_v4  ;;  %4962 = vmatprep.subr.mxu0 %v8678_v0  ;;  %v125_v35 = vld [vmem:[%s8661_s0 + $0x220] sm:$0xff]  ;;  %v127_v39 = vld [vmem:[%s8661_s0 + $0x230] sm:$0xff]  ;;  %v70_v40 = vld [vmem:[%s8661_s0 + $0x68] sm:$0xff] }
   0xe   :  { %5225 = vmatpush3.msra.mxu1 %v267_v4  ;;  %4963 = vmatpush3.msra.mxu0 %v188_v5  ;;  %v69_v38 = vld [vmem:[%s8661_s0 + $0x60] sm:$0xff]  ;;  %v128_v41 = vld [vmem:[%s8661_s0 + $0x238] sm:$0xff]  ;;  %v71_v42 = vld [vmem:[%s8661_s0 + $0x70] sm:$0xff] }
   0xf   :  { %5222 = vmatprep.subr.mxu1 %v266_v6  ;;  %4964 = vmatprep.subr.mxu0 %v8678_v0  ;;  %v129_v43 = vld [vmem:[%s8661_s0 + $0x240] sm:$0xff]  ;;  %v72_v44 = vld [vmem:[%s8661_s0 + $0x78] sm:$0xff]  ;;  %v130_v45 = vld [vmem:[%s8661_s0 + $0x248] sm:$0xff] }
  0x10   :  { %5226 = vmatpush3.msra.mxu1 %v266_v6  ;;  %4965 = vmatpush3.msra.mxu0 %v187_v7  ;;  %v73_v46 = vld [vmem:[%s8661_s0 + $0x80] sm:$0xff]  ;;  %v131_v47 = vld [vmem:[%s8661_s0 + $0x250] sm:$0xff]  ;;  %v74_v48 = vld [vmem:[%s8661_s0 + $0x88] sm:$0xff] }
  0x11   :  { %5223 = vmatprep.subr.mxu1 %v265_v8  ;;  %4967 = vmatmul.mubr.msk.f32.vlgmr.msra.gmra.mxu0 %vm8696_vm1, %v186_v9  ;;  %v132_v49 = vld [vmem:[%s8661_s0 + $0x258] sm:$0xff]  ;;  %v75_v50 = vld [vmem:[%s8661_s0 + $0x90] sm:$0xff]  ;;  %v133_v51 = vld [vmem:[%s8661_s0 + $0x260] sm:$0xff] }
  0x12   :  { %4969 = vmatprep.subr.mxu0 %v268_v2  ;;  %5227 = vmatpush3.msra.mxu1 %v265_v8  ;;  %v76_v52 = vld [vmem:[%s8661_s0 + $0x98] sm:$0xff]  ;;  %v134_v53 = vld [vmem:[%s8661_s0 + $0x268] sm:$0xff]  ;;  %v77_v54 = vld [vmem:[%s8661_s0 + $0xa0] sm:$0xff] }
  0x13   :  { %4970 = vmatpush3.msra.mxu0 %v268_v2  ;;  %5059 = vmatmul.mubr.msk.f32.vlgmr.msra.gmra.mxu1 %vm8696_vm1, %v112_v11  ;;  %v135_v55 = vld [vmem:[%s8661_s0 + $0x270] sm:$0xff]  ;;  %v78_v56 = vld [vmem:[%s8661_s0 + $0xa8] sm:$0xff]  ;;  %v136_v57 = vld [vmem:[%s8661_s0 + $0x278] sm:$0xff] }
  0x14   :  { %4971 = vmatprep.subr.mxu0 %v267_v4  ;;  %5061 = vmatprep.mubr.msk.f32.mxu1 %vm8696_vm1, %v113_v12  ;;  %v79_v58 = vld [vmem:[%s8661_s0 + $0xb0] sm:$0xff]  ;;  %v137_v59 = vld [vmem:[%s8661_s0 + $0x280] sm:$0xff]  ;;  %v80_v60 = vld [vmem:[%s8661_s0 + $0xb8] sm:$0xff] }
  0x15   :  { %4972 = vmatpush3.msra.mxu0 %v267_v4  ;;  %4977 = vmatprep.mubr.msk.f32.mxu0 %vm8696_vm1, %v57_v13  ;;  %v138_v61 = vld [vmem:[%s8661_s0 + $0x288] sm:$0xff]  ;;  %v81_v62 = vld [vmem:[%s8661_s0 + $0xc0] sm:$0xff]  ;;  %v139_v63 = vld [vmem:[%s8661_s0 + $0x290] sm:$0xff] }
  0x16   :  { %4973 = vmatprep.subr.mxu0 %v266_v6  ;;  %v82_v1 = vld [vmem:[%s8661_s0 + $0xc8] sm:$0xff]  ;;  %v140_v2 = vld [vmem:[%s8661_s0 + $0x298] sm:$0xff]  ;;  %v83_v3 = vld [vmem:[%s8661_s0 + $0xd0] sm:$0xff] }
  0x17   :  { %4974 = vmatpush3.msra.mxu0 %v266_v6  ;;  %5062 = vmatmul.mubr.msk.f32.gmra.mxu1 %vm8696_vm1, %v114_v14  ;;  %v141_v4 = vld [vmem:[%s8661_s0 + $0x2a0] sm:$0xff]  ;;  %v84_v5 = vld [vmem:[%s8661_s0 + $0xd8] sm:$0xff]  ;;  %v142_v6 = vld [vmem:[%s8661_s0 + $0x2a8] sm:$0xff] }
  0x18   :  { %4975 = vmatprep.subr.mxu0 %v265_v8  ;;  %5064 = vmatprep.mubr.msk.f32.mxu1 %vm8696_vm1, %v115_v15  ;;  %v85_v7 = vld [vmem:[%s8661_s0 + $0xe0] sm:$0xff]  ;;  %v86_v9 = vld [vmem:[%s8661_s0 + $0xe8] sm:$0xff]  ;;  %v144_v10 = vld [vmem:[%s8661_s0 + $0x2b8] sm:$0xff] }
  0x19   :  { %4976 = vmatpush3.msra.mxu0 %v265_v8  ;;  %v143_v8 = vld [vmem:[%s8661_s0 + $0x2b0] sm:$0xff]  ;;  %v145_v12 = vld [vmem:[%s8661_s0 + $0x2c0] sm:$0xff]  ;;  %v88_v13 = vld [vmem:[%s8661_s0 + $0xf8] sm:$0xff] }
  0x1a   :  { %4978 = vmatmul.mubr.msk.f32.vlgmr.msra.gmra.mxu0 %vm8696_vm1, %v58_v16  ;;  %5169 = vmatprep.subr.mxu0 %v8678_v0  ;;  %v87_v11 = vld [vmem:[%s8661_s0 + $0xf0] sm:$0xff]  ;;  %v146_v14 = vld [vmem:[%s8661_s0 + $0x2c8] sm:$0xff]  ;;  %v89_v15 = vld [vmem:[%s8661_s0 + $0x100] sm:$0xff] }
  0x1b   :  { %5065 = vmatmul.mubr.msk.f32.gmra.mxu1 %vm8696_vm1, %v116_v17  ;;  %4980 = vmatprep.mubr.msk.f32.mxu0 %vm8696_vm1, %v59_v18  ;;  %v147_v16 = vld [vmem:[%s8661_s0 + $0x2d0] sm:$0xff]  ;;  %v90_v17 = vld [vmem:[%s8661_s0 + $0x108] sm:$0xff]  ;;  %v148_v18 = vld [vmem:[%s8661_s0 + $0x2d8] sm:$0xff] }
  0x1c   :  { %5067 = vmatprep.mubr.msk.f32.mxu1 %vm8696_vm1, %v117_v19  ;;  %v91_v19 = vld [vmem:[%s8661_s0 + $0x110] sm:$0xff] }
  0x1e   :  { %4981 = vmatmul.mubr.msk.f32.gmra.mxu0 %vm8696_vm1, %v60_v20  ;;  %v149_v20 = vld [vmem:[%s8661_s0 + $0x2e0] sm:$0xff] }
  0x1f   :  { %5068 = vmatmul.mubr.msk.f32.gmra.mxu1 %vm8696_vm1, %v118_v21  ;;  %4983 = vmatprep.mubr.msk.f32.mxu0 %vm8696_vm1, %v61_v22  ;;  %v92_v21 = vld [vmem:[%s8661_s0 + $0x118] sm:$0xff]  ;;  %v150_v22 = vld [vmem:[%s8661_s0 + $0x2e8] sm:$0xff] }
  0x20   :  { %5070 = vmatprep.mubr.msk.f32.mxu1 %vm8696_vm1, %v119_v23  ;;  %v93_v23 = vld [vmem:[%s8661_s0 + $0x120] sm:$0xff] }
  0x22   :  { %4984 = vmatmul.mubr.msk.f32.gmra.mxu0 %vm8696_vm1, %v62_v24  ;;  %v151_v24 = vld [vmem:[%s8661_s0 + $0x2f0] sm:$0xff] }
  0x23   :  { %5071 = vmatmul.mubr.msk.f32.gmra.mxu1 %vm8696_vm1, %v120_v25  ;;  %4986 = vmatprep.mubr.msk.f32.mxu0 %vm8696_vm1, %v63_v26  ;;  %v94_v25 = vld [vmem:[%s8661_s0 + $0x128] sm:$0xff]  ;;  %v152_v26 = vld [vmem:[%s8661_s0 + $0x2f8] sm:$0xff] }
  0x24   :  { %5073 = vmatprep.mubr.msk.f32.mxu1 %vm8696_vm1, %v121_v27  ;;  %v95_v27 = vld [vmem:[%s8661_s0 + $0x130] sm:$0xff] }
  0x26   :  { %4987 = vmatmul.mubr.msk.f32.gmra.mxu0 %vm8696_vm1, %v64_v28  ;;  %v153_v28 = vld [vmem:[%s8661_s0 + $0x300] sm:$0xff] }
  0x27   :  { %5074 = vmatmul.mubr.msk.f32.gmra.mxu1 %vm8696_vm1, %v122_v29  ;;  %4989 = vmatprep.mubr.msk.f32.mxu0 %vm8696_vm1, %v65_v30  ;;  %v96_v29 = vld [vmem:[%s8661_s0 + $0x138] sm:$0xff]  ;;  %v154_v30 = vld [vmem:[%s8661_s0 + $0x308] sm:$0xff] }
  0x28   :  { %5076 = vmatprep.mubr.msk.f32.mxu1 %vm8696_vm1, %v123_v31  ;;  %v97_v31 = vld [vmem:[%s8661_s0 + $0x140] sm:$0xff] }
  0x2a   :  { %4990 = vmatmul.mubr.msk.f32.gmra.mxu0 %vm8696_vm1, %v66_v32  ;;  %v155_v32 = vld [vmem:[%s8661_s0 + $0x310] sm:$0xff] }
  0x2b   :  { %5077 = vmatmul.mubr.msk.f32.gmra.mxu1 %vm8696_vm1, %v124_v33  ;;  %4992 = vmatprep.mubr.msk.f32.mxu0 %vm8696_vm1, %v67_v34  ;;  %v98_v33 = vld [vmem:[%s8661_s0 + $0x148] sm:$0xff]  ;;  %v156_v34 = vld [vmem:[%s8661_s0 + $0x318] sm:$0xff] }
  0x2c   :  { %5079 = vmatprep.mubr.msk.f32.mxu1 %vm8696_vm1, %v125_v35  ;;  %v99_v35 = vld [vmem:[%s8661_s0 + $0x150] sm:$0xff] }
  0x2e   :  { %4993 = vmatmul.mubr.msk.f32.gmra.mxu0 %vm8696_vm1, %v68_v36  ;;  %v157_v36 = vld [vmem:[%s8661_s0 + $0x320] sm:$0xff] }
  0x2f   :  { %5080 = vmatmul.mubr.msk.f32.gmra.mxu1 %vm8696_vm1, %v126_v37  ;;  %4995 = vmatprep.mubr.msk.f32.mxu0 %vm8696_vm1, %v69_v38  ;;  %v100_v37 = vld [vmem:[%s8661_s0 + $0x158] sm:$0xff]  ;;  %v158_v38 = vld [vmem:[%s8661_s0 + $0x328] sm:$0xff] }
  0x30   :  { %5082 = vmatprep.mubr.msk.f32.mxu1 %vm8696_vm1, %v127_v39  ;;  %v101_v39 = vld [vmem:[%s8661_s0 + $0x160] sm:$0xff] }
  0x32   :  { %4996 = vmatmul.mubr.msk.f32.gmra.mxu0 %vm8696_vm1, %v70_v40  ;;  %v159_v40 = vld [vmem:[%s8661_s0 + $0x330] sm:$0xff] }
  0x33   :  { %5083 = vmatmul.mubr.msk.f32.gmra.mxu1 %vm8696_vm1, %v128_v41  ;;  %4998 = vmatprep.mubr.msk.f32.mxu0 %vm8696_vm1, %v71_v42  ;;  %v102_v41 = vld [vmem:[%s8661_s0 + $0x168] sm:$0xff]  ;;  %v160_v42 = vld [vmem:[%s8661_s0 + $0x338] sm:$0xff] }
  0x34   :  { %5085 = vmatprep.mubr.msk.f32.mxu1 %vm8696_vm1, %v129_v43  ;;  %v103_v43 = vld [vmem:[%s8661_s0 + $0x170] sm:$0xff] }
  0x36   :  { %4999 = vmatmul.mubr.msk.f32.gmra.mxu0 %vm8696_vm1, %v72_v44  ;;  %v161_v44 = vld [vmem:[%s8661_s0 + $0x340] sm:$0xff] }
  0x37   :  { %5086 = vmatmul.mubr.msk.f32.gmra.mxu1 %vm8696_vm1, %v130_v45  ;;  %5001 = vmatprep.mubr.msk.f32.mxu0 %vm8696_vm1, %v73_v46  ;;  %v104_v45 = vld [vmem:[%s8661_s0 + $0x178] sm:$0xff]  ;;  %v162_v46 = vld [vmem:[%s8661_s0 + $0x348] sm:$0xff] }
  0x38   :  { %5088 = vmatprep.mubr.msk.f32.mxu1 %vm8696_vm1, %v131_v47  ;;  %v105_v47 = vld [vmem:[%s8661_s0 + $0x180] sm:$0xff] }
  0x3a   :  { %5002 = vmatmul.mubr.msk.f32.gmra.mxu0 %vm8696_vm1, %v74_v48  ;;  %v163_v48 = vld [vmem:[%s8661_s0 + $0x350] sm:$0xff] }
  0x3b   :  { %5089 = vmatmul.mubr.msk.f32.gmra.mxu1 %vm8696_vm1, %v132_v49  ;;  %5004 = vmatprep.mubr.msk.f32.mxu0 %vm8696_vm1, %v75_v50  ;;  %v106_v49 = vld [vmem:[%s8661_s0 + $0x188] sm:$0xff]  ;;  %v164_v50 = vld [vmem:[%s8661_s0 + $0x358] sm:$0xff] }
  0x3c   :  { %5091 = vmatprep.mubr.msk.f32.mxu1 %vm8696_vm1, %v133_v51  ;;  %v107_v51 = vld [vmem:[%s8661_s0 + $0x190] sm:$0xff] }
  0x3e   :  { %5005 = vmatmul.mubr.msk.f32.gmra.mxu0 %vm8696_vm1, %v76_v52  ;;  %v165_v52 = vld [vmem:[%s8661_s0 + $0x360] sm:$0xff] }
  0x3f   :  { %5092 = vmatmul.mubr.msk.f32.gmra.mxu1 %vm8696_vm1, %v134_v53  ;;  %5007 = vmatprep.mubr.msk.f32.mxu0 %vm8696_vm1, %v77_v54  ;;  %v108_v53 = vld [vmem:[%s8661_s0 + $0x198] sm:$0xff]  ;;  %v166_v54 = vld [vmem:[%s8661_s0 + $0x368] sm:$0xff] }
  0x40   :  { %5094 = vmatprep.mubr.msk.f32.mxu1 %vm8696_vm1, %v135_v55  ;;  %v109_v55 = vld [vmem:[%s8661_s0 + $0x1a0] sm:$0xff] }
  0x42   :  { %5008 = vmatmul.mubr.msk.f32.gmra.mxu0 %vm8696_vm1, %v78_v56  ;;  %v167_v56 = vld [vmem:[%s8661_s0 + $0x370] sm:$0xff] }
  0x43   :  { %5095 = vmatmul.mubr.msk.f32.gmra.mxu1 %vm8696_vm1, %v136_v57  ;;  %5010 = vmatprep.mubr.msk.f32.mxu0 %vm8696_vm1, %v79_v58  ;;  %v110_v57 = vld [vmem:[%s8661_s0 + $0x1a8] sm:$0xff]  ;;  %v168_v58 = vld [vmem:[%s8661_s0 + $0x378] sm:$0xff] }
  0x44   :  { %5097 = vmatprep.mubr.msk.f32.mxu1 %vm8696_vm1, %v137_v59  ;;  %v169_v59 = vld [vmem:[%s8661_s0 + $0x380] sm:$0xff] }
  0x46   :  { %5011 = vmatmul.mubr.msk.f32.gmra.mxu0 %vm8696_vm1, %v80_v60  ;;  %v170_v60 = vld [vmem:[%s8661_s0 + $0x388] sm:$0xff] }
  0x47   :  { %5098 = vmatmul.mubr.msk.f32.gmra.mxu1 %vm8696_vm1, %v138_v61  ;;  %5013 = vmatprep.mubr.msk.f32.mxu0 %vm8696_vm1, %v81_v62  ;;  %v171_v61 = vld [vmem:[%s8661_s0 + $0x390] sm:$0xff]  ;;  %v172_v62 = vld [vmem:[%s8661_s0 + $0x398] sm:$0xff] }
  0x48   :  { %5100 = vmatprep.mubr.msk.f32.mxu1 %vm8696_vm1, %v139_v63  ;;  %v173_v63 = vld [vmem:[%s8661_s0 + $0x3a0] sm:$0xff] }
  0x4a   :  { %5014 = vmatmul.mubr.msk.f32.gmra.mxu0 %vm8696_vm1, %v82_v1  ;;  %v174_v1 = vld [vmem:[%s8661_s0 + $0x3a8] sm:$0xff] }
  0x4b   :  { %5101 = vmatmul.mubr.msk.f32.gmra.mxu1 %vm8696_vm1, %v140_v2  ;;  %5016 = vmatprep.mubr.msk.f32.mxu0 %vm8696_vm1, %v83_v3  ;;  %v175_v2 = vld [vmem:[%s8661_s0 + $0x3b0] sm:$0xff]  ;;  %v176_v3 = vld [vmem:[%s8661_s0 + $0x3b8] sm:$0xff] }
  0x4c   :  { %5103 = vmatprep.mubr.msk.f32.mxu1 %vm8696_vm1, %v141_v4  ;;  %v177_v4 = vld [vmem:[%s8661_s0 + $0x3c0] sm:$0xff] }
  0x4e   :  { %5017 = vmatmul.mubr.msk.f32.gmra.mxu0 %vm8696_vm1, %v84_v5  ;;  %v178_v5 = vld [vmem:[%s8661_s0 + $0x3c8] sm:$0xff] }
  0x4f   :  { %5104 = vmatmul.mubr.msk.f32.gmra.mxu1 %vm8696_vm1, %v142_v6  ;;  %5019 = vmatprep.mubr.msk.f32.mxu0 %vm8696_vm1, %v85_v7  ;;  %v179_v6 = vld [vmem:[%s8661_s0 + $0x3d0] sm:$0xff]  ;;  %v180_v7 = vld [vmem:[%s8661_s0 + $0x3d8] sm:$0xff] }
  0x50   :  { %5106 = vmatprep.mubr.msk.f32.mxu1 %vm8696_vm1, %v143_v8  ;;  %v181_v8 = vld [vmem:[%s8661_s0 + $0x3e0] sm:$0xff] }
  0x52   :  { %5020 = vmatmul.mubr.msk.f32.gmra.mxu0 %vm8696_vm1, %v86_v9  ;;  %v182_v9 = vld [vmem:[%s8661_s0 + $0x3e8] sm:$0xff] }
  0x53   :  { %5107 = vmatmul.mubr.msk.f32.gmra.mxu1 %vm8696_vm1, %v144_v10  ;;  %5022 = vmatprep.mubr.msk.f32.mxu0 %vm8696_vm1, %v87_v11  ;;  %v183_v10 = vld [vmem:[%s8661_s0 + $0x3f0] sm:$0xff]  ;;  %v184_v11 = vld [vmem:[%s8661_s0 + $0x3f8] sm:$0xff] }
  0x54   :  { %5109 = vmatprep.mubr.msk.f32.mxu1 %vm8696_vm1, %v145_v12  ;;  %v5389_v12 = vmov 1966171168  }
  0x56   :  { %5023 = vmatmul.mubr.msk.f32.gmra.mxu0 %vm8696_vm1, %v88_v13  ;;  %v1361_v13 = vunpack.c.l.s4 %v5389_v12 }
  0x57   :  { %5110 = vmatmul.mubr.msk.f32.gmra.mxu1 %vm8696_vm1, %v146_v14  ;;  %5025 = vmatprep.mubr.msk.f32.mxu0 %vm8696_vm1, %v89_v15  ;;  %v1363_v14 = vlaneseq }
  0x58   :  { %5112 = vmatprep.mubr.msk.f32.mxu1 %vm8696_vm1, %v147_v16  ;;  %v1362_v15 = vunpack.c.0.s8 %v1361_v13 }
  0x59   :  { %v6035_v16 = vshrl.u32 %v1363_v14, 7 }
  0x5a   :  { %5026 = vmatmul.mubr.msk.f32.gmra.mxu0 %vm8696_vm1, %v90_v17 }
  0x5b   :  { %5113 = vmatmul.mubr.msk.f32.gmra.mxu1 %vm8696_vm1, %v148_v18  ;;  %5028 = vmatprep.mubr.msk.f32.mxu0 %vm8696_vm1, %v91_v19  ;;  %8705 = vst [vmem:[#allocation6_spill] sm:$0xff] %v6035_v16  ;;  %v1365_v17 = vsub.s32 %v1362_v15, %v6035_v16 }
  0x5c   :  { %5115 = vmatprep.mubr.msk.f32.mxu1 %vm8696_vm1, %v149_v20 }
  0x5e   :  { %5029 = vmatmul.mubr.msk.f32.gmra.mxu0 %vm8696_vm1, %v92_v21  ;;  %v6039_v21 = vsub.s32 0, %v6035_v16 }
  0x5f   :  { %5116 = vmatmul.mubr.msk.f32.gmra.mxu1 %vm8696_vm1, %v150_v22  ;;  %5031 = vmatprep.mubr.msk.f32.mxu0 %vm8696_vm1, %v93_v23 }
  0x60   :  { %5118 = vmatprep.mubr.msk.f32.mxu1 %vm8696_vm1, %v151_v24  ;;  %8706 = vst [vmem:[#allocation7_spill] sm:$0xff] %v6039_v21 }
  0x62   :  { %5032 = vmatmul.mubr.msk.f32.gmra.mxu0 %vm8696_vm1, %v94_v25 }
  0x63   :  { %5119 = vmatmul.mubr.msk.f32.gmra.mxu1 %vm8696_vm1, %v152_v26  ;;  %5034 = vmatprep.mubr.msk.f32.mxu0 %vm8696_vm1, %v95_v27 }
  0x64   :  { %5121 = vmatprep.mubr.msk.f32.mxu1 %vm8696_vm1, %v153_v28 }
  0x66   :  { %5035 = vmatmul.mubr.msk.f32.gmra.mxu0 %vm8696_vm1, %v96_v29 }
  0x67   :  { %5122 = vmatmul.mubr.msk.f32.gmra.mxu1 %vm8696_vm1, %v154_v30  ;;  %5037 = vmatprep.mubr.msk.f32.mxu0 %vm8696_vm1, %v97_v31 }
  0x68   :  { %5124 = vmatprep.mubr.msk.f32.mxu1 %vm8696_vm1, %v155_v32 }
  0x6a   :  { %5038 = vmatmul.mubr.msk.f32.gmra.mxu0 %vm8696_vm1, %v98_v33 }
  0x6b   :  { %5125 = vmatmul.mubr.msk.f32.gmra.mxu1 %vm8696_vm1, %v156_v34  ;;  %5040 = vmatprep.mubr.msk.f32.mxu0 %vm8696_vm1, %v99_v35 }
  0x6c   :  { %5127 = vmatprep.mubr.msk.f32.mxu1 %vm8696_vm1, %v157_v36  ;;  %v6059_v36 = vld [vmem:[%s8662_s5] ss:$0 sm:$0xff] }
  0x6e   :  { %5041 = vmatmul.mubr.msk.f32.gmra.mxu0 %vm8696_vm1, %v100_v37 }
  0x6f   :  { %5128 = vmatmul.mubr.msk.f32.gmra.mxu1 %vm8696_vm1, %v158_v38  ;;  %5043 = vmatprep.mubr.msk.f32.mxu0 %vm8696_vm1, %v101_v39 }
  0x70   :  { %5130 = vmatprep.mubr.msk.f32.mxu1 %vm8696_vm1, %v159_v40 }
  0x72   :  { %5044 = vmatmul.mubr.msk.f32.gmra.mxu0 %vm8696_vm1, %v102_v41 }
  0x73   :  { %5131 = vmatmul.mubr.msk.f32.gmra.mxu1 %vm8696_vm1, %v160_v42  ;;  %5046 = vmatprep.mubr.msk.f32.mxu0 %vm8696_vm1, %v103_v43 }
  0x74   :  { %5133 = vmatprep.mubr.msk.f32.mxu1 %vm8696_vm1, %v161_v44 }
  0x76   :  { %5047 = vmatmul.mubr.msk.f32.gmra.mxu0 %vm8696_vm1, %v104_v45 }
  0x77   :  { %5134 = vmatmul.mubr.msk.f32.gmra.mxu1 %vm8696_vm1, %v162_v46  ;;  %5049 = vmatprep.mubr.msk.f32.mxu0 %vm8696_vm1, %v105_v47 }
  0x78   :  { %5136 = vmatprep.mubr.msk.f32.mxu1 %vm8696_vm1, %v163_v48 }
  0x7a   :  { %5050 = vmatmul.mubr.msk.f32.gmra.mxu0 %vm8696_vm1, %v106_v49 }
  0x7b   :  { %5137 = vmatmul.mubr.msk.f32.gmra.mxu1 %vm8696_vm1, %v164_v50  ;;  %5052 = vmatprep.mubr.msk.f32.mxu0 %vm8696_vm1, %v107_v51  ;;  %v6078_v51 = vld [vmem:[%s8663_s6] ss:$0 sm:$0xff] }
  0x7c   :  { %5139 = vmatprep.mubr.msk.f32.mxu1 %vm8696_vm1, %v165_v52 }
  0x7e   :  { %5053 = vmatmul.mubr.msk.f32.gmra.mxu0 %vm8696_vm1, %v108_v53 }
  0x7f   :  { %5140 = vmatmul.mubr.msk.f32.gmra.mxu1 %vm8696_vm1, %v166_v54  ;;  %5055 = vmatprep.mubr.msk.f32.mxu0 %vm8696_vm1, %v109_v55 }
  0x80   :  { %5142 = vmatprep.mubr.msk.f32.mxu1 %vm8696_vm1, %v167_v56 }
  0x82   :  { %5056 = vmatmul.mubr.msk.f32.gmra.mxu0 %vm8696_vm1, %v110_v57 }
  0x83   :  { %5143 = vmatmul.mubr.msk.f32.gmra.mxu1 %vm8696_vm1, %v168_v58  ;;  %5177 = vmatprep.mubr.msk.f32.mxu0 %vm8691_vm0, %v8678_v0  ;;  %vm2596_vm0 = vcmask 1048512  }
  0x84   :  { %5145 = vmatprep.mubr.msk.f32.mxu1 %vm8696_vm1, %v169_v59 }
  0x87   :  { %5146 = vmatmul.mubr.msk.f32.gmra.mxu1 %vm8696_vm1, %v170_v60 }
  0x88   :  { %5148 = vmatprep.mubr.msk.f32.mxu1 %vm8696_vm1, %v171_v61 }
  0x8b   :  { %5149 = vmatmul.mubr.msk.f32.gmra.mxu1 %vm8696_vm1, %v172_v62 }
  0x8c   :  { %5151 = vmatprep.mubr.msk.f32.mxu1 %vm8696_vm1, %v173_v63 }
  0x8f   :  { %5152 = vmatmul.mubr.msk.f32.gmra.mxu1 %vm8696_vm1, %v174_v1 }
  0x90   :  { %5154 = vmatprep.mubr.msk.f32.mxu1 %vm8696_vm1, %v175_v2 }
  0x93   :  { %5155 = vmatmul.mubr.msk.f32.gmra.mxu1 %vm8696_vm1, %v176_v3 }
  0x94   :  { %5157 = vmatprep.mubr.msk.f32.mxu1 %vm8696_vm1, %v177_v4 }
  0x97   :  { %5158 = vmatmul.mubr.msk.f32.gmra.mxu1 %vm8696_vm1, %v178_v5 }
  0x98   :  { %5160 = vmatprep.mubr.msk.f32.mxu1 %vm8696_vm1, %v179_v6 }
  0x9b   :  { %5161 = vmatmul.mubr.msk.f32.gmra.mxu1 %vm8696_vm1, %v180_v7 }
  0x9c   :  { %5163 = vmatprep.mubr.msk.f32.mxu1 %vm8696_vm1, %v181_v8 }
  0x9f   :  { %5164 = vmatmul.mubr.msk.f32.gmra.mxu1 %vm8696_vm1, %v182_v9 }
  0xa0   :  { %5166 = vmatprep.mubr.msk.f32.mxu1 %vm8696_vm1, %v183_v10 }
  0xa3   :  { %5167 = vmatmul.mubr.msk.f32.gmra.mxu1 %vm8696_vm1, %v184_v11 }
  0xd1   :  { %v261_v18 = vpop.f32.mrf.mxu0 }
  0xd2   :  { %v1359_v19 = vcombine.high %v261_v18, %v261_v18  ;;  %v1366_v20 = vrot.slane %v261_v18, %v1365_v17 }
  0xd3   :  { %v5060_v22 = vpop.f32.mrf.mxu1  ;;  %v4968_v23 = vpop.f32.mrf.mxu0 }
  0xd4   :  { %v1373_v24 = vrot.slane %v1359_v19, %v1365_v17  ;;  %v1374_v25 = vcombine.high %v1366_v20, %v1366_v20  ;;  %v6041_v26 = vrot.slane %v1366_v20, %v1365_v17 }
  0xd5   :  { %v989_v27 = vpop.f32.mrf.mxu1 }
  0xd6   :  { %v1375_v28 = vcombine.high %v1373_v24, %v1373_v24  ;;  %v6043_v29 = vrot.slane %v1374_v25, %v1365_v17  ;;  %v6047_v30 = vrot.slane %v6041_v26, %v6039_v21  ;;  %v6085_v59 = vrot.slane %v1373_v24, %v1365_v17 }
  0xd7   :  { %v5063_v31 = vpop.f32.mrf.mxu1 }
  0xd8   :  { %v6049_v32 = vrot.slane %v1375_v28, %v1365_v17  ;;  %v1406_v33 = vcombine.high %v6043_v29, %v6043_v29  ;;  %v6103_v11 = vrot.slane %v6085_v59, %v6039_v21 }
  0xd9   :  { %v999_v34 = vpop.f32.mrf.mxu1 }
  0xda   :  { %v6054_v35 = vrot.slane %v1406_v33, %v6039_v21  ;;  %v4979_v37 = vpop.f32.mrf.mxu0 }
  0xdb   :  { %v1449_v38 = vadd.f32 %v4979_v37, %v6047_v30  ;;  %v5066_v39 = vpop.f32.mrf.mxu1 }
  0xdc   :  { %v719_v40 = vpop.f32.mrf.mxu0  ;;  %v1502_v41 = vadd.f32 %v6054_v35, %v989_v27  ;;  %v1503_v49 = vadd.f32 %v5060_v22, %v6054_v35  ;;  %v1504_v61 = vadd.f32 %v6054_v35, %v999_v34  ;;  %v1505_v12 = vadd.f32 %v5063_v31, %v6054_v35 }
  0xdd   :  { %v1584_v42 = vadd.f32 %v6059_v36, %v1449_v38  ;;  %v1448_v43 = vadd.f32 %v6047_v30, %v719_v40  ;;  %v6065_v44 = vpop.f32.mrf.mxu1  ;;  %v1507_v31 = vadd.f32 %v5066_v39, %v6054_v35 }
  0xde   :  { %v6067_v45 = vpop.f32.mrf.mxu0  ;;  %v1637_v52 = vadd.f32 %v6059_v36, %v1502_v41  ;;  %v1638_v60 = vadd.f32 %v6059_v36, %v1503_v49  ;;  %v1639_v17 = vadd.f32 %v6059_v36, %v1504_v61  ;;  %v1640_v37 = vadd.f32 %v6059_v36, %v1505_v12 }
  0xdf   :  { %v1712_v46 = vmax.f32 %v1584_v42, 0.0  ;;  %v1583_v47 = vadd.f32 %v6059_v36, %v1448_v43  ;;  %v6070_v48 = vpop.f32.mrf.mxu1 }
  0xe0   :  { %v6073_v50 = vpop.f32.mrf.mxu0  ;;  %v1765_v1 = vmax.f32 %v1637_v52, 0.0  ;;  %v1766_v15 = vmax.f32 %v1638_v60, 0.0  ;;  %v1767_v38 = vmax.f32 %v1639_v17, 0.0 }
  0xe1   :  { %v1711_v53 = vmax.f32 %v1583_v47, 0.0  ;;  %v6081_v54 = vpop.f32.mrf.mxu1  ;;  %v1847_v58 = vmul.f32 %v6078_v51, %v1712_v46 }
  0xe2   :  { %v4985_v55 = vpop.f32.mrf.mxu0  ;;  %v1900_v20 = vmul.f32 %v6078_v51, %v1765_v1  ;;  %v1901_v42 = vmul.f32 %v6078_v51, %v1766_v15  ;;  %v1902_v61 = vmul.f32 %v6078_v51, %v1767_v38 }
  0xe3   :  { %v1453_v56 = vadd.f32 %v4985_v55, %v6047_v30  ;;  %v5072_v57 = vpop.f32.mrf.mxu1  ;;  %v1977_v3 = vsel %vm8696_vm1, %v1847_v58, 0.0  ;;  %v1846_v5 = vmul.f32 %v6078_v51, %v1711_v53  ;;  %v1506_v53 = vadd.f32 %v6054_v35, %v6065_v44 }
  0xe4   :  { %v1511_v62 = vadd.f32 %v5072_v57, %v6054_v35  ;;  %v739_v63 = vpop.f32.mrf.mxu0  ;;  %1978 = vadd.xlane.f32.xlu0 %v1977_v3  ;;  %v2136_v40 = vsel %vm8696_vm1, %v1900_v20, 0.0  ;;  %v1642_v57 = vadd.f32 %v6059_v36, %v1507_v31  ;;  %v2139_v58 = vsel %vm8696_vm1, %v1901_v42, 0.0 }
  0xe5   :  { %v1588_v2 = vadd.f32 %v6059_v36, %v1453_v56  ;;  %v6092_v4 = vpop.f32.mrf.mxu1  ;;  %v1452_v7 = vadd.f32 %v6047_v30, %v739_v63  ;;  %v1974_v18 = vsel %vm8696_vm1, %v1846_v5, 0.0  ;;  %v1768_v56 = vmax.f32 %v1640_v37, 0.0 }
  0xe6   :  { %v1646_v6 = vadd.f32 %v6059_v36, %v1511_v62  ;;  %v6097_v8 = vpop.f32.mrf.mxu0  ;;  %v1641_v5 = vadd.f32 %v6059_v36, %v1506_v53  ;;  %v2142_v12 = vsel %vm8696_vm1, %v1902_v61, 0.0  ;;  %v1509_v31 = vadd.f32 %v6070_v48, %v6054_v35 }
  0xe7   :  { %v1716_v9 = vmax.f32 %v1588_v2, 0.0  ;;  %v6099_v10 = vpop.f32.mrf.mxu1  ;;  %v1587_v23 = vadd.f32 %v6059_v36, %v1452_v7  ;;  %v1770_v7 = vmax.f32 %v1642_v57, 0.0  ;;  %v1903_v17 = vmul.f32 %v6078_v51, %v1768_v56 }
  0xe8   :  { %v6106_v13 = vpop.f32.mrf.mxu0  ;;  %v1774_v22 = vmax.f32 %v1646_v6, 0.0  ;;  %1975 = vadd.xlane.f32.xlu0 %v1974_v18  ;;  %v1450_v48 = vadd.f32 %v6047_v30, %v6073_v50  ;;  %v1644_v53 = vadd.f32 %v6059_v36, %v1509_v31 }
  0xe9   :  { %v1039_v19 = vpop.f32.mrf.mxu1  ;;  %v1851_v27 = vmul.f32 %v6078_v51, %v1716_v9  ;;  %v1715_v43 = vmax.f32 %v1587_v23, 0.0  ;;  %v1451_v9 = vadd.f32 %v6067_v45, %v6047_v30  ;;  %v1905_v37 = vmul.f32 %v6078_v51, %v1770_v7 }
  0xea   :  { %v1512_v24 = vadd.f32 %v6103_v11, %v1039_v19  ;;  %v4991_v25 = vpop.f32.mrf.mxu0  ;;  %v1909_v39 = vmul.f32 %v6078_v51, %v1774_v22 }
  0xeb   :  { %v6114_v28 = vpop.f32.mrf.mxu1  ;;  %v1989_v33 = vsel %vm8696_vm1, %v1851_v27, 0.0  ;;  %v1457_v47 = vadd.f32 %v4991_v25, %v6047_v30  ;;  %v1850_v44 = vmul.f32 %v6078_v51, %v1715_v43  ;;  %v1769_v25 = vmax.f32 %v1641_v5, 0.0 }
  0xec   :  { %v759_v34 = vpop.f32.mrf.mxu0  ;;  %1990 = vadd.xlane.f32.xlu1 %v1989_v33  ;;  %v1647_v46 = vadd.f32 %v6059_v36, %v1512_v24  ;;  %2137 = vadd.xlane.f32.xlu0 %v2136_v40  ;;  %v2163_v55 = vsel %vm8696_vm1, %v1909_v39, 0.0  ;;  %v1586_v27 = vadd.f32 %v6059_v36, %v1451_v9  ;;  %v2145_v33 = vsel %vm8696_vm1, %v1903_v17, 0.0 }
  0xed   :  { %v1049_v41 = vpop.f32.mrf.mxu1  ;;  %v1592_v63 = vadd.f32 %v6059_v36, %v1457_v47  ;;  %v1456_v1 = vadd.f32 %v6047_v30, %v759_v34  ;;  %v1986_v6 = vsel %vm8696_vm1, %v1850_v44, 0.0  ;;  %v1772_v5 = vmax.f32 %v1644_v53, 0.0 }
  0xee   :  { %v4994_v49 = vpop.f32.mrf.mxu0  ;;  %v1775_v62 = vmax.f32 %v1647_v46, 0.0  ;;  %v1514_v20 = vadd.f32 %v6103_v11, %v1049_v41  ;;  %v1714_v39 = vmax.f32 %v1586_v27, 0.0  ;;  %v1510_v27 = vadd.f32 %v6054_v35, %v6092_v4 }
  0xef   :  { %v5081_v52 = vpop.f32.mrf.mxu1  ;;  %v1720_v18 = vmax.f32 %v1592_v63, 0.0  ;;  %v1591_v19 = vadd.f32 %v6059_v36, %v1456_v1  ;;  %v1459_v41 = vadd.f32 %v4994_v49, %v6047_v30  ;;  %v1904_v49 = vmul.f32 %v6078_v51, %v1769_v25 }
  0xf0   :  { %2164 = vadd.xlane.f32.xlu1 %v2163_v55  ;;  %2140 = vadd.xlane.f32.xlu0 %v2139_v58  ;;  %v769_v2 = vpop.f32.mrf.mxu0  ;;  %v1910_v22 = vmul.f32 %v6078_v51, %v1775_v62  ;;  %v1649_v40 = vadd.f32 %v6059_v36, %v1514_v20  ;;  %v2151_v55 = vsel %vm8696_vm1, %v1905_v37, 0.0  ;;  %v1517_v61 = vadd.f32 %v5081_v52, %v6103_v11 }
  0xf1   :  { %v6129_v60 = vpop.f32.mrf.mxu1  ;;  %v1719_v38 = vmax.f32 %v1591_v19, 0.0  ;;  %v1855_v42 = vmul.f32 %v6078_v51, %v1720_v18  ;;  %v1594_v58 = vadd.f32 %v6059_v36, %v1459_v41  ;;  %v1508_v1 = vadd.f32 %v6054_v35, %v6081_v54 }
  0xf2   :  { %v4997_v23 = vpop.f32.mrf.mxu0  ;;  %v2166_v45 = vsel %vm8696_vm1, %v1910_v22, 0.0  ;;  %v1777_v57 = vmax.f32 %v1649_v40, 0.0  ;;  %v2148_v7 = vsel %vm8696_vm1, %v1904_v49, 0.0  ;;  %v1849_v52 = vmul.f32 %v6078_v51, %v1714_v39 }
  0xf3   :  { %v6135_v3 = vpop.f32.mrf.mxu1  ;;  %v2001_v47 = vsel %vm8696_vm1, %v1855_v42, 0.0  ;;  %v1854_v50 = vmul.f32 %v6078_v51, %v1719_v38  ;;  %v1652_v17 = vadd.f32 %v6059_v36, %v1517_v61  ;;  %v1458_v18 = vadd.f32 %v6047_v30, %v769_v2 }
  0xf4   :  { %1987 = vadd.xlane.f32.xlu1 %v1986_v6  ;;  %2143 = vadd.xlane.f32.xlu0 %v2142_v12  ;;  %v6161_v43 = vpop.f32.mrf.mxu0  ;;  %v1585_v6 = vadd.f32 %v6059_v36, %v1450_v48  ;;  %v1722_v12 = vmax.f32 %v1594_v58, 0.0  ;;  %v1912_v54 = vmul.f32 %v6078_v51, %v1777_v57  ;;  %v1643_v22 = vadd.f32 %v6059_v36, %v1508_v1 }
  0xf5   :  { %v6142_v15 = vpop.f32.mrf.mxu1  ;;  %v1998_v44 = vsel %vm8696_vm1, %v1854_v50, 0.0  ;;  %v1983_v31 = vsel %vm8696_vm1, %v1849_v52, 0.0  ;;  %v1907_v2 = vmul.f32 %v6078_v51, %v1772_v5  ;;  %v1780_v37 = vmax.f32 %v1652_v17, 0.0 }
  0xf6   :  { %v6176_v62 = vpop.f32.mrf.mxu0  ;;  %v2172_v25 = vsel %vm8696_vm1, %v1912_v54, 0.0  ;;  %v1593_v38 = vadd.f32 %v6059_v36, %v1458_v18  ;;  %v1461_v40 = vadd.f32 %v4997_v23, %v6047_v30  ;;  %v1857_v41 = vmul.f32 %v6078_v51, %v1722_v12 }
  0xf7   :  { %v6148_v24 = vpop.f32.mrf.mxu1  ;;  %v1771_v48 = vmax.f32 %v1643_v22, 0.0  ;;  %v1455_v39 = vadd.f32 %v6097_v8, %v6047_v30  ;;  %v1519_v58 = vadd.f32 %v6135_v3, %v6103_v11  ;;  %v1915_v61 = vmul.f32 %v6078_v51, %v1780_v37 }
  0xf8   :  { %2167 = vadd.xlane.f32.xlu1 %v2166_v45  ;;  %2146 = vadd.xlane.f32.xlu0 %v2145_v33  ;;  %v6191_v19 = vpop.f32.mrf.mxu0  ;;  %v1713_v45 = vmax.f32 %v1585_v6, 0.0  ;;  %v2007_v4 = vsel %vm8696_vm1, %v1857_v41, 0.0  ;;  %v1721_v49 = vmax.f32 %v1593_v38, 0.0  ;;  %v1596_v57 = vadd.f32 %v6059_v36, %v1461_v40 }
  0xf9   :  { %v6155_v34 = vpop.f32.mrf.mxu1  ;;  %v1513_v8 = vadd.f32 %v6099_v10, %v6103_v11  ;;  %v2181_v1 = vsel %vm8696_vm1, %v1915_v61, 0.0  ;;  %v1590_v5 = vadd.f32 %v6059_v36, %v1455_v39  ;;  %v1906_v3 = vmul.f32 %v6078_v51, %v1771_v48 }
  0xfa   :  { %v6206_v42 = vpop.f32.mrf.mxu0  ;;  %v1848_v23 = vmul.f32 %v6078_v51, %v1713_v45  ;;  %v1724_v52 = vmax.f32 %v1596_v57, 0.0  ;;  %v1654_v12 = vadd.f32 %v6059_v36, %v1519_v58  ;;  %v1460_v17 = vadd.f32 %v6047_v30, %v6161_v43 }
  0xfb   :  { %v6163_v46 = vpop.f32.mrf.mxu1  ;;  %v1856_v10 = vmul.f32 %v6078_v51, %v1721_v49  ;;  %v1454_v54 = vadd.f32 %v6047_v30, %v6106_v13  ;;  %v1648_v45 = vadd.f32 %v6059_v36, %v1513_v8  ;;  %v1518_v38 = vadd.f32 %v6103_v11, %v6142_v15 }
  0xfc   :  { %2002 = vadd.xlane.f32.xlu1 %v2001_v47  ;;  %2152 = vadd.xlane.f32.xlu0 %v2151_v55  ;;  %v1645_v47 = vadd.f32 %v6059_v36, %v1510_v27  ;;  %v2157_v55 = vsel %vm8696_vm1, %v1907_v2, 0.0  ;;  %v6220_v50 = vpop.f32.mrf.mxu0  ;;  %v1782_v2 = vmax.f32 %v1654_v12, 0.0  ;;  %v1595_v37 = vadd.f32 %v6059_v36, %v1460_v17 }
  0xfd   :  { %v6170_v56 = vpop.f32.mrf.mxu1  ;;  %v2004_v22 = vsel %vm8696_vm1, %v1856_v10, 0.0  ;;  %v1859_v13 = vmul.f32 %v6078_v51, %v1724_v52  ;;  %v1589_v41 = vadd.f32 %v6059_v36, %v1454_v54  ;;  %v1653_v49 = vadd.f32 %v6059_v36, %v1518_v38 }
  0xfe   :  { %v6234_v18 = vpop.f32.mrf.mxu0  ;;  %v1463_v57 = vadd.f32 %v6176_v62, %v6047_v30  ;;  %v1917_v58 = vmul.f32 %v6078_v51, %v1782_v2  ;;  %v1521_v12 = vadd.f32 %v6148_v24, %v6103_v11  ;;  %v6276_v10 = vrot.slane %v6043_v29, %v6039_v21 }
  0xff   :  { %v6178_v63 = vpop.f32.mrf.mxu1  ;;  %v2013_v48 = vsel %vm8696_vm1, %v1859_v13, 0.0  ;;  %v1781_v62 = vmax.f32 %v1653_v49, 0.0 }
 0x100   :  { %1999 = vadd.xlane.f32.xlu1 %v1998_v44  ;;  %2149 = vadd.xlane.f32.xlu0 %v2148_v7  ;;  %v1773_v44 = vmax.f32 %v1645_v47, 0.0  ;;  %v1980_v7 = vsel %vm8696_vm1, %v1848_v23, 0.0  ;;  %v6248_v40 = vpop.f32.mrf.mxu0  ;;  %v1515_v47 = vadd.f32 %v6114_v28, %v6103_v11  ;;  %v1723_v23 = vmax.f32 %v1595_v37, 0.0 }
 0x101   :  { %v6185_v9 = vpop.f32.mrf.mxu1  ;;  %v1516_v28 = vadd.f32 %v6103_v11, %v6129_v60  ;;  %v2187_v8 = vsel %vm8696_vm1, %v1917_v58, 0.0  ;;  %v1598_v52 = vadd.f32 %v6059_v36, %v1463_v57  ;;  %v1656_v37 = vadd.f32 %v6059_v36, %v1521_v12 }
 0x102   :  { %v1908_v43 = vmul.f32 %v6078_v51, %v1773_v44  ;;  %v5009_v61 = vpop.f32.mrf.mxu0  ;;  %v1650_v44 = vadd.f32 %v6059_v36, %v1515_v47  ;;  %v1858_v60 = vmul.f32 %v6078_v51, %v1723_v23  ;;  %v1916_v38 = vmul.f32 %v6078_v51, %v1781_v62 }
 0x103   :  { %v6193_v20 = vpop.f32.mrf.mxu1  ;;  %v1651_v54 = vadd.f32 %v6059_v36, %v1516_v28  ;;  %v1726_v2 = vmax.f32 %v1598_v52, 0.0  ;;  %v1469_v29 = vadd.f32 %v5009_v61, %v6276_v10  ;;  %v1523_v12 = vadd.f32 %v6163_v46, %v6103_v11 }
 0x104   :  { %2173 = vadd.xlane.f32.xlu1 %v2172_v25  ;;  %1984 = vadd.xlane.f32.xlu0 %v1983_v31  ;;  %v1718_v25 = vmax.f32 %v1590_v5, 0.0  ;;  %v2154_v31 = vsel %vm8696_vm1, %v1906_v3, 0.0  ;;  %v819_v17 = vpop.f32.mrf.mxu0  ;;  %v1527_v49 = vadd.f32 %v6193_v20, %v6103_v11 }
 0x105   :  { %v6200_v33 = vpop.f32.mrf.mxu1  ;;  %v1604_v23 = vadd.f32 %v6059_v36, %v1469_v29  ;;  %v1861_v57 = vmul.f32 %v6078_v51, %v1726_v2  ;;  %v1468_v62 = vadd.f32 %v6276_v10, %v819_v17  ;;  %v6330_v29 = vrot.slane %v6049_v32, %v6039_v21 }
 0x106   :  { %v1853_v15 = vmul.f32 %v6078_v51, %v1718_v25  ;;  %v1778_v25 = vmax.f32 %v1650_v44, 0.0  ;;  %v6289_v13 = vpop.f32.mrf.mxu0  ;;  %v1526_v2 = vadd.f32 %v6103_v11, %v6200_v33 }
 0x107   :  { %v6212_v53 = vpop.f32.mrf.mxu1  ;;  %v2019_v61 = vsel %vm8696_vm1, %v1861_v57, 0.0  ;;  %v1522_v57 = vadd.f32 %v6103_v11, %v6170_v56 }
 0x108   :  { %2008 = vadd.xlane.f32.xlu1 %v2007_v4  ;;  %2158 = vadd.xlane.f32.xlu0 %v2157_v55  ;;  %v1776_v4 = vmax.f32 %v1648_v45, 0.0  ;;  %v2160_v55 = vsel %vm8696_vm1, %v1908_v43, 0.0  ;;  %v1462_v45 = vadd.f32 %v6047_v30, %v6191_v19  ;;  %v2184_v30 = vsel %vm8696_vm1, %v1916_v38, 0.0  ;;  %v6303_v58 = vpop.f32.mrf.mxu0 }
 0x109   :  { %v6226_v6 = vpop.f32.mrf.mxu1  ;;  %v1464_v38 = vadd.f32 %v6276_v10, %v6220_v50 }
 0x10a   :  { %v1911_v3 = vmul.f32 %v6078_v51, %v1776_v4  ;;  %v1597_v19 = vadd.f32 %v6059_v36, %v1462_v45  ;;  %v5015_v52 = vpop.f32.mrf.mxu0 }
 0x10b   :  { %v6240_v27 = vpop.f32.mrf.mxu1 }
 0x10c   :  { %2182 = vadd.xlane.f32.xlu1 %v2181_v1  ;;  %1981 = vadd.xlane.f32.xlu0 %v1980_v7  ;;  %v1717_v1 = vmax.f32 %v1589_v41, 0.0  ;;  %v1995_v7 = vsel %vm8696_vm1, %v1853_v15, 0.0  ;;  %v2169_v24 = vsel %vm8696_vm1, %v1911_v3, 0.0  ;;  %v1779_v41 = vmax.f32 %v1651_v54, 0.0 }
 0x10d   :  { %v6254_v39 = vpop.f32.mrf.mxu1  ;;  %v1784_v15 = vmax.f32 %v1656_v37, 0.0  ;;  %v1725_v28 = vmax.f32 %v1597_v19, 0.0  ;;  %v1662_v3 = vadd.f32 %v6059_v36, %v1527_v49  ;;  %v839_v37 = vpop.f32.mrf.mxu0  ;;  %v1658_v19 = vadd.f32 %v6059_v36, %v1523_v12 }
 0x10e   :  { %v1852_v43 = vmul.f32 %v6078_v51, %v1717_v1  ;;  %v1914_v20 = vmul.f32 %v6078_v51, %v1779_v41 }
 0x10f   :  { %v6266_v5 = vpop.f32.mrf.mxu1  ;;  %v1790_v17 = vmax.f32 %v1662_v3, 0.0  ;;  %v5018_v49 = vpop.f32.mrf.mxu0  ;;  %v1473_v3 = vadd.f32 %v5015_v52, %v6276_v10 }
 0x110   :  { %2005 = vadd.xlane.f32.xlu1 %v2004_v22  ;;  %2155 = vadd.xlane.f32.xlu0 %v2154_v31  ;;  %v2010_v22 = vsel %vm8696_vm1, %v1858_v60, 0.0  ;;  %v1992_v47 = vsel %vm8696_vm1, %v1852_v43, 0.0  ;;  %v2178_v45 = vsel %vm8696_vm1, %v1914_v20, 0.0  ;;  %v1603_v43 = vadd.f32 %v6059_v36, %v1468_v62 }
 0x111   :  { %v6282_v31 = vpop.f32.mrf.mxu1  ;;  %v1925_v50 = vmul.f32 %v6078_v51, %v1790_v17  ;;  %v849_v62 = vpop.f32.mrf.mxu0  ;;  %v1608_v17 = vadd.f32 %v6059_v36, %v1473_v3 }
 0x113   :  { %v6295_v4 = vpop.f32.mrf.mxu1 }
 0x114   :  { %2014 = vadd.xlane.f32.xlu1 %v2013_v48  ;;  %2161 = vadd.xlane.f32.xlu0 %v2160_v55  ;;  %v1520_v48 = vadd.f32 %v6103_v11, %v6155_v34  ;;  %v1913_v55 = vmul.f32 %v6078_v51, %v1778_v25  ;;  %v1465_v34 = vadd.f32 %v6206_v42, %v6276_v10 }
 0x115   :  { %v6309_v1 = vpop.f32.mrf.mxu1  ;;  %v1919_v42 = vmul.f32 %v6078_v51, %v1784_v15  ;;  %v1661_v15 = vadd.f32 %v6059_v36, %v1526_v2  ;;  %v5021_v2 = vpop.f32.mrf.mxu0 }
 0x116   :  { %v2175_v44 = vsel %vm8696_vm1, %v1913_v55, 0.0  ;;  %v1731_v55 = vmax.f32 %v1603_v43, 0.0  ;;  %v1472_v43 = vadd.f32 %v6276_v10, %v839_v37  ;;  %v1736_v37 = vmax.f32 %v1608_v17, 0.0 }
 0x117   :  { %v2193_v60 = vsel %vm8696_vm1, %v1919_v42, 0.0  ;;  %v6320_v25 = vpop.f32.mrf.mxu1  ;;  %v1467_v42 = vadd.f32 %v6234_v18, %v6276_v10 }
 0x118   :  { %2188 = vadd.xlane.f32.xlu1 %v2187_v8  ;;  %1996 = vadd.xlane.f32.xlu0 %v1995_v7  ;;  %v1655_v8 = vadd.f32 %v6059_v36, %v1520_v48  ;;  %v1732_v7 = vmax.f32 %v1604_v23, 0.0  ;;  %v1528_v23 = vadd.f32 %v6330_v29, %v6226_v6  ;;  %v1789_v6 = vmax.f32 %v1661_v15, 0.0 }
 0x119   :  { %v6336_v48 = vpop.f32.mrf.mxu1  ;;  %v1866_v56 = vmul.f32 %v6078_v51, %v1731_v55  ;;  %v1607_v55 = vadd.f32 %v6059_v36, %v1472_v43  ;;  %v1475_v15 = vadd.f32 %v5018_v49, %v6276_v10  ;;  %v1871_v3 = vmul.f32 %v6078_v51, %v1736_v37 }
 0x11a   :  { %v1783_v54 = vmax.f32 %v1655_v8, 0.0  ;;  %v1867_v46 = vmul.f32 %v6078_v51, %v1732_v7  ;;  %v1663_v7 = vadd.f32 %v6059_v36, %v1528_v23  ;;  %v1924_v18 = vmul.f32 %v6078_v51, %v1789_v6  ;;  %v6377_v23 = vpop.f32.mrf.mxu0 }
 0x11b   :  { %v6348_v8 = vpop.f32.mrf.mxu1  ;;  %v1735_v6 = vmax.f32 %v1607_v55, 0.0 }
 0x11c   :  { %2011 = vadd.xlane.f32.xlu1 %v2010_v22  ;;  %2170 = vadd.xlane.f32.xlu0 %v2169_v24  ;;  %v1600_v22 = vadd.f32 %v6059_v36, %v1465_v34  ;;  %v1860_v24 = vmul.f32 %v6078_v51, %v1725_v28  ;;  %v2037_v33 = vsel %vm8696_vm1, %v1867_v46, 0.0  ;;  %v1599_v28 = vadd.f32 %v6059_v36, %v1464_v38 }
 0x11d   :  { %v1791_v52 = vmax.f32 %v1663_v7, 0.0  ;;  %v1525_v46 = vadd.f32 %v6178_v63, %v6103_v11  ;;  %v1610_v7 = vadd.f32 %v6059_v36, %v1475_v15 }
 0x11e   :  { %v2016_v41 = vsel %vm8696_vm1, %v1860_v24, 0.0 }
 0x11f   :  { %v1926_v63 = vmul.f32 %v6078_v51, %v1791_v52  ;;  %v1738_v17 = vmax.f32 %v1610_v7, 0.0 }
 0x120   :  { %2185 = vadd.xlane.f32.xlu1 %v2184_v30  ;;  %1993 = vadd.xlane.f32.xlu0 %v1992_v47  ;;  %v1728_v30 = vmax.f32 %v1600_v22, 0.0  ;;  %v1918_v47 = vmul.f32 %v6078_v51, %v1783_v54  ;;  %v1657_v54 = vadd.f32 %v6059_v36, %v1522_v57  ;;  %v6359_v22 = vpop.f32.mrf.mxu1  ;;  %v1466_v57 = vadd.f32 %v6276_v10, %v6248_v40 }
 0x121   :  { %v2214_v49 = vsel %vm8696_vm1, %v1926_v63, 0.0  ;;  %v1524_v40 = vadd.f32 %v6103_v11, %v6185_v9  ;;  %v1870_v11 = vmul.f32 %v6078_v51, %v1735_v6  ;;  %v1873_v55 = vmul.f32 %v6078_v51, %v1738_v17 }
 0x122   :  { %v2190_v34 = vsel %vm8696_vm1, %v1918_v47, 0.0  ;;  %v1863_v20 = vmul.f32 %v6078_v51, %v1728_v30  ;;  %v1602_v30 = vadd.f32 %v6059_v36, %v1467_v42 }
 0x123   :  { %v1659_v9 = vadd.f32 %v6059_v36, %v1524_v40  ;;  %v1535_v40 = vadd.f32 %v6295_v4, %v6330_v29  ;;  %v1531_v4 = vadd.f32 %v6240_v27, %v6330_v29  ;;  %v1404_v27 = vcombine.high %v6041_v26, %v6041_v26 }
 0x124   :  { %2020 = vadd.xlane.f32.xlu1 %v2019_v61  ;;  %2176 = vadd.xlane.f32.xlu0 %v2175_v44  ;;  %v1786_v61 = vmax.f32 %v1658_v19, 0.0  ;;  %v2211_v44 = vsel %vm8696_vm1, %v1925_v50, 0.0  ;;  %v2025_v12 = vsel %vm8696_vm1, %v1863_v20, 0.0  ;;  %v6370_v19 = vpop.f32.mrf.mxu1  ;;  %v1660_v50 = vadd.f32 %v6059_v36, %v1525_v46 }
 0x125   :  { %v1471_v46 = vadd.f32 %v6289_v13, %v6276_v10  ;;  %v1787_v15 = vmax.f32 %v1659_v9, 0.0  ;;  %v1529_v13 = vadd.f32 %v6212_v53, %v6330_v29  ;;  %v1476_v9 = vadd.f32 %v6276_v10, %v6377_v23 }
 0x126   :  { %v1921_v24 = vmul.f32 %v6078_v51, %v1786_v61  ;;  %v1730_v61 = vmax.f32 %v1602_v30, 0.0  ;;  %v1788_v42 = vmax.f32 %v1660_v50, 0.0  ;;  %v1477_v50 = vadd.f32 %v5021_v2, %v6276_v10 }
 0x127   :  { %v1606_v63 = vadd.f32 %v6059_v36, %v1471_v46  ;;  %v1664_v53 = vadd.f32 %v6059_v36, %v1529_v13  ;;  %v1470_v2 = vadd.f32 %v6276_v10, %v6303_v58  ;;  %v1666_v23 = vadd.f32 %v6059_v36, %v1531_v4 }
 0x128   :  { %2194 = vadd.xlane.f32.xlu1 %v2193_v60  ;;  %2179 = vadd.xlane.f32.xlu0 %v2178_v45  ;;  %v1727_v60 = vmax.f32 %v1599_v28, 0.0  ;;  %v2034_v45 = vsel %vm8696_vm1, %v1866_v56, 0.0  ;;  %v2199_v38 = vsel %vm8696_vm1, %v1921_v24, 0.0  ;;  %v1533_v28 = vadd.f32 %v6266_v5, %v6330_v29  ;;  %v6393_v56 = vpop.f32.mrf.mxu0 }
 0x129   :  { %v1601_v5 = vadd.f32 %v6059_v36, %v1466_v57  ;;  %v2049_v24 = vsel %vm8696_vm1, %v1871_v3, 0.0  ;;  %v1865_v52 = vmul.f32 %v6078_v51, %v1730_v61  ;;  %v1923_v37 = vmul.f32 %v6078_v51, %v1788_v42 }
 0x12a   :  { %v1862_v47 = vmul.f32 %v6078_v51, %v1727_v60  ;;  %v1668_v60 = vadd.f32 %v6059_v36, %v1533_v28  ;;  %v6405_v43 = vpop.f32.mrf.mxu0  ;;  %v1734_v3 = vmax.f32 %v1606_v63, 0.0  ;;  %v1534_v13 = vadd.f32 %v6330_v29, %v6309_v1 }
 0x12b   :  { %v2205_v57 = vsel %vm8696_vm1, %v1923_v37, 0.0  ;;  %v1530_v37 = vadd.f32 %v6330_v29, %v6254_v39 }
 0x12c   :  { %2017 = vadd.xlane.f32.xlu1 %v2016_v41  ;;  %2038 = vadd.xlane.f32.xlu0 %v2037_v33  ;;  %v1785_v41 = vmax.f32 %v1657_v54, 0.0  ;;  %v2208_v33 = vsel %vm8696_vm1, %v1924_v18, 0.0  ;;  %v1474_v54 = vadd.f32 %v6276_v10, %v849_v62  ;;  %v1729_v18 = vmax.f32 %v1601_v5, 0.0 }
 0x12d   :  { %v1532_v62 = vadd.f32 %v6330_v29, %v6282_v31  ;;  %v5027_v31 = vpop.f32.mrf.mxu0  ;;  %v1922_v5 = vmul.f32 %v6078_v51, %v1787_v15  ;;  %v1869_v46 = vmul.f32 %v6078_v51, %v1734_v3  ;;  %v1665_v1 = vadd.f32 %v6059_v36, %v1530_v37 }
 0x12e   :  { %v1920_v20 = vmul.f32 %v6078_v51, %v1785_v41  ;;  %v1796_v41 = vmax.f32 %v1668_v60, 0.0  ;;  %v1609_v30 = vadd.f32 %v6059_v36, %v1474_v54  ;;  %v1612_v60 = vadd.f32 %v6059_v36, %v1477_v50 }
 0x12f   :  { %v1667_v28 = vadd.f32 %v6059_v36, %v1532_v62  ;;  %v6432_v7 = vpop.f32.mrf.mxu0  ;;  %v2043_v63 = vsel %vm8696_vm1, %v1869_v46, 0.0 }
 0x130   :  { %2191 = vadd.xlane.f32.xlu1 %v2190_v34  ;;  %2212 = vadd.xlane.f32.xlu0 %v2211_v44  ;;  %v2022_v34 = vsel %vm8696_vm1, %v1862_v47, 0.0  ;;  %v6385_v44 = vpop.f32.mrf.mxu1  ;;  %v2046_v47 = vsel %vm8696_vm1, %v1870_v11, 0.0  ;;  %v1737_v61 = vmax.f32 %v1609_v30, 0.0  ;;  %v1931_v6 = vmul.f32 %v6078_v51, %v1796_v41 }
 0x131   :  { %v5030_v17 = vpop.f32.mrf.mxu0  ;;  %v1792_v11 = vmax.f32 %v1664_v53, 0.0  ;;  %v1740_v62 = vmax.f32 %v1612_v60, 0.0  ;;  %v1479_v53 = vadd.f32 %v6393_v56, %v6276_v10  ;;  %v1537_v56 = vadd.f32 %v6320_v25, %v6330_v29 }
 0x132   :  { %v1872_v58 = vmul.f32 %v6078_v51, %v1737_v61  ;;  %v1478_v25 = vadd.f32 %v6276_v10, %v6405_v43 }
 0x133   :  { %v1927_v50 = vmul.f32 %v6078_v51, %v1792_v11  ;;  %v1875_v39 = vmul.f32 %v6078_v51, %v1740_v62  ;;  %v1614_v46 = vadd.f32 %v6059_v36, %v1479_v53 }
 0x134   :  { %2026 = vadd.xlane.f32.xlu1 %v2025_v12  ;;  %2035 = vadd.xlane.f32.xlu0 %v2034_v45  ;;  %v2196_v12 = vsel %vm8696_vm1, %v1920_v20, 0.0  ;;  %v6399_v45 = vpop.f32.mrf.mxu1  ;;  %v2055_v20 = vsel %vm8696_vm1, %v1873_v55, 0.0  ;;  %v2052_v30 = vsel %vm8696_vm1, %v1872_v58, 0.0  ;;  %v6460_v55 = vpop.f32.mrf.mxu0  ;;  %v1793_v58 = vmax.f32 %v1665_v1, 0.0 }
 0x135   :  { %v2217_v3 = vsel %vm8696_vm1, %v1927_v50, 0.0  ;;  %v2061_v60 = vsel %vm8696_vm1, %v1875_v39, 0.0 }
 0x138   :  { %2200 = vadd.xlane.f32.xlu1 %v2199_v38  ;;  %2209 = vadd.xlane.f32.xlu0 %v2208_v33  ;;  %v2031_v38 = vsel %vm8696_vm1, %v1865_v52, 0.0  ;;  %v6413_v33 = vpop.f32.mrf.mxu1  ;;  %v1605_v52 = vadd.f32 %v6059_v36, %v1470_v2 }
 0x13a   :  { %v1733_v15 = vmax.f32 %v1605_v52, 0.0 }
 0x13c   :  { %2023 = vadd.xlane.f32.xlu1 %v2022_v34  ;;  %2215 = vadd.xlane.f32.xlu0 %v2214_v49  ;;  %v1864_v34 = vmul.f32 %v6078_v51, %v1729_v18  ;;  %v6425_v49 = vpop.f32.mrf.mxu1  ;;  %v2202_v18 = vsel %vm8696_vm1, %v1922_v5, 0.0  ;;  %v1669_v5 = vadd.f32 %v6059_v36, %v1534_v13  ;;  %v1742_v13 = vmax.f32 %v1614_v46, 0.0 }
 0x13e   :  { %v2028_v42 = vsel %vm8696_vm1, %v1864_v34, 0.0  ;;  %v6439_v54 = vpop.f32.mrf.mxu1  ;;  %v1611_v34 = vadd.f32 %v6059_v36, %v1476_v9 }
 0x140   :  { %2197 = vadd.xlane.f32.xlu1 %v2196_v12  ;;  %2050 = vadd.xlane.f32.xlu0 %v2049_v24  ;;  %v1795_v12 = vmax.f32 %v1667_v28, 0.0  ;;  %v2229_v24 = vsel %vm8696_vm1, %v1931_v6, 0.0  ;;  %v6451_v41 = vpop.f32.mrf.mxu1  ;;  %v6472_v28 = vrot.slane %v1404_v27, %v6039_v21  ;;  %v6475_v6 = vpop.f32.mrf.mxu0 }
 0x142   :  { %v6467_v26 = vpop.f32.mrf.mxu1  ;;  %v1481_v2 = vadd.f32 %v5027_v31, %v6472_v28  ;;  %v899_v31 = vpop.f32.mrf.mxu0  ;;  %v1483_v4 = vadd.f32 %v5030_v17, %v6472_v28  ;;  %v1541_v17 = vadd.f32 %v6370_v19, %v6330_v29  ;;  %v1536_v19 = vadd.f32 %v6330_v29, %v6336_v48 }
 0x143   :  { %v1484_v39 = vadd.f32 %v6472_v28, %v899_v31  ;;  %v1877_v48 = vmul.f32 %v6078_v51, %v1742_v13  ;;  %v1480_v46 = vadd.f32 %v6472_v28, %v6432_v7 }
 0x144   :  { %2032 = vadd.xlane.f32.xlu1 %v2031_v38  ;;  %2047 = vadd.xlane.f32.xlu0 %v2046_v47  ;;  %v1670_v38 = vadd.f32 %v6059_v36, %v1535_v40  ;;  %v1930_v47 = vmul.f32 %v6078_v51, %v1795_v12  ;;  %v1868_v40 = vmul.f32 %v6078_v51, %v1733_v15  ;;  %v6483_v12 = vpop.f32.mrf.mxu1 }
 0x145   :  { %v1616_v52 = vadd.f32 %v6059_v36, %v1481_v2  ;;  %v1928_v15 = vmul.f32 %v6078_v51, %v1793_v58  ;;  %v1676_v43 = vadd.f32 %v6059_v36, %v1541_v17  ;;  %v1613_v2 = vadd.f32 %v6059_v36, %v1478_v25 }
 0x146   :  { %v2226_v61 = vsel %vm8696_vm1, %v1930_v47, 0.0  ;;  %v2040_v11 = vsel %vm8696_vm1, %v1868_v40, 0.0  ;;  %v6494_v62 = vpop.f32.mrf.mxu1  ;;  %v5036_v47 = vpop.f32.mrf.mxu0 }
 0x147   :  { %v1744_v27 = vmax.f32 %v1616_v52, 0.0 }
 0x148   :  { %2206 = vadd.xlane.f32.xlu1 %v2205_v57  ;;  %2056 = vadd.xlane.f32.xlu0 %v2055_v20  ;;  %v1798_v57 = vmax.f32 %v1670_v38, 0.0  ;;  %v1794_v20 = vmax.f32 %v1666_v23, 0.0  ;;  %v1618_v23 = vadd.f32 %v6059_v36, %v1483_v4  ;;  %v6506_v50 = vpop.f32.mrf.mxu1  ;;  %v6532_v4 = vand.u32 127, %v1363_v14  ;;  %v6548_v14 = vld [vmem:[%s8662_s5] ss:$0 sm:$0xff] }
 0x149   :  { %v1879_v1 = vmul.f32 %v6078_v51, %v1744_v27 }
 0x14a   :  { %v1929_v9 = vmul.f32 %v6078_v51, %v1794_v20  ;;  %v2220_v20 = vsel %vm8696_vm1, %v1928_v15, 0.0  ;;  %8707 = vst [vmem:[#allocation8_spill] sm:$0xff] %v6532_v4  ;;  %v2493_v27 = vadd.s32 4294967288, %v6532_v4 }
 0x14b   :  { %v2073_v31 = vsel %vm8696_vm1, %v1879_v1, 0.0  ;;  %v6580_v1 = vsub.s32 %v6532_v4, %v6035_v16 }
 0x14c   :  { %2029 = vadd.xlane.f32.xlu1 %v2028_v42  ;;  %2230 = vadd.xlane.f32.xlu0 %v2229_v24  ;;  %v1739_v42 = vmax.f32 %v1611_v34, 0.0  ;;  %v1933_v24 = vmul.f32 %v6078_v51, %v1798_v57  ;;  %v2223_v37 = vsel %vm8696_vm1, %v1929_v9, 0.0  ;;  %v6513_v34 = vpop.f32.mrf.mxu0 }
 0x14e   :  { %v2235_v38 = vsel %vm8696_vm1, %v1933_v24, 0.0  ;;  %v1542_v24 = vadd.f32 %v6330_v29, %v6413_v33  ;;  %v5039_v58 = vpop.f32.mrf.mxu0 }
 0x150   :  { %2203 = vadd.xlane.f32.xlu1 %v2202_v18  ;;  %2053 = vadd.xlane.f32.xlu0 %v2052_v30  ;;  %v1797_v18 = vmax.f32 %v1669_v5, 0.0  ;;  %v1874_v30 = vmul.f32 %v6078_v51, %v1739_v42  ;;  %v1405_v42 = vcombine.high %v6085_v59, %v6085_v59  ;;  %v1671_v5 = vadd.f32 %v6059_v36, %v1536_v19 }
 0x151   :  { %v1539_v59 = vadd.f32 %v6348_v8, %v6330_v29  ;;  %v1677_v8 = vadd.f32 %v6548_v14, %v1542_v24  ;;  %v1489_v24 = vadd.f32 %v5039_v58, %v6472_v28 }
 0x152   :  { %v2058_v57 = vsel %vm8696_vm1, %v1874_v30, 0.0  ;;  %v1932_v10 = vmul.f32 %v6078_v51, %v1797_v18  ;;  %v2067_v18 = vsel %vm8696_vm1, %v1877_v48, 0.0  ;;  %v6552_v30 = vpop.f32.mrf.mxu0 }
 0x153   :  { %v1674_v7 = vadd.f32 %v6548_v14, %v1539_v59 }
 0x154   :  { %2044 = vadd.xlane.f32.xlu1 %v2043_v63  ;;  %2227 = vadd.xlane.f32.xlu0 %v2226_v61  ;;  %v1672_v63 = vadd.f32 %v6059_v36, %v1537_v56  ;;  %v1746_v61 = vmax.f32 %v1618_v23, 0.0  ;;  %v2232_v40 = vsel %vm8696_vm1, %v1932_v10, 0.0  ;;  %v1619_v56 = vadd.f32 %v6059_v36, %v1484_v39 }
 0x155   :  { %v6541_v36 = vrot.slane %v1405_v42, %v6039_v21  ;;  %v6575_v39 = vsub.s32 %v2493_v27, %v6035_v16 }
 0x156   :  { %v1800_v53 = vmax.f32 %v1672_v63, 0.0  ;;  %v1881_v52 = vmul.f32 %v6078_v51, %v1746_v61  ;;  %v1747_v25 = vmax.f32 %v1619_v56, 0.0 }
 0x157   :  { %v1545_v19 = vadd.f32 %v6425_v49, %v6541_v36 }
 0x158   :  { %2218 = vadd.xlane.f32.xlu1 %v2217_v3  ;;  %2062 = vadd.xlane.f32.xlu0 %v2061_v60  ;;  %v6519_v3 = vpop.f32.mrf.mxu1  ;;  %v1804_v60 = vmax.f32 %v1676_v43, 0.0  ;;  %v1935_v33 = vmul.f32 %v6078_v51, %v1800_v53  ;;  %v2079_v17 = vsel %vm8696_vm1, %v1881_v52, 0.0  ;;  %v6572_v43 = vpop.f32.mrf.mxu0  ;;  %v1802_v53 = vmax.f32 %v1674_v7, 0.0 }
 0x15a   :  { %v6536_v9 = vpop.f32.mrf.mxu1  ;;  %v1939_v23 = vmul.f32 %v6078_v51, %v1804_v60  ;;  %v2241_v13 = vsel %vm8696_vm1, %v1935_v33, 0.0  ;;  %v1805_v51 = vmax.f32 %v1677_v8, 0.0  ;;  %v1680_v60 = vadd.f32 %v6548_v14, %v1545_v19  ;;  %v6591_v56 = vpop.f32.mrf.mxu0 }
 0x15c   :  { %2041 = vadd.xlane.f32.xlu1 %v2040_v11  ;;  %2236 = vadd.xlane.f32.xlu0 %v2235_v38  ;;  %v1741_v11 = vmax.f32 %v1613_v2, 0.0  ;;  %v1487_v38 = vadd.f32 %v5036_v47, %v6472_v28  ;;  %v6558_v15 = vpop.f32.mrf.mxu1  ;;  %v6564_v47 = vld [vmem:[%s8663_s6] ss:$0 sm:$0xff]  ;;  %v1615_v2 = vadd.f32 %v6548_v14, %v1480_v46  ;;  %v1482_v46 = vadd.f32 %v6472_v28, %v6460_v55 }
 0x15d   :  { %v1624_v55 = vadd.f32 %v6548_v14, %v1489_v24 }
 0x15e   :  { %v1876_v63 = vmul.f32 %v6564_v47, %v1741_v11  ;;  %v1622_v10 = vadd.f32 %v6548_v14, %v1487_v38  ;;  %v1743_v33 = vmax.f32 %v1615_v2, 0.0  ;;  %v1937_v38 = vmul.f32 %v6564_v47, %v1802_v53 }
 0x15f   :  { %v1543_v53 = vadd.f32 %v6399_v45, %v6330_v29  ;;  %v1488_v2 = vadd.f32 %v6472_v28, %v6552_v30  ;;  %v1407_v30 = vcombine.high %v6049_v32, %v6049_v32  ;;  %v1491_v32 = vadd.f32 %v6572_v43, %v6472_v28 }
 0x160   :  { %2224 = vadd.xlane.f32.xlu1 %v2223_v37  ;;  %2059 = vadd.xlane.f32.xlu0 %v2058_v57  ;;  %v1799_v37 = vmax.f32 %v1671_v5, 0.0  ;;  %v1538_v57 = vadd.f32 %v6330_v29, %v6359_v22  ;;  %v1882_v22 = vmul.f32 %v6564_v47, %v1747_v25  ;;  %v2064_v49 = vsel %vm8696_vm1, %v1876_v63, 0.0 }
 0x161   :  { %v1750_v5 = vmax.f32 %v1622_v10, 0.0  ;;  %v1540_v10 = vadd.f32 %v6330_v29, %v6385_v44 }
 0x162   :  { %v1934_v48 = vmul.f32 %v6564_v47, %v1799_v37  ;;  %v1673_v42 = vadd.f32 %v6548_v14, %v1538_v57  ;;  %v2082_v59 = vsel %vm8696_vm1, %v1882_v22, 0.0  ;;  %v6608_v37 = vpop.f32.mrf.mxu0 }
 0x163   :  { %v1885_v57 = vmul.f32 %v6564_v47, %v1750_v5 }
 0x164   :  { %2221 = vadd.xlane.f32.xlu1 %v2220_v20  ;;  %2233 = vadd.xlane.f32.xlu0 %v2232_v40  ;;  %v2253_v20 = vsel %vm8696_vm1, %v1939_v23, 0.0  ;;  %v6584_v40 = vpop.f32.mrf.mxu1  ;;  %v2238_v58 = vsel %vm8696_vm1, %v1934_v48, 0.0  ;;  %v1801_v27 = vmax.f32 %v1673_v42, 0.0  ;;  %v1808_v23 = vmax.f32 %v1680_v60, 0.0  ;;  %v939_v44 = vpop.f32.mrf.mxu0 }
 0x165   :  { %v1752_v48 = vmax.f32 %v1624_v55, 0.0  ;;  %v2091_v5 = vsel %vm8696_vm1, %v1885_v57, 0.0  ;;  %v1544_v55 = vadd.f32 %v6541_v36, %v6439_v54  ;;  %v1546_v54 = vadd.f32 %v6541_v36, %v6467_v26 }
 0x166   :  { %v6599_v8 = vpop.f32.mrf.mxu1  ;;  %v1943_v60 = vmul.f32 %v6564_v47, %v1808_v23  ;;  %v1936_v45 = vmul.f32 %v6564_v47, %v1801_v27 }
 0x168   :  { %2074 = vadd.xlane.f32.xlu1 %v2073_v31  ;;  %2068 = vadd.xlane.f32.xlu0 %v2067_v18  ;;  %v1940_v18 = vmul.f32 %v6564_v47, %v1805_v51  ;;  %v1617_v51 = vadd.f32 %v6548_v14, %v1482_v46  ;;  %v6620_v19 = vpop.f32.mrf.mxu1  ;;  %v5048_v46 = vpop.f32.mrf.mxu0  ;;  %v2265_v27 = vsel %vm8696_vm1, %v1943_v60, 0.0 }
 0x16a   :  { %v2256_v63 = vsel %vm8696_vm1, %v1940_v18, 0.0  ;;  %v1745_v24 = vmax.f32 %v1617_v51, 0.0  ;;  %v6650_v18 = vadd.f32 %v6548_v14, %v1543_v53  ;;  %v6666_v51 = vrot.slane %v1407_v30, %v6039_v21  ;;  %v949_v53 = vpop.f32.mrf.mxu0 }
 0x16b   :  { %v1548_v30 = vadd.f32 %v6541_v36, %v6494_v62 }
 0x16c   :  { %2080 = vadd.xlane.f32.xlu1 %v2079_v17  ;;  %2242 = vadd.xlane.f32.xlu0 %v2241_v13  ;;  %v1547_v13 = vadd.f32 %v6451_v41, %v6541_v36  ;;  %v1485_v41 = vadd.f32 %v6475_v6, %v6472_v28  ;;  %v6638_v6 = vpop.f32.mrf.mxu1  ;;  %v1880_v57 = vmul.f32 %v6564_v47, %v1745_v24  ;;  %v5051_v62 = vpop.f32.mrf.mxu0 }
 0x16d   :  { %v1979_v61 = vpop.xlane.xlu0 %1978  ;;  %v6684_v24 = vadd.f32 %v6548_v14, %v1544_v55 }
 0x16e   :  { %v2497_v52 = vrot.slane %v1979_v61, %v6575_v39  ;;  %v2247_v61 = vsel %vm8696_vm1, %v1937_v38, 0.0  ;;  %v1682_v42 = vadd.f32 %v6548_v14, %v1547_v13  ;;  %v6661_v13 = vpop.f32.mrf.mxu1 }
 0x170   :  { %2254 = vadd.xlane.f32.xlu1 %v2253_v20  ;;  %2065 = vadd.xlane.f32.xlu0 %v2064_v49  ;;  %v1878_v20 = vmul.f32 %v6564_v47, %v1743_v33  ;;  %v1623_v33 = vadd.f32 %v6548_v14, %v1488_v2  ;;  %v1810_v38 = vmax.f32 %v1682_v42, 0.0  ;;  %v1626_v42 = vadd.f32 %v6548_v14, %v1491_v32  ;;  %v6688_v26 = vpop.f32.mrf.mxu1 }
 0x171   :  { %v1976_v31 = vpop.xlane.xlu0 %1975  ;;  %v1550_v32 = vadd.f32 %v6541_v36, %v6519_v3 }
 0x172   :  { %v2492_v11 = vrot.slane %v1976_v31, %v6580_v1  ;;  %v1675_v31 = vadd.f32 %v6548_v14, %v1540_v10  ;;  %v2070_v29 = vsel %vm8696_vm1, %v1878_v20, 0.0  ;;  %v1806_v20 = vmax.f32 %v6650_v18, 0.0 }
 0x173   :  { %v1945_v60 = vmul.f32 %v6564_v47, %v1810_v38  ;;  %v6702_v18 = vadd.f32 %v6548_v14, %v1546_v54  ;;  %v1492_v38 = vadd.f32 %v6472_v28, %v939_v44  ;;  %v6722_v54 = vadd.f32 %v6548_v14, %v1548_v30 }
 0x174   :  { %2083 = vadd.xlane.f32.xlu1 %v2082_v59  ;;  %v6604_v25 = vsel %vm2498_vm2, %v2497_v52, %v2492_v11  ;;  %2239 = vadd.xlane.f32.xlu0 %v2238_v58  ;;  %v1486_v52 = vadd.f32 %v6472_v28, %v6513_v34  ;;  %v1620_v59 = vadd.f32 %v6548_v14, %v1485_v41  ;;  %v1803_v23 = vmax.f32 %v1675_v31, 0.0 }
 0x175   :  { %v6606_v17 = vpop.xlane.xlu1 %1990  ;;  %v6610_v7 = vpop.xlane.xlu0 %2137  ;;  %v1887_v34 = vmul.f32 %v6564_v47, %v1752_v48  ;;  %v1549_v41 = vadd.f32 %v6483_v12, %v6541_v36  ;;  %v1751_v48 = vmax.f32 %v1623_v33, 0.0  ;;  %v1490_v31 = vadd.f32 %v6472_v28, %v6591_v56 }
 0x176   :  { %8708 = vst [vmem:[#allocation9_spill] sm:$0xff] %v6610_v7  ;;  %v6669_v43 = vadd.f32 %v6548_v14, %v1486_v52  ;;  %v2076_v12 = vsel %vm8696_vm1, %v1880_v57, 0.0  ;;  %v1493_v52 = vadd.f32 %v6608_v37, %v6472_v28  ;;  %v1754_v37 = vmax.f32 %v1626_v42, 0.0  ;;  %v6717_v57 = vpop.f32.mrf.mxu1 }
 0x177   :  { %v1684_v33 = vadd.f32 %v6548_v14, %v1549_v41 }
 0x178   :  { %2257 = vadd.xlane.f32.xlu1 %v2256_v63  ;;  %2248 = vadd.xlane.f32.xlu0 %v2247_v61  ;;  %v2244_v63 = vsel %vm8696_vm1, %v1936_v45, 0.0  ;;  %v1748_v61 = vmax.f32 %v1620_v59, 0.0  ;;  %v1749_v45 = vmax.f32 %v6669_v43, 0.0  ;;  %v1551_v59 = vadd.f32 %v6506_v50, %v6541_v36 }
 0x179   :  { %v6624_v22 = vpop.xlane.xlu1 %2164  ;;  %v6632_v49 = vpop.xlane.xlu0 %2140  ;;  %v2271_v50 = vsel %vm8696_vm1, %v1945_v60, 0.0  ;;  %v6736_v60 = vadd.f32 %v6548_v14, %v1492_v38  ;;  %v1812_v30 = vmax.f32 %v1684_v33, 0.0  ;;  %v1497_v38 = vadd.f32 %v5051_v62, %v6054_v35 }
 0x17a   :  { %8709 = vst [vmem:[#allocation10_spill] sm:$0xff] %v6624_v22  ;;  %8710 = vst [vmem:[#allocation11_spill] sm:$0xff] %v6632_v49  ;;  %v1883_v3 = vmul.f32 %v6564_v47, %v1748_v61  ;;  %v6728_v41 = vadd.f32 %v6548_v14, %v1551_v59  ;;  %v6739_v61 = vadd.f32 %v6548_v14, %v1550_v32 }
 0x17b   :  { %v1889_v59 = vmul.f32 %v6564_v47, %v1754_v37  ;;  %v1947_v62 = vmul.f32 %v6564_v47, %v1812_v30  ;;  %v1884_v0 = vmul.f32 %v6564_v47, %v1749_v45  ;;  %v2500_v30 = vadd.s32 4294967280, %v6532_v4 }
 0x17c   :  { %2092 = vadd.xlane.f32.xlu1 %v2091_v5  ;;  %2071 = vadd.xlane.f32.xlu0 %v2070_v29  ;;  %v2097_v5 = vsel %vm8696_vm1, %v1887_v34, 0.0  ;;  %v1938_v29 = vmul.f32 %v6564_v47, %v1803_v23  ;;  %v1495_v34 = vadd.f32 %v5048_v46, %v6472_v28  ;;  %v1886_v23 = vmul.f32 %v6564_v47, %v1751_v48 }
 0x17d   :  { %v6646_v11 = vpop.xlane.xlu1 %1987  ;;  %v6653_v58 = vpop.xlane.xlu0 %2143  ;;  %v6725_v46 = vadd.f32 %v6548_v14, %v1493_v52  ;;  %v1553_v48 = vadd.f32 %v6536_v9, %v6541_v36  ;;  %v2085_v32 = vsel %vm8696_vm1, %v1883_v3, 0.0  ;;  %v1557_v43 = vadd.f32 %v6620_v19, %v6541_v36 }
 0x17e   :  { %8711 = vst [vmem:[#allocation12_spill] sm:$0xff] %v6653_v58  ;;  %v2250_v44 = vsel %vm8696_vm1, %v1938_v29, 0.0  ;;  %v6745_v52 = vadd.f32 %v6548_v14, %v1495_v34  ;;  %v2094_v9 = vsel %vm8696_vm1, %v1886_v23, 0.0  ;;  %v2507_v34 = vadd.s32 4294967272, %v6532_v4 }
 0x17f   :  { %v6759_v23 = vadd.f32 %v6548_v14, %v1553_v48  ;;  %v1555_v48 = vadd.f32 %v6584_v40, %v6541_v36  ;;  %v2277_v55 = vsel %vm8696_vm1, %v1947_v62, 0.0  ;;  %v2088_v19 = vsel %vm8696_vm1, %v1884_v0, 0.0 }
 0x180   :  { %2266 = vadd.xlane.f32.xlu1 %v2265_v27  ;;  %2245 = vadd.xlane.f32.xlu0 %v2244_v63  ;;  %v6715_v63 = vadd.f32 %v6548_v14, %v1490_v31  ;;  %v1494_v31 = vadd.f32 %v6472_v28, %v949_v53  ;;  %v1941_v28 = vmul.f32 %v6564_v47, %v1806_v20  ;;  %v1811_v53 = vmax.f32 %v6722_v54, 0.0 }
 0x181   :  { %v6671_v10 = vpop.xlane.xlu1 %2167  ;;  %v6678_v2 = vpop.xlane.xlu0 %2146  ;;  %v1552_v20 = vadd.f32 %v6541_v36, %v6558_v15  ;;  %v6825_v0 = vadd.f32 %v6548_v14, %v1557_v43  ;;  %v8723_v22 = vmax.f32 %v6739_v61, 0.0  ;;  %v2584_v61 = vadd.s32 4294967184, %v6532_v4 }
 0x182   :  { %8712 = vst [vmem:[#allocation13_spill] sm:$0xff] %v6678_v2  ;;  %v6766_v3 = vadd.f32 %v6548_v14, %v1494_v31  ;;  %v2259_v15 = vsel %vm8696_vm1, %v1941_v28, 0.0 }
 0x183   :  { %v6793_v28 = vadd.f32 %v6548_v14, %v1552_v20 }
 0x184   :  { %2098 = vadd.xlane.f32.xlu1 %v2097_v5  ;;  %2077 = vadd.xlane.f32.xlu0 %v2076_v12  ;;  %v959_v12 = vpop.f32.mrf.mxu0 }
 0x185   :  { %v6699_v56 = vpop.xlane.xlu1 %2002  ;;  %v6708_v27 = vpop.xlane.xlu0 %2152 }
 0x186   :  { %8713 = vst [vmem:[#allocation14_spill] sm:$0xff] %v6708_v27  ;;  %v5054_v54 = vpop.f32.mrf.mxu0 }
 0x187   :  { %v1499_v40 = vadd.f32 %v5054_v54, %v6054_v35  ;;  %v6801_v54 = vadd.f32 %v6548_v14, %v1555_v48 }
 0x188   :  { %2272 = vadd.xlane.f32.xlu1 %v2271_v50  ;;  %2251 = vadd.xlane.f32.xlu0 %v2250_v44  ;;  %v1753_v50 = vmax.f32 %v6715_v63, 0.0  ;;  %v6751_v44 = vpop.f32.mrf.mxu1  ;;  %v6778_v63 = vadd.f32 %v6548_v14, %v1497_v38  ;;  %v969_v45 = vpop.f32.mrf.mxu0 }
 0x189   :  { %v6732_v42 = vpop.xlane.xlu1 %1999  ;;  %v6742_v29 = vpop.xlane.xlu0 %2149  ;;  %v1634_v27 = vadd.f32 %v6548_v14, %v1499_v40 }
 0x18a   :  { %8714 = vst [vmem:[#allocation15_spill] sm:$0xff] %v6742_v29  ;;  %v5150_v31 = vpop.f32.mrf.mxu1  ;;  %v1888_v5 = vmul.f32 %v6564_v47, %v1753_v50  ;;  %v1760_v20 = vmax.f32 %v6778_v63, 0.0  ;;  %v6808_v29 = vsub.s32 %v2507_v34, %v6035_v16  ;;  %v6820_v50 = vsub.s32 %v2500_v30, %v6035_v16 }
 0x18c   :  { %2095 = vadd.xlane.f32.xlu1 %v2094_v9  ;;  %2086 = vadd.xlane.f32.xlu0 %v2085_v32  ;;  %v2103_v32 = vsel %vm8696_vm1, %v1889_v59, 0.0  ;;  %v2514_v59 = vadd.s32 4294967264, %v6532_v4  ;;  %v1289_v21 = vpop.f32.mrf.mxu1  ;;  %v2100_v40 = vsel %vm8696_vm1, %v1888_v5, 0.0 }
 0x18d   :  { %v6761_v37 = vpop.xlane.xlu1 %2173  ;;  %v6770_v9 = vpop.xlane.xlu0 %1984 }
 0x18e   :  { %v6817_v62 = vsub.s32 %v2514_v59, %v6035_v16  ;;  %v1946_v59 = vmul.f32 %v6564_v47, %v1811_v53  ;;  %v5153_v30 = vpop.f32.mrf.mxu1  ;;  %v2511_v43 = vrot.slane %v6770_v9, %v6808_v29  ;;  %v1563_v9 = vadd.f32 %v5150_v31, %v6666_v51 }
 0x18f   :  { %v1762_v31 = vmax.f32 %v1634_v27, 0.0 }
 0x190   :  { %2104 = vadd.xlane.f32.xlu1 %v2103_v32  ;;  %2260 = vadd.xlane.f32.xlu0 %v2259_v15  ;;  %v2521_v32 = vadd.s32 4294967256, %v6532_v4  ;;  %v1496_v15 = vadd.f32 %v6054_v35, %v959_v12  ;;  %v1498_v12 = vadd.f32 %v6054_v35, %v969_v45  ;;  %v2518_v5 = vrot.slane %v6646_v11, %v6817_v62 }
 0x191   :  { %v6789_v38 = vpop.xlane.xlu1 %2008  ;;  %v6798_v33 = vpop.xlane.xlu0 %2158  ;;  %v1565_v11 = vadd.f32 %v5153_v30, %v6666_v51 }
 0x192   :  { %8715 = vst [vmem:[#allocation16_spill] sm:$0xff] %v6798_v33  ;;  %v8716_v33 = vmax.f32 %v6684_v24, 0.0  ;;  %v1556_v24 = vadd.f32 %v6541_v36, %v6638_v6  ;;  %v8717_v6 = vmax.f32 %v6702_v18, 0.0  ;;  %v1562_v18 = vadd.f32 %v6666_v51, %v1289_v21 }
 0x193   :  { %v1633_v30 = vadd.f32 %v6548_v14, %v1498_v12  ;;  %v6886_v12 = vadd.f32 %v6548_v14, %v1563_v9 }
 0x194   :  { %2278 = vadd.xlane.f32.xlu1 %v2277_v55  ;;  %v1942_v48 = vmul.f32 %v6564_v47, %v8716_v33  ;;  %2089 = vadd.xlane.f32.xlu0 %v2088_v19  ;;  %v6830_v55 = vsub.s32 %v2521_v32, %v6035_v16  ;;  %v1944_v32 = vmul.f32 %v6564_v47, %v8717_v6  ;;  %v2274_v6 = vsel %vm8696_vm1, %v1946_v59, 0.0 }
 0x195   :  { %v6822_v34 = vpop.xlane.xlu1 %2182  ;;  %v1982_v33 = vpop.xlane.xlu0 %1981  ;;  %v1561_v19 = vadd.f32 %v6717_v57, %v6666_v51  ;;  %v6870_v59 = vadd.f32 %v6548_v14, %v1556_v24 }
 0x196   :  { %v2504_v63 = vrot.slane %v1982_v33, %v6820_v50  ;;  %v2262_v45 = vsel %vm8696_vm1, %v1942_v48, 0.0  ;;  %v2525_v48 = vrot.slane %v6606_v17, %v6830_v55  ;;  %v2268_v21 = vsel %vm8696_vm1, %v1944_v32, 0.0 }
 0x197   :  { %v1895_v17 = vmul.f32 %v6564_v47, %v1760_v20  ;;  %v6879_v20 = vadd.f32 %v6548_v14, %v1496_v15  ;;  %v8721_v15 = vmax.f32 %v6728_v41, 0.0  ;;  %v1819_v32 = vmax.f32 %v6870_v59, 0.0 }
 0x198   :  { %2101 = vadd.xlane.f32.xlu1 %v2100_v40  ;;  %v2506_v53 = vsel %vm8697_vm3, %v2504_v63, %v6604_v25  ;;  %2263 = vadd.xlane.f32.xlu0 %v2262_v45  ;;  %v8719_v25 = vmax.f32 %v6725_v46, 0.0  ;;  %v6873_v46 = vadd.f32 %v6548_v14, %v1561_v19  ;;  %v6891_v19 = vadd.f32 %v6548_v14, %v1562_v18 }
 0x199   :  { %v6847_v33 = vpop.xlane.xlu1 %2005  ;;  %v2513_v40 = vsel %vm8698_vm4, %v2511_v43, %v2506_v53  ;;  %v6854_v57 = vpop.xlane.xlu0 %2155  ;;  %v2121_v9 = vsel %vm8696_vm1, %v1895_v17, 0.0  ;;  %v1761_v18 = vmax.f32 %v1633_v30, 0.0  ;;  %v2549_v17 = vadd.s32 4294967224, %v6532_v4 }
 0x19a   :  { %8718 = vst [vmem:[#allocation17_spill] sm:$0xff] %v6854_v57  ;;  %v1891_v63 = vmul.f32 %v6564_v47, %v8719_v25  ;;  %v2520_v45 = vsel %vm8699_vm5, %v2518_v5, %v2513_v40  ;;  %v1299_v5 = vpop.f32.mrf.mxu1  ;;  %v6894_v40 = vadd.f32 %v6548_v14, %v1565_v11  ;;  %v1949_v25 = vmul.f32 %v6564_v47, %v8721_v15 }
 0x19b   :  { %v6865_v43 = vsel %vm2526_vm6, %v2525_v48, %v2520_v45  ;;  %v6883_v48 = vadd.f32 %v6541_v36, %v6599_v8  ;;  %v1820_v8 = vmax.f32 %v6825_v0, 0.0  ;;  %v1564_v45 = vadd.f32 %v6666_v51, %v1299_v5 }
 0x19c   :  { %2275 = vadd.xlane.f32.xlu1 %v2274_v6  ;;  %2269 = vadd.xlane.f32.xlu0 %v2268_v21  ;;  %v2109_v6 = vsel %vm8696_vm1, %v1891_v63, 0.0  ;;  %v1897_v21 = vmul.f32 %v6564_v47, %v1762_v31  ;;  %v2528_v63 = vadd.s32 4294967248, %v6532_v4  ;;  %v5156_v0 = vpop.f32.mrf.mxu1  ;;  %v2535_v5 = vadd.s32 4294967240, %v6532_v4 }
 0x19d   :  { %v6875_v27 = vpop.xlane.xlu1 %2014  ;;  %v6888_v24 = vpop.xlane.xlu0 %2161  ;;  %v2283_v53 = vsel %vm8696_vm1, %v1949_v25, 0.0  ;;  %v6920_v15 = vadd.f32 %v6548_v14, %v1564_v45  ;;  %v1955_v2 = vmul.f32 %v6564_v47, %v1820_v8  ;;  %v6926_v30 = vadd.f32 %v5156_v0, %v6666_v51 }
 0x19e   :  { %8720 = vst [vmem:[#allocation18_spill] sm:$0xff] %v6888_v24  ;;  %v2563_v24 = vadd.s32 4294967208, %v6532_v4  ;;  %v2127_v57 = vsel %vm8696_vm1, %v1897_v21, 0.0  ;;  %v6929_v59 = vsub.s32 %v2528_v63, %v6035_v16  ;;  %v2577_v25 = vadd.s32 4294967192, %v6532_v4 }
 0x19f   :  { %v6942_v8 = vsub.s32 %v2549_v17, %v6035_v16  ;;  %v2570_v21 = vadd.s32 4294967200, %v6532_v4  ;;  %v2838_v0 = vrot.slane %v6671_v10, %v6580_v1  ;;  %v2847_v17 = vrot.slane %v6761_v37, %v6820_v50 }
 0x1a0   :  { %2110 = vadd.xlane.f32.xlu1 %v2109_v6  ;;  %2122 = vadd.xlane.f32.xlu0 %v2121_v9  ;;  %v2542_v6 = vadd.s32 4294967232, %v6532_v4  ;;  %v8722_v9 = vmax.f32 %v6736_v60, 0.0  ;;  %v2556_v60 = vadd.s32 4294967216, %v6532_v4  ;;  %v2301_v49 = vsel %vm8696_vm1, %v1955_v2, 0.0 }
 0x1a1   :  { %v6907_v41 = vpop.xlane.xlu1 %2188  ;;  %v1997_v31 = vpop.xlane.xlu0 %1996  ;;  %v1896_v7 = vmul.f32 %v6564_v47, %v1761_v18  ;;  %v6970_v37 = vsub.s32 %v2570_v21, %v6035_v16 }
 0x1a2   :  { %v1890_v11 = vmul.f32 %v6564_v47, %v8722_v9  ;;  %v6936_v9 = vsub.s32 %v2535_v5, %v6035_v16  ;;  %v1948_v5 = vmul.f32 %v6564_v47, %v8723_v22  ;;  %v6960_v10 = vsub.s32 %v2556_v60, %v6035_v16 }
 0x1a3   :  { %v2124_v21 = vsel %vm8696_vm1, %v1896_v7, 0.0  ;;  %v2553_v7 = vrot.slane %v6699_v56, %v6942_v8 }
 0x1a4   :  { %2284 = vadd.xlane.f32.xlu1 %v2283_v53  ;;  %2128 = vadd.xlane.f32.xlu0 %v2127_v57  ;;  %v6939_v53 = vsub.s32 %v2542_v6, %v6035_v16  ;;  %v2106_v57 = vsel %vm8696_vm1, %v1890_v11, 0.0  ;;  %v6953_v6 = vsub.s32 %v2563_v24, %v6035_v16  ;;  %v6963_v11 = vsub.s32 %v2577_v25, %v6035_v16 }
 0x1a5   :  { %v6933_v45 = vpop.xlane.xlu1 %2011  ;;  %v2171_v63 = vpop.xlane.xlu0 %2170  ;;  %v2280_v25 = vsel %vm8696_vm1, %v1948_v5, 0.0 }
 0x1a6   :  { %v2842_v58 = vrot.slane %v2171_v63, %v6575_v39  ;;  %v8724_v63 = vmax.f32 %v6745_v52, 0.0 }
 0x1a8   :  { %2107 = vadd.xlane.f32.xlu1 %v2106_v57  ;;  %v2843_v22 = vsel %vm2498_vm2, %v2842_v58, %v2838_v0  ;;  %2302 = vadd.xlane.f32.xlu0 %v2301_v49  ;;  %v1893_v57 = vmul.f32 %v6564_v47, %v8724_v63  ;;  %v1954_v49 = vmul.f32 %v6564_v47, %v1819_v32  ;;  %v6981_v0 = vpop.f32.mrf.mxu1  ;;  %v8725_v32 = vmax.f32 %v6759_v23, 0.0 }
 0x1a9   :  { %v6967_v24 = vpop.xlane.xlu1 %2185  ;;  %v1994_v2 = vpop.xlane.xlu0 %1993  ;;  %v2848_v18 = vsel %vm8697_vm3, %v2847_v17, %v2843_v22  ;;  %v2539_v58 = vrot.slane %v1997_v31, %v6936_v9  ;;  %v2546_v17 = vrot.slane %v6732_v42, %v6939_v53  ;;  %v8726_v22 = vmax.f32 %v6873_v46, 0.0 }
 0x1aa   :  { %v2532_v60 = vrot.slane %v1994_v2, %v6929_v59  ;;  %v1951_v31 = vmul.f32 %v6564_v47, %v8725_v32  ;;  %v2115_v23 = vsel %vm8696_vm1, %v1893_v57, 0.0  ;;  %v2298_v63 = vsel %vm8696_vm1, %v1954_v49, 0.0 }
 0x1ab   :  { %v1959_v2 = vmul.f32 %v6564_v47, %v8726_v22  ;;  %v2567_v46 = vrot.slane %v6789_v38, %v6953_v6  ;;  %v7016_v38 = vsub.s32 %v2584_v61, %v6035_v16  ;;  %v2862_v61 = vrot.slane %v6822_v34, %v6830_v55 }
 0x1ac   :  { %2281 = vadd.xlane.f32.xlu1 %v2280_v25  ;;  %v2534_v5 = vsel %vm2533_vm7, %v2532_v60, %v6865_v43  ;;  %2125 = vadd.xlane.f32.xlu0 %v2124_v21  ;;  %v2560_v43 = vrot.slane %v6847_v33, %v6960_v10  ;;  %v2574_v33 = vrot.slane %v6933_v45, %v6970_v37  ;;  %v2289_v22 = vsel %vm8696_vm1, %v1951_v31, 0.0 }
 0x1ad   :  { %v6987_v52 = vpop.xlane.xlu1 %2020  ;;  %v2541_v25 = vsel %vm2540_vm8, %v2539_v58, %v2534_v5  ;;  %v2177_v42 = vpop.xlane.xlu0 %2176  ;;  %v2591_v5 = vadd.s32 4294967176, %v6532_v4  ;;  %v2313_v45 = vsel %vm8696_vm1, %v1959_v2, 0.0 }
 0x1ae   :  { %v2548_v60 = vsel %vm2547_vm9, %v2546_v17, %v2541_v25  ;;  %v2852_v56 = vrot.slane %v2177_v42, %v6808_v29  ;;  %v7007_v58 = vpop.f32.mrf.mxu1  ;;  %v2581_v17 = vrot.slane %v6875_v27, %v6963_v11 }
 0x1af   :  { %v2555_v21 = vsel %vm2554_vm10, %v2553_v7, %v2548_v60  ;;  %v7038_v2 = vsub.s32 %v2591_v5, %v6035_v16 }
 0x1b0   :  { %2116 = vadd.xlane.f32.xlu1 %v2115_v23  ;;  %2299 = vadd.xlane.f32.xlu0 %v2298_v63  ;;  %v2562_v49 = vsel %vm2561_vm11, %v2560_v43, %v2555_v21  ;;  %v8727_v43 = vmax.f32 %v6766_v3, 0.0  ;;  %v2853_v27 = vsel %vm8698_vm4, %v2852_v56, %v2848_v18  ;;  %v8728_v23 = vmax.f32 %v6886_v12, 0.0 }
 0x1b1   :  { %v7012_v57 = vpop.xlane.xlu1 %2194  ;;  %v2180_v32 = vpop.xlane.xlu0 %2179  ;;  %v2569_v7 = vsel %vm2568_vm12, %v2567_v46, %v2562_v49  ;;  %v2867_v3 = vrot.slane %v6967_v24, %v6929_v59  ;;  %v2872_v18 = vrot.slane %v6907_v41, %v6936_v9  ;;  %v2595_v5 = vrot.slane %v6987_v52, %v7038_v2 }
 0x1b2   :  { %v2857_v25 = vrot.slane %v2180_v32, %v6817_v62  ;;  %v2576_v42 = vsel %vm2575_vm13, %v2574_v33, %v2569_v7  ;;  %v1892_v60 = vmul.f32 %v6564_v47, %v8727_v43  ;;  %v1961_v63 = vmul.f32 %v6564_v47, %v8728_v23  ;;  %v7035_v46 = vpop.f32.mrf.mxu1 }
 0x1b3   :  { %v2583_v31 = vsel %vm2582_vm14, %v2581_v17, %v2576_v42  ;;  %v8729_v17 = vmax.f32 %v6793_v28, 0.0 }
 0x1b4   :  { %2290 = vadd.xlane.f32.xlu1 %v2289_v22  ;;  %v2858_v21 = vsel %vm8699_vm5, %v2857_v25, %v2853_v27  ;;  %2314 = vadd.xlane.f32.xlu0 %v2313_v45  ;;  %v2112_v24 = vsel %vm8696_vm1, %v1892_v60, 0.0  ;;  %v5057_v22 = vpop.f32.mrf.mxu0  ;;  %v2319_v7 = vsel %vm8696_vm1, %v1961_v63, 0.0  ;;  %v8730_v45 = vmax.f32 %v6891_v19, 0.0  ;;  %v7064_v42 = vpop.f32.mrf.mxu1 }
 0x1b5   :  { %v2018_v34 = vpop.xlane.xlu1 %2017  ;;  %v2863_v12 = vsel %vm2526_vm6, %v2862_v61, %v2858_v21  ;;  %v7047_v33 = vpop.xlane.xlu0 %2038  ;;  %v1950_v32 = vmul.f32 %v6564_v47, %v8729_v17  ;;  %v1759_v60 = vmax.f32 %v6879_v20, 0.0  ;;  %v1689_v61 = vadd.f32 %v6548_v14, %v6883_v48 }
 0x1b6   :  { %v2588_v56 = vrot.slane %v2018_v34, %v7016_v38  ;;  %v2868_v49 = vsel %vm2533_vm7, %v2867_v3, %v2863_v12  ;;  %v1960_v52 = vmul.f32 %v6564_v47, %v8730_v45  ;;  %v1566_v19 = vadd.f32 %v6666_v51, %v6981_v0  ;;  %v1329_v12 = vpop.f32.mrf.mxu1 }
 0x1b7   :  { %v7059_v25 = vsel %vm2540_vm8, %v2872_v18, %v2868_v49  ;;  %v2286_v23 = vsel %vm8696_vm1, %v1950_v32, 0.0  ;;  %v8732_v63 = vmax.f32 %v6801_v54, 0.0  ;;  %v1827_v21 = vmax.f32 %v6920_v15, 0.0 }
 0x1b8   :  { %v2590_v41 = vsel %vm2589_vm15, %v2588_v56, %v2583_v31  ;;  %2113 = vadd.xlane.f32.xlu1 %v2112_v24  ;;  %2320 = vadd.xlane.f32.xlu0 %v2319_v7  ;;  %v1501_v31 = vadd.f32 %v5057_v22, %v6054_v35  ;;  %v1702_v20 = vadd.f32 %v6548_v14, %v6926_v30  ;;  %v2316_v48 = vsel %vm8696_vm1, %v1960_v52, 0.0  ;;  %v979_v30 = vpop.f32.mrf.mxu0 }
 0x1b9   :  { %v7067_v43 = vsel %vm2596_vm0, %v2595_v5, %v2590_v41  ;;  %v7069_v28 = vpop.xlane.xlu1 %2191  ;;  %v7074_v27 = vpop.xlane.xlu0 %2212  ;;  %v1953_v3 = vmul.f32 %v6564_v47, %v8732_v63  ;;  %v8733_v34 = vmax.f32 %v6894_v40, 0.0  ;;  %v1817_v56 = vmax.f32 %v1689_v61, 0.0 }
 0x1ba   :  { %8731 = vst [vmem:[#allocation19_spill] sm:$0xff] %v7067_v43  ;;  %v1559_v54 = vadd.f32 %v6661_v13, %v6541_v36  ;;  %v1636_v15 = vadd.f32 %v6548_v14, %v1501_v31  ;;  %v1701_v24 = vadd.f32 %v6548_v14, %v1566_v19  ;;  %v1894_v40 = vmul.f32 %v6564_v47, %v1759_v60  ;;  %v5165_v41 = vpop.f32.mrf.mxu1 }
 0x1bb   :  { %v1963_v18 = vmul.f32 %v6564_v47, %v8733_v34  ;;  %v2295_v49 = vsel %vm8696_vm1, %v1953_v3, 0.0  ;;  %v1830_v17 = vmax.f32 %v1702_v20, 0.0  ;;  %v1569_v32 = vadd.f32 %v7007_v58, %v6666_v51 }
 0x1bc   :  { %2287 = vadd.xlane.f32.xlu1 %v2286_v23  ;;  %2317 = vadd.xlane.f32.xlu0 %v2316_v48  ;;  %v1962_v13 = vmul.f32 %v6564_v47, %v1827_v21  ;;  %v1694_v45 = vadd.f32 %v6548_v14, %v1559_v54  ;;  %v1500_v52 = vadd.f32 %v6054_v35, %v979_v30  ;;  %v1764_v60 = vmax.f32 %v1636_v15, 0.0  ;;  %v1339_v20 = vpop.f32.mrf.mxu1 }
 0x1bd   :  { %v7090_v0 = vpop.xlane.xlu1 %2026  ;;  %v7094_v5 = vpop.xlane.xlu0 %2035  ;;  %v2325_v22 = vsel %vm8696_vm1, %v1963_v18, 0.0  ;;  %v1829_v31 = vmax.f32 %v1701_v24, 0.0  ;;  %v2118_v19 = vsel %vm8696_vm1, %v1894_v40, 0.0  ;;  %v1952_v58 = vmul.f32 %v6564_v47, %v1817_v56 }
 0x1be   :  { %v1704_v23 = vadd.f32 %v6548_v14, %v1569_v32  ;;  %v1568_v63 = vadd.f32 %v6666_v51, %v7035_v46  ;;  %v2322_v3 = vsel %vm8696_vm1, %v1962_v13, 0.0  ;;  %v1965_v21 = vmul.f32 %v6564_v47, %v1830_v17  ;;  %v5168_v17 = vpop.f32.mrf.mxu1 }
 0x1bf   :  { %v1635_v48 = vadd.f32 %v6548_v14, %v1500_v52  ;;  %v1558_v34 = vadd.f32 %v6541_v36, %v6688_v26  ;;  %v1822_v56 = vmax.f32 %v1694_v45, 0.0  ;;  %v1570_v54 = vadd.f32 %v6666_v51, %v1329_v12 }
 0x1c0   :  { %2296 = vadd.xlane.f32.xlu1 %v2295_v49  ;;  %2326 = vadd.xlane.f32.xlu0 %v2325_v22  ;;  %v2292_v46 = vsel %vm8696_vm1, %v1952_v58, 0.0  ;;  %v1899_v15 = vmul.f32 %v6564_v47, %v1764_v60  ;;  %v1832_v30 = vmax.f32 %v1704_v23, 0.0  ;;  %v1703_v24 = vadd.f32 %v6548_v14, %v1568_v63  ;;  %v1349_v23 = vpop.f32.mrf.mxu1 }
 0x1c1   :  { %v7104_v7 = vpop.xlane.xlu1 %2200  ;;  %v7108_v61 = vpop.xlane.xlu0 %2209  ;;  %v2331_v49 = vsel %vm8696_vm1, %v1965_v21, 0.0  ;;  %v1964_v40 = vmul.f32 %v6564_v47, %v1829_v31  ;;  %v1763_v26 = vmax.f32 %v1635_v48, 0.0  ;;  %v1693_v32 = vadd.f32 %v6548_v14, %v1558_v34 }
 0x1c2   :  { %v1560_v22 = vadd.f32 %v6666_v51, %v6751_v44  ;;  %v1705_v13 = vadd.f32 %v6548_v14, %v1570_v54  ;;  %v2133_v45 = vsel %vm8696_vm1, %v1899_v15, 0.0  ;;  %v1957_v52 = vmul.f32 %v6564_v47, %v1822_v56 }
 0x1c3   :  { %v1831_v60 = vmax.f32 %v1703_v24, 0.0  ;;  %v1573_v31 = vadd.f32 %v5165_v41, %v6666_v51  ;;  %v1967_v58 = vmul.f32 %v6564_v47, %v1832_v30  ;;  %v1571_v44 = vadd.f32 %v7064_v42, %v6666_v51 }
 0x1c4   :  { %2119 = vadd.xlane.f32.xlu1 %v2118_v19  ;;  %2323 = vadd.xlane.f32.xlu0 %v2322_v3  ;;  %v2328_v19 = vsel %vm8696_vm1, %v1964_v40, 0.0  ;;  %v1821_v3 = vmax.f32 %v1693_v32, 0.0  ;;  %v1695_v48 = vadd.f32 %v6548_v14, %v1560_v22  ;;  %v1833_v34 = vmax.f32 %v1705_v13, 0.0 }
 0x1c5   :  { %v7117_v35 = vpop.xlane.xlu1 %2023  ;;  %v7122_v18 = vpop.xlane.xlu0 %2215  ;;  %v2307_v41 = vsel %vm8696_vm1, %v1957_v52, 0.0  ;;  %v1898_v56 = vmul.f32 %v6564_v47, %v1763_v26  ;;  %v1708_v54 = vadd.f32 %v6548_v14, %v1573_v31  ;;  %v2337_v15 = vsel %vm8696_vm1, %v1967_v58, 0.0 }
 0x1c6   :  { %v1966_v30 = vmul.f32 %v6564_v47, %v1831_v60  ;;  %v1706_v24 = vadd.f32 %v6548_v14, %v1571_v44  ;;  %v1823_v40 = vmax.f32 %v1695_v48, 0.0  ;;  %v1572_v32 = vadd.f32 %v6666_v51, %v1339_v20 }
 0x1c7   :  { %v2130_v26 = vsel %vm8696_vm1, %v1898_v56, 0.0  ;;  %v1956_v22 = vmul.f32 %v6564_v47, %v1821_v3  ;;  %v1836_v13 = vmax.f32 %v1708_v54, 0.0  ;;  %v1968_v60 = vmul.f32 %v6564_v47, %v1833_v34 }
 0x1c8   :  { %2293 = vadd.xlane.f32.xlu1 %v2292_v46  ;;  %2332 = vadd.xlane.f32.xlu0 %v2331_v49  ;;  %v1574_v46 = vadd.f32 %v6666_v51, %v1349_v23  ;;  %v2334_v52 = vsel %vm8696_vm1, %v1966_v30, 0.0  ;;  %v1707_v20 = vadd.f32 %v6548_v14, %v1572_v32  ;;  %v1575_v23 = vadd.f32 %v5168_v17, %v6666_v51 }
 0x1c9   :  { %v7130_v36 = vpop.xlane.xlu1 %2197  ;;  %v7133_v12 = vpop.xlane.xlu0 %2050  ;;  %v2304_v3 = vsel %vm8696_vm1, %v1956_v22, 0.0  ;;  %v1958_v44 = vmul.f32 %v6564_v47, %v1823_v40  ;;  %v1971_v34 = vmul.f32 %v6564_v47, %v1836_v13  ;;  %v5257_v13 = vld [vmem:[%s8663_s6] ss:$0 sm:$0xff] }
 0x1cb   :  { %v2310_v17 = vsel %vm8696_vm1, %v1958_v44, 0.0  ;;  %v2349_v30 = vsel %vm8696_vm1, %v1971_v34, 0.0 }
 0x1cc   :  { %2134 = vadd.xlane.f32.xlu1 %v2133_v45  ;;  %2329 = vadd.xlane.f32.xlu0 %v2328_v19  ;;  %v1709_v45 = vadd.f32 %v6548_v14, %v1574_v46  ;;  %v1834_v19 = vmax.f32 %v1706_v24, 0.0  ;;  %v1835_v46 = vmax.f32 %v1707_v20, 0.0  ;;  %v5256_v14 = vld [vmem:[%s8662_s5] ss:$0 sm:$0xff] }
 0x1cd   :  { %v7143_v63 = vpop.xlane.xlu1 %2032  ;;  %v7147_v21 = vpop.xlane.xlu0 %2047  ;;  %v1710_v51 = vadd.f32 %v5256_v14, %v1575_v23 }
 0x1ce   :  { %v1837_v48 = vmax.f32 %v1709_v45, 0.0  ;;  %v1970_v45 = vmul.f32 %v5257_v13, %v1835_v46 }
 0x1d0   :  { %2308 = vadd.xlane.f32.xlu1 %v2307_v41  ;;  %2338 = vadd.xlane.f32.xlu0 %v2337_v15  ;;  %v2340_v41 = vsel %vm8696_vm1, %v1968_v60, 0.0  ;;  %v1969_v15 = vmul.f32 %v6564_v47, %v1834_v19  ;;  %v1972_v24 = vmul.f32 %v6564_v47, %v1837_v48  ;;  %v2346_v19 = vsel %vm8696_vm1, %v1970_v45, 0.0 }
 0x1d1   :  { %v7156_v42 = vpop.xlane.xlu1 %2206  ;;  %v7159_v49 = vpop.xlane.xlu0 %2056 }
 0x1d2   :  { %v2343_v22 = vsel %vm8696_vm1, %v1969_v15, 0.0 }
 0x1d4   :  { %2131 = vadd.xlane.f32.xlu1 %v2130_v26  ;;  %2335 = vadd.xlane.f32.xlu0 %v2334_v52  ;;  %v1838_v26 = vmax.f32 %v1710_v51, 0.0  ;;  %v2352_v52 = vsel %vm8696_vm1, %v1972_v24, 0.0 }
 0x1d5   :  { %v7167_v31 = vpop.xlane.xlu1 %2029  ;;  %v7169_v58 = vpop.xlane.xlu0 %2230 }
 0x1d6   :  { %v1973_v20 = vmul.f32 %v5257_v13, %v1838_v26 }
 0x1d8   :  { %2305 = vadd.xlane.f32.xlu1 %v2304_v3  ;;  %2341 = vadd.xlane.f32.xlu0 %v2340_v41  ;;  %v2355_v44 = vsel %vm8696_vm1, %v1973_v20, 0.0  ;;  %vm8700_vm1 = vcmask 1041409  }
 0x1d9   :  { %v7177_v56 = vpop.xlane.xlu1 %2203  ;;  %v7179_v54 = vpop.xlane.xlu0 %2053 }
 0x1dc   :  { %2311 = vadd.xlane.f32.xlu1 %v2310_v17  ;;  %2350 = vadd.xlane.f32.xlu0 %v2349_v30 }
 0x1dd   :  { %v7188_v40 = vpop.xlane.xlu1 %2044  ;;  %v7190_v32 = vpop.xlane.xlu0 %2227 }
 0x1e0   :  { %2344 = vadd.xlane.f32.xlu1 %v2343_v22  ;;  %2353 = vadd.xlane.f32.xlu0 %v2352_v52 }
 0x1e1   :  { %v7197_v60 = vpop.xlane.xlu1 %2218  ;;  %v7199_v47 = vpop.xlane.xlu0 %2062 }
 0x1e2   :  { %8734 = vst [vmem:[#allocation20_spill] sm:$0xff] %v7199_v47 }
 0x1e4   :  { %2347 = vadd.xlane.f32.xlu1 %v2346_v19 }
 0x1e5   :  { %v7202_v23 = vpop.xlane.xlu1 %2041  ;;  %v7204_v3 = vpop.xlane.xlu0 %2236 }
 0x1e6   :  { %8735 = vst [vmem:[#allocation21_spill] sm:$0xff] %v7204_v3 }
 0x1e8   :  { %2356 = vadd.xlane.f32.xlu1 %v2355_v44 }
 0x1e9   :  { %v7207_v48 = vpop.xlane.xlu1 %2224  ;;  %v7209_v41 = vpop.xlane.xlu0 %2059 }
 0x1ed   :  { %v7211_v34 = vpop.xlane.xlu1 %2221  ;;  %v7213_v46 = vpop.xlane.xlu0 %2233 }
 0x1ee   :  { %8736 = vst [vmem:[#allocation22_spill] sm:$0xff] %v7213_v46 }
 0x1f1   :  { %v7215_v14 = vpop.xlane.xlu1 %2074  ;;  %v7217_v51 = vpop.xlane.xlu0 %2068 }
 0x1f2   :  { %8737 = vst [vmem:[#allocation23_spill] sm:$0xff] %v7217_v51 }
 0x1f5   :  { %v7219_v17 = vpop.xlane.xlu1 %2080  ;;  %v7221_v15 = vpop.xlane.xlu0 %2242 }
 0x1f6   :  { %8738 = vst [vmem:[#allocation24_spill] sm:$0xff] %v7221_v15 }
 0x1f9   :  { %v7223_v30 = vpop.xlane.xlu1 %2254  ;;  %v7225_v24 = vpop.xlane.xlu0 %2065 }
 0x1fa   :  { %8739 = vst [vmem:[#allocation25_spill] sm:$0xff] %v7223_v30  ;;  %8740 = vst [vmem:[#allocation26_spill] sm:$0xff] %v7225_v24 }
 0x1fd   :  { %v7227_v26 = vpop.xlane.xlu1 %2083  ;;  %v7229_v22 = vpop.xlane.xlu0 %2239 }
 0x1fe   :  { %8741 = vst [vmem:[#allocation27_spill] sm:$0xff] %v7229_v22 }
 0x201   :  { %v7231_v13 = vpop.xlane.xlu1 %2257  ;;  %v7233_v45 = vpop.xlane.xlu0 %2248 }
 0x202   :  { %8742 = vst [vmem:[#allocation28_spill] sm:$0xff] %v7231_v13  ;;  %8743 = vst [vmem:[#allocation29_spill] sm:$0xff] %v7233_v45 }
 0x205   :  { %v7235_v52 = vpop.xlane.xlu1 %2092  ;;  %v2072_v19 = vpop.xlane.xlu0 %2071 }
 0x209   :  { %v7237_v20 = vpop.xlane.xlu1 %2266  ;;  %v7239_v44 = vpop.xlane.xlu0 %2245 }
 0x20a   :  { %8744 = vst [vmem:[#allocation30_spill] sm:$0xff] %v7237_v20  ;;  %8745 = vst [vmem:[#allocation31_spill] sm:$0xff] %v7239_v44 }
 0x20d   :  { %v7241_v16 = vpop.xlane.xlu1 %2098  ;;  %v2078_v4 = vpop.xlane.xlu0 %2077 }
 0x20e   :  { %8746 = vst [vmem:[#allocation32_spill] sm:$0xff] %v7241_v16 }
 0x211   :  { %v7243_v43 = vpop.xlane.xlu1 %2272  ;;  %v7245_v30 = vpop.xlane.xlu0 %2251 }
 0x212   :  { %8747 = vst [vmem:[#allocation33_spill] sm:$0xff] %v7243_v43  ;;  %8748 = vst [vmem:[#allocation34_spill] sm:$0xff] %v7245_v30 }
 0x215   :  { %v7247_v15 = vpop.xlane.xlu1 %2095  ;;  %v7249_v51 = vpop.xlane.xlu0 %2086 }
 0x216   :  { %8749 = vst [vmem:[#allocation35_spill] sm:$0xff] %v7247_v15 }
 0x219   :  { %v7251_v13 = vpop.xlane.xlu1 %2104  ;;  %v7253_v45 = vpop.xlane.xlu0 %2260 }
 0x21a   :  { %8750 = vst [vmem:[#allocation36_spill] sm:$0xff] %v7251_v13  ;;  %8751 = vst [vmem:[#allocation37_spill] sm:$0xff] %v7253_v45 }
 0x21d   :  { %v7255_v24 = vpop.xlane.xlu1 %2278  ;;  %v7257_v22 = vpop.xlane.xlu0 %2089 }
 0x21e   :  { %8752 = vst [vmem:[#allocation38_spill] sm:$0xff] %v7255_v24 }
 0x221   :  { %v7259_v44 = vpop.xlane.xlu1 %2101  ;;  %v7261_v16 = vpop.xlane.xlu0 %2263 }
 0x222   :  { %8753 = vst [vmem:[#allocation39_spill] sm:$0xff] %v7259_v44  ;;  %v2601_v44 = vrot.slane %v7117_v35, %v6580_v1 }
 0x225   :  { %v7263_v46 = vpop.xlane.xlu1 %2275  ;;  %v7265_v43 = vpop.xlane.xlu0 %2269 }
 0x226   :  { %8754 = vst [vmem:[#allocation40_spill] sm:$0xff] %v7263_v46  ;;  %v2610_v46 = vrot.slane %v7167_v31, %v6820_v50 }
 0x229   :  { %v7267_v30 = vpop.xlane.xlu1 %2110  ;;  %v7269_v3 = vpop.xlane.xlu0 %2122 }
 0x22a   :  { %8755 = vst [vmem:[#allocation41_spill] sm:$0xff] %v7267_v30  ;;  %8756 = vst [vmem:[#allocation42_spill] sm:$0xff] %v7269_v3  ;;  %v2605_v30 = vrot.slane %v7090_v0, %v6575_v39 }
 0x22d   :  { %v7271_v47 = vpop.xlane.xlu1 %2284  ;;  %v7273_v13 = vpop.xlane.xlu0 %2128 }
 0x22e   :  { %8757 = vst [vmem:[#allocation43_spill] sm:$0xff] %v7271_v47  ;;  %8758 = vst [vmem:[#allocation44_spill] sm:$0xff] %v7273_v13  ;;  %v2606_v47 = vsel %vm2498_vm2, %v2605_v30, %v2601_v44 }
 0x22f   :  { %v2611_v13 = vsel %vm8697_vm3, %v2610_v46, %v2606_v47  ;;  %v2630_v47 = vrot.slane %v7202_v23, %v6929_v59  ;;  %v2625_v46 = vrot.slane %v7047_v33, %v6830_v55  ;;  %v2635_v23 = vrot.slane %v7188_v40, %v6936_v9 }
 0x230   :  { %v2684_v33 = vrot.slane %v7215_v14, %v6575_v39  ;;  %v2926_v40 = vrot.slane %v7211_v34, %v6820_v50 }
 0x231   :  { %v7275_v45 = vpop.xlane.xlu1 %2107  ;;  %v7277_v24 = vpop.xlane.xlu0 %2302 }
 0x232   :  { %8759 = vst [vmem:[#allocation45_spill] sm:$0xff] %v7275_v45  ;;  %8760 = vst [vmem:[#allocation46_spill] sm:$0xff] %v7277_v24  ;;  %v2615_v24 = vrot.slane %v7143_v63, %v6808_v29  ;;  %v2877_v63 = vrot.slane %v7069_v28, %v6939_v53 }
 0x234   :  { %v2616_v31 = vsel %vm8698_vm4, %v2615_v24, %v2611_v13  ;;  %v2878_v28 = vsel %vm2547_vm9, %v2877_v63, %v7059_v25  ;;  %v8763_v25 = vld [vmem:[#allocation9_spill] sm:$0xff]  ;;  %v2640_v63 = vrot.slane %v7147_v21, %v6939_v53 }
 0x235   :  { %v7283_v15 = vpop.xlane.xlu1 %2281  ;;  %v7287_v3 = vpop.xlane.xlu0 %2125 }
 0x236   :  { %8761 = vst [vmem:[#allocation47_spill] sm:$0xff] %v7283_v15  ;;  %v2620_v15 = vrot.slane %v7094_v5, %v6817_v62  ;;  %v2680_v5 = vrot.slane %v2072_v19, %v6580_v1  ;;  %v2921_v19 = vrot.slane %v7197_v60, %v6575_v39  ;;  %v2917_v60 = vrot.slane %v7122_v18, %v6580_v1 }
 0x237   :  { %v2645_v18 = vrot.slane %v7133_v12, %v6942_v8  ;;  %v2892_v12 = vrot.slane %v7104_v7, %v6953_v6 }
 0x238   :  { %v2621_v30 = vsel %vm8699_vm5, %v2620_v15, %v2616_v31  ;;  %v2689_v15 = vrot.slane %v2078_v4, %v6820_v50  ;;  %v2887_v31 = vrot.slane %v7130_v36, %v6960_v10  ;;  %v2882_v4 = vrot.slane %v7012_v57, %v6942_v8 }
 0x239   :  { %v7291_v45 = vpop.xlane.xlu1 %2116  ;;  %v7295_v35 = vpop.xlane.xlu0 %2299  ;;  %v2626_v24 = vsel %vm2526_vm6, %v2625_v46, %v2621_v30  ;;  %v2685_v14 = vsel %vm2498_vm2, %v2684_v33, %v2680_v5  ;;  %v2694_v33 = vrot.slane %v7219_v17, %v6808_v29  ;;  %v2922_v21 = vsel %vm2498_vm2, %v2921_v19, %v2917_v60  ;;  %v8767_v60 = vld [vmem:[#allocation13_spill] sm:$0xff] }
 0x23a   :  { %8762 = vst [vmem:[#allocation48_spill] sm:$0xff] %v7295_v35  ;;  %v2631_v35 = vsel %vm2533_vm7, %v2630_v47, %v2626_v24  ;;  %v2690_v57 = vsel %vm8697_vm3, %v2689_v15, %v2685_v14  ;;  %v2883_v5 = vsel %vm2554_vm10, %v2882_v4, %v2878_v28  ;;  %v2897_v24 = vrot.slane %v7177_v56, %v6970_v37 }
 0x23b   :  { %v2636_v47 = vsel %vm2540_vm8, %v2635_v23, %v2631_v35  ;;  %v8764_v35 = vld [vmem:[#allocation11_spill] sm:$0xff]  ;;  %v2888_v36 = vsel %vm2561_vm11, %v2887_v31, %v2883_v5  ;;  %v2927_v23 = vsel %vm8697_vm3, %v2926_v40, %v2922_v21  ;;  %v2695_v28 = vsel %vm8698_vm4, %v2694_v33, %v2690_v57 }
 0x23c   :  { %v2641_v15 = vsel %vm2547_vm9, %v2640_v63, %v2636_v47  ;;  %v2704_v17 = vrot.slane %v7249_v51, %v6830_v55  ;;  %v2931_v19 = vrot.slane %v7207_v48, %v6808_v29  ;;  %v2699_v4 = vrot.slane %v7227_v26, %v6817_v62  ;;  %v8766_v47 = vld [vmem:[#allocation12_spill] sm:$0xff]  ;;  %v8768_v63 = vld [vmem:[#allocation14_spill] sm:$0xff]  ;;  %v8769_v21 = vld [vmem:[#allocation15_spill] sm:$0xff] }
 0x23d   :  { %v7300_v20 = vpop.xlane.xlu1 %2290  ;;  %v7302_v0 = vpop.xlane.xlu0 %2314  ;;  %v2709_v56 = vrot.slane %v7257_v22, %v6929_v59  ;;  %v2646_v7 = vsel %vm2554_vm10, %v2645_v18, %v2641_v15  ;;  %v2893_v5 = vsel %vm2568_vm12, %v2892_v12, %v2888_v36  ;;  %v2650_v48 = vrot.slane %v7179_v54, %v6960_v10  ;;  %v8770_v36 = vld [vmem:[#allocation16_spill] sm:$0xff] }
 0x23e   :  { %v2932_v26 = vsel %vm8698_vm4, %v2931_v19, %v2927_v23  ;;  %v2700_v22 = vsel %vm8699_vm5, %v2699_v4, %v2695_v28  ;;  %v2898_v51 = vsel %vm2575_vm13, %v2897_v24, %v2893_v5  ;;  %v2936_v57 = vrot.slane %v7190_v32, %v6817_v62  ;;  %v8771_v19 = vld [vmem:[#allocation17_spill] sm:$0xff]  ;;  %v8779_v24 = vld [vmem:[#allocation32_spill] sm:$0xff] }
 0x23f   :  { %v2705_v18 = vsel %vm2526_vm6, %v2704_v17, %v2700_v22  ;;  %v2902_v23 = vrot.slane %v7156_v42, %v6963_v11  ;;  %v2651_v28 = vsel %vm2561_vm11, %v2650_v48, %v2646_v7  ;;  %v2655_v32 = vrot.slane %v7159_v49, %v6953_v6 }
 0x240   :  { %v2710_v12 = vsel %vm2533_vm7, %v2709_v56, %v2705_v18  ;;  %v2937_v17 = vsel %vm8699_vm5, %v2936_v57, %v2932_v26  ;;  %v2714_v4 = vrot.slane %v7235_v52, %v6936_v9  ;;  %v2912_v5 = vrot.slane %v7074_v27, %v7038_v2  ;;  %v8774_v18 = vld [vmem:[#allocation35_spill] sm:$0xff] }
 0x241   :  { %v7311_v44 = vpop.xlane.xlu1 %2113  ;;  %v7315_v13 = vpop.xlane.xlu0 %2320  ;;  %v2941_v42 = vrot.slane %v7169_v58, %v6830_v55  ;;  %v2903_v7 = vsel %vm2582_vm14, %v2902_v23, %v2898_v51  ;;  %v2996_v56 = vrot.slane %v7261_v16, %v6580_v1  ;;  %v2907_v49 = vrot.slane %v7108_v61, %v7016_v38  ;;  %v8773_v16 = vld [vmem:[#allocation30_spill] sm:$0xff] }
 0x242   :  { %v2656_v57 = vsel %vm2568_vm12, %v2655_v32, %v2651_v28  ;;  %v2715_v52 = vsel %vm2540_vm8, %v2714_v4, %v2710_v12  ;;  %v3005_v27 = vrot.slane %v7265_v43, %v6820_v50  ;;  %v2660_v58 = vrot.slane %v7209_v41, %v6970_v37  ;;  %v8775_v28 = vld [vmem:[#allocation20_spill] sm:$0xff]  ;;  %v8776_v43 = vld [vmem:[#allocation21_spill] sm:$0xff]  ;;  %v8777_v4 = vld [vmem:[#allocation22_spill] sm:$0xff] }
 0x243   :  { %v2942_v51 = vsel %vm2526_vm6, %v2941_v42, %v2937_v17  ;;  %v3000_v22 = vrot.slane %v8773_v16, %v6575_v39  ;;  %v2719_v61 = vrot.slane %v8774_v18, %v6939_v53  ;;  %v2908_v23 = vsel %vm2589_vm15, %v2907_v49, %v2903_v7  ;;  %v8778_v49 = vld [vmem:[#allocation27_spill] sm:$0xff] }
 0x244   :  { %v2665_v12 = vrot.slane %v8775_v28, %v6963_v11  ;;  %v2951_v32 = vrot.slane %v8776_v43, %v6936_v9  ;;  %v2946_v54 = vrot.slane %v8777_v4, %v6929_v59  ;;  %v2661_v41 = vsel %vm2575_vm13, %v2660_v58, %v2656_v57  ;;  %v8780_v57 = vld [vmem:[#allocation26_spill] sm:$0xff] }
 0x245   :  { %v7329_v30 = vpop.xlane.xlu1 %2287  ;;  %v7337_v46 = vpop.xlane.xlu0 %2317  ;;  %v3001_v17 = vsel %vm2498_vm2, %v3000_v22, %v2996_v56  ;;  %v2720_v42 = vsel %vm2547_vm9, %v2719_v61, %v2715_v52  ;;  %v2956_v28 = vrot.slane %v8778_v49, %v6939_v53  ;;  %v2724_v43 = vrot.slane %v8779_v24, %v6942_v8  ;;  %v8781_v52 = vld [vmem:[#allocation33_spill] sm:$0xff]  ;;  %v8784_v61 = vld [vmem:[#allocation18_spill] sm:$0xff] }
 0x246   :  { %v2947_v7 = vsel %vm2533_vm7, %v2946_v54, %v2942_v51  ;;  %v3006_v40 = vsel %vm8697_vm3, %v3005_v27, %v3001_v17  ;;  %v2670_v56 = vrot.slane %v8780_v57, %v7016_v38  ;;  %v3010_v58 = vrot.slane %v8781_v52, %v6808_v29  ;;  %v8783_v54 = vld [vmem:[#allocation42_spill] sm:$0xff]  ;;  %v8785_v57 = vld [vmem:[#allocation23_spill] sm:$0xff] }
 0x247   :  { %v2763_v51 = vrot.slane %v8783_v54, %v6575_v39  ;;  %v2666_v24 = vsel %vm2582_vm14, %v2665_v12, %v2661_v41  ;;  %v2725_v27 = vsel %vm2554_vm10, %v2724_v43, %v2720_v42  ;;  %v7465_v17 = vsel %vm2596_vm0, %v2912_v5, %v2908_v23  ;;  %v8787_v12 = vld [vmem:[#allocation31_spill] sm:$0xff]  ;;  %v8788_v5 = vld [vmem:[#allocation40_spill] sm:$0xff] }
 0x248   :  { %v2952_v52 = vsel %vm2540_vm8, %v2951_v32, %v2947_v7  ;;  %v2966_v41 = vrot.slane %v8787_v12, %v6960_v10  ;;  %v3015_v23 = vrot.slane %v8788_v5, %v6817_v62  ;;  %v2768_v42 = vrot.slane %v7287_v3, %v6820_v50  ;;  %v8793_v12 = vld [vmem:[#allocation47_spill] sm:$0xff] }
 0x249   :  { %v7358_v14 = vpop.xlane.xlu1 %2296  ;;  %v7366_v31 = vpop.xlane.xlu0 %2326  ;;  %v2957_v49 = vsel %vm2547_vm9, %v2956_v28, %v2952_v52  ;;  %v8791_v28 = vld [vmem:[#allocation45_spill] sm:$0xff]  ;;  %v3025_v3 = vrot.slane %v8793_v12, %v6929_v59 }
 0x24d   :  { %v2120_v33 = vpop.xlane.xlu1 %2119  ;;  %v7394_v15 = vpop.xlane.xlu0 %2323 }
 0x24e   :  { %v2759_v16 = vrot.slane %v2120_v33, %v6580_v1  ;;  %v8782_v33 = vld [vmem:[#allocation39_spill] sm:$0xff] }
 0x24f   :  { %v2729_v22 = vrot.slane %v8782_v33, %v6960_v10  ;;  %v3011_v33 = vsel %vm8698_vm4, %v3010_v58, %v3006_v40  ;;  %v8790_v40 = vld [vmem:[#allocation24_spill] sm:$0xff]  ;;  %v2739_v58 = vrot.slane %v8791_v28, %v6970_v37 }
 0x250   :  { %v2764_v34 = vsel %vm2498_vm2, %v2763_v51, %v2759_v16  ;;  %v2961_v32 = vrot.slane %v8790_v40, %v6942_v8  ;;  %v2671_v16 = vsel %vm2589_vm15, %v2670_v56, %v2666_v24  ;;  %v8792_v51 = vld [vmem:[#allocation36_spill] sm:$0xff]  ;;  %v3016_v52 = vsel %vm8699_vm5, %v3015_v23, %v3011_v33  ;;  %v8797_v33 = vld [vmem:[#allocation34_spill] sm:$0xff] }
 0x251   :  { %v7416_v48 = vpop.xlane.xlu1 %2293  ;;  %v7424_v26 = vpop.xlane.xlu0 %2332  ;;  %v2730_v7 = vsel %vm2561_vm11, %v2729_v22, %v2725_v27  ;;  %v2769_v5 = vsel %vm8697_vm3, %v2768_v42, %v2764_v34  ;;  %v8795_v22 = vld [vmem:[#allocation38_spill] sm:$0xff]  ;;  %v8796_v27 = vld [vmem:[#allocation44_spill] sm:$0xff]  ;;  %v2976_v23 = vrot.slane %v8797_v33, %v6970_v37  ;;  %vm3153_vm3 = vcmask 1042434  }
 0x252   :  { %8772 = vst [vmem:[#allocation9_spill] sm:$0xff] %v7424_v26  ;;  %v2675_v26 = vrot.slane %v8785_v57, %v7038_v2  ;;  %v2734_v57 = vrot.slane %v8792_v51, %v6953_v6  ;;  %v2962_v56 = vsel %vm2554_vm10, %v2961_v32, %v2957_v49  ;;  %v3020_v24 = vrot.slane %v8795_v22, %v6830_v55 }
 0x253   :  { %v2773_v28 = vrot.slane %v8796_v27, %v6808_v29  ;;  %v2967_v51 = vsel %vm2561_vm11, %v2966_v41, %v2962_v56  ;;  %v2749_v56 = vrot.slane %v7311_v44, %v7016_v38  ;;  %v8800_v44 = vld [vmem:[#allocation25_spill] sm:$0xff] }
 0x254   :  { %v2735_v12 = vsel %vm2568_vm12, %v2734_v57, %v2730_v7  ;;  %v3021_v42 = vsel %vm2526_vm6, %v3020_v24, %v3016_v52  ;;  %v3035_v7 = vrot.slane %v7329_v30, %v6939_v53  ;;  %v8799_v52 = vld [vmem:[#allocation43_spill] sm:$0xff] }
 0x255   :  { %v2135_v18 = vpop.xlane.xlu1 %2134  ;;  %v7450_v4 = vpop.xlane.xlu0 %2329  ;;  %v2740_v49 = vsel %vm2575_vm13, %v2739_v58, %v2735_v12  ;;  %v2774_v22 = vsel %vm8698_vm4, %v2773_v28, %v2769_v5  ;;  %v3026_v41 = vsel %vm2533_vm7, %v3025_v3, %v3021_v42  ;;  %v3030_v24 = vrot.slane %v8799_v52, %v6936_v9 }
 0x256   :  { %v2783_v32 = vrot.slane %v2135_v18, %v6830_v55  ;;  %vm3155_vm4 = vcmask 1043459   ;;  %v2676_v3 = vsel %vm2596_vm0, %v2675_v26, %v2671_v16  ;;  %v2981_v5 = vrot.slane %v8800_v44, %v6963_v11 }
 0x257   :  { %v8801_v28 = vrot.slane %v8763_v25, %v6929_v59  ;;  %v3031_v42 = vsel %vm2540_vm8, %v3030_v24, %v3026_v41  ;;  %v8802_v26 = vrot.slane %v8764_v35, %v6936_v9  ;;  %v3045_v25 = vrot.slane %v7416_v48, %v6960_v10 }
 0x258   :  { %v2754_v35 = vrot.slane %v7291_v45, %v7038_v2 }
 0x259   :  { %v7472_v54 = vpop.xlane.xlu1 %2308  ;;  %v7481_v43 = vpop.xlane.xlu0 %2338 }
 0x25a   :  { %8786 = vst [vmem:[#allocation11_spill] sm:$0xff] %v7472_v54  ;;  %8789 = vst [vmem:[#allocation12_spill] sm:$0xff] %v7481_v43  ;;  %v8794_v54 = vld [vmem:[#allocation29_spill] sm:$0xff] }
 0x25b   :  { %v2971_v40 = vrot.slane %v8794_v54, %v6953_v6 }
 0x25d   :  { %v2132_v43 = vpop.xlane.xlu1 %2131  ;;  %v7506_v34 = vpop.xlane.xlu0 %2335  ;;  %v2972_v30 = vsel %vm2568_vm12, %v2971_v40, %v2967_v51  ;;  %v3036_v40 = vsel %vm2547_vm9, %v3035_v7, %v3031_v42  ;;  %v8803_v51 = vrot.slane %v8766_v47, %v6939_v53  ;;  %v8805_v7 = vrot.slane %v8767_v60, %v6942_v8 }
 0x25e   :  { %v2778_v54 = vrot.slane %v2132_v43, %v6817_v62  ;;  %v8798_v43 = vld [vmem:[#allocation41_spill] sm:$0xff]  ;;  %v2977_v12 = vsel %vm2575_vm13, %v2976_v23, %v2972_v30  ;;  %v3084_v60 = vrot.slane %v7337_v46, %v6820_v50  ;;  %v3050_v50 = vrot.slane %v7358_v14, %v6953_v6 }
 0x25f   :  { %v2744_v58 = vrot.slane %v8798_v43, %v6963_v11  ;;  %v2982_v47 = vsel %vm2582_vm14, %v2981_v5, %v2977_v12  ;;  %v3079_v43 = vrot.slane %v7302_v0, %v6575_v39  ;;  %v3089_v39 = vrot.slane %v7315_v13, %v6808_v29 }
 0x260   :  { %v2779_v57 = vsel %vm8699_vm5, %v2778_v54, %v2774_v22  ;;  %vm3157_vm5 = vcmask 1044484   ;;  %v8804_v22 = vld [vmem:[#allocation19_spill] sm:$0xff]  ;;  %v3094_v46 = vrot.slane %v7394_v15, %v6817_v62  ;;  %v8810_v29 = vrot.slane %v8770_v36, %v6963_v11 }
 0x261   :  { %v2784_v18 = vsel %vm2526_vm6, %v2783_v32, %v2779_v57  ;;  %v7524_v27 = vpop.xlane.xlu1 %2305  ;;  %v2745_v54 = vsel %vm2582_vm14, %v2744_v58, %v2740_v49  ;;  %v2342_v49 = vpop.xlane.xlu0 %2341  ;;  %v3152_v41 = vsel %vm8700_vm1, %v2676_v3, %v8804_v22  ;;  %v8806_v58 = vrot.slane %v8769_v21, %v6960_v10 }
 0x262   :  { %v2789_v33 = vsel %vm2533_vm7, %v8801_v28, %v2784_v18  ;;  %v2750_v32 = vsel %vm2589_vm15, %v2749_v56, %v2745_v54  ;;  %v3040_v56 = vrot.slane %v7300_v20, %v6942_v8  ;;  %v8807_v18 = vrot.slane %v8768_v63, %v6953_v6  ;;  %v8814_v54 = vld [vmem:[#allocation10_spill] sm:$0xff] }
 0x263   :  { %v2794_v16 = vsel %vm2540_vm8, %v8802_v26, %v2789_v33  ;;  %v2755_v20 = vsel %vm2596_vm0, %v2754_v35, %v2750_v32  ;;  %vm8809_vm1 = vcmask 195712   ;;  %v8812_v14 = vrot.slane %v8784_v61, %v7016_v38 }
 0x264   :  { %v2799_v23 = vsel %vm2547_vm9, %v8803_v51, %v2794_v16  ;;  %v3041_v24 = vsel %vm2554_vm10, %v3040_v56, %v3036_v40  ;;  %v3154_v30 = vsel %vm3153_vm3, %v2755_v20, %v3152_v41  ;;  %v3104_v36 = vrot.slane %v7450_v4, %v6929_v59  ;;  %v8817_v16 = vld [vmem:[#allocation9_spill] sm:$0xff]  ;;  %v8819_v41 = vld [vmem:[#allocation12_spill] sm:$0xff] }
 0x265   :  { %v2804_v48 = vsel %vm2554_vm10, %v8805_v7, %v2799_v23  ;;  %v2312_v57 = vpop.xlane.xlu1 %2311  ;;  %v3046_v0 = vsel %vm2561_vm11, %v3045_v25, %v3041_v24  ;;  %v2351_v28 = vpop.xlane.xlu0 %2350  ;;  %v8815_v42 = vrot.slane %v8814_v54, %v7038_v2  ;;  %v3109_v61 = vrot.slane %v8817_v16, %v6936_v9  ;;  %v8818_v25 = vld [vmem:[#allocation37_spill] sm:$0xff] }
 0x266   :  { %v2809_v52 = vsel %vm2561_vm11, %v8806_v58, %v2804_v48  ;;  %v3075_v45 = vrot.slane %v2312_v57, %v6580_v1  ;;  %v8808_v1 = vrot.slane %v8771_v19, %v6970_v37  ;;  %v3099_v19 = vrot.slane %v7366_v31, %v6830_v55  ;;  %v8816_v31 = vld [vmem:[#allocation48_spill] sm:$0xff] }
 0x267   :  { %v2814_v3 = vsel %vm2568_vm12, %v8807_v18, %v2809_v52  ;;  %v3051_v15 = vsel %vm2568_vm12, %v3050_v50, %v3046_v0  ;;  %v3055_v26 = vrot.slane %v8816_v31, %v6970_v37  ;;  %v2991_v59 = vrot.slane %v8818_v25, %v7038_v2  ;;  %v8820_v48 = vld [vmem:[#allocation28_spill] sm:$0xff] }
 0x268   :  { %v3080_v21 = vsel %vm2498_vm2, %v3079_v43, %v3075_v45  ;;  %v2819_v44 = vsel %vm2575_vm13, %v8808_v1, %v2814_v3  ;;  %vm8811_vm2 = vcmask 261312   ;;  %v3114_v4 = vrot.slane %v7506_v34, %v6939_v53  ;;  %v8821_v53 = vld [vmem:[#allocation46_spill] sm:$0xff] }
 0x269   :  { %v3085_v63 = vsel %vm8809_vm1, %v3084_v60, %v3080_v21  ;;  %v2345_v5 = vpop.xlane.xlu1 %2344  ;;  %v2824_v13 = vsel %vm2582_vm14, %v8810_v29, %v2819_v44  ;;  %vm8813_vm1 = vcmask 326912   ;;  %v3119_v35 = vrot.slane %v8819_v41, %v6942_v8  ;;  %v2354_v58 = vpop.xlane.xlu0 %2353  ;;  %v8823_v44 = vld [vmem:[#allocation8_spill] sm:$0xff] }
 0x26a   :  { %v3090_v33 = vsel %vm8811_vm2, %v3089_v39, %v3085_v63  ;;  %v2829_v62 = vsel %vm2589_vm15, %v8812_v14, %v2824_v13  ;;  %v3056_v9 = vsel %vm2575_vm13, %v3055_v26, %v3051_v15  ;;  %v3065_v56 = vrot.slane %v7524_v27, %v7016_v38 }
 0x26b   :  { %v3095_v12 = vsel %vm8813_vm1, %v3094_v46, %v3090_v33  ;;  %v2834_v55 = vsel %vm2596_vm0, %v8815_v42, %v2829_v62  ;;  %v2986_v57 = vrot.slane %v8820_v48, %v7016_v38  ;;  %v3060_v34 = vrot.slane %v8821_v53, %v6963_v11  ;;  %v8825_v42 = vld [vmem:[#allocation7_spill] sm:$0xff] }
 0x26c   :  { %v3100_v32 = vsel %vm2526_vm6, %v3099_v19, %v3095_v12  ;;  %v3156_v40 = vsel %vm3155_vm4, %v2834_v55, %v3154_v30  ;;  %v3124_v43 = vrot.slane %v2342_v49, %v6960_v10  ;;  %v3129_v52 = vrot.slane %v2345_v5, %v6953_v6  ;;  %v8822_v6 = vld [vmem:[#allocation11_spill] sm:$0xff] }
 0x26d   :  { %v3105_v51 = vsel %vm2533_vm7, %v3104_v36, %v3100_v32  ;;  %v2348_v23 = vpop.xlane.xlu1 %2347  ;;  %v3158_v22 = vsel %vm3157_vm5, %v7465_v17, %v3156_v40  ;;  %vm3159_vm6 = vcmask 1045509   ;;  %vm3161_vm7 = vcmask 1046534   ;;  %v8824_v36 = vld [vmem:[#allocation6_spill] sm:$0xff] }
 0x26e   :  { %v3110_v7 = vsel %vm2540_vm8, %v3109_v61, %v3105_v51  ;;  %v2987_v27 = vsel %vm2589_vm15, %v2986_v57, %v2982_v47  ;;  %v3061_v45 = vsel %vm2582_vm14, %v3060_v34, %v3056_v9  ;;  %v3134_v60 = vrot.slane %v2348_v23, %v6970_v37 }
 0x26f   :  { %v3115_v17 = vsel %vm2547_vm9, %v3114_v4, %v3110_v7  ;;  %v2992_v10 = vsel %vm2596_vm0, %v2991_v59, %v2987_v27  ;;  %v3066_v49 = vsel %vm2589_vm15, %v3065_v56, %v3061_v45  ;;  %v3139_v18 = vrot.slane %v2351_v28, %v6963_v11 }
 0x270   :  { %v3120_v8 = vsel %vm2554_vm10, %v3119_v35, %v3115_v17  ;;  %v3070_v39 = vrot.slane %v8822_v6, %v7038_v2  ;;  %v3144_v47 = vrot.slane %v2354_v58, %v7016_v38  ;;  %v3160_v21 = vsel %vm3159_vm6, %v2992_v10, %v3158_v22 }
 0x271   :  { %v3125_v20 = vsel %vm2561_vm11, %v3124_v43, %v3120_v8  ;;  %v2357_v24 = vpop.xlane.xlu1 %2356  ;;  %vm3163_vm8 = vcmask 1047559   ;;  %vm2360_vm9 = vcmp.lt.s32.totalorder %v8823_v44, 8  ;;  %v3249_v12 = vsub.s32 1, %v8824_v36 }
 0x272   :  { %v3130_v3 = vsel %vm2568_vm12, %v3129_v52, %v3125_v20  ;;  %v3149_v1 = vrot.slane %v2357_v24, %v7038_v2  ;;  %v3071_v11 = vsel %vm2596_vm0, %v3070_v39, %v3066_v49  ;;  %v3316_v54 = vsub.s32 2, %v8824_v36 }
 0x273   :  { %v3135_v0 = vsel %vm2575_vm13, %v3134_v60, %v3130_v3  ;;  %v3162_v63 = vsel %vm3161_vm7, %v3071_v11, %v3160_v21  ;;  %v3383_v16 = vsub.s32 3, %v8824_v36  ;;  %v3450_v32 = vsub.s32 4, %v8824_v36  ;;  %v4162_v3 = vld [vmem:[%s8665_s8 + $0x18] sm:$0xff] }
 0x274   :  { %v3140_v37 = vsel %vm2582_vm14, %v3139_v18, %v3135_v0  ;;  %v3517_v25 = vsub.s32 5, %v8824_v36  ;;  %v3584_v4 = vsub.s32 6, %v8824_v36  ;;  %v3651_v23 = vsub.s32 7, %v8824_v36  ;;  %5170 = vmatpush3.msra.mxu0 %v4162_v3 }
 0x275   :  { %v3145_v50 = vsel %vm2589_vm15, %v3144_v47, %v3140_v37  ;;  %v8826_v47 = vmov 0.0  }
 0x276   :  { %v3150_v46 = vsel %vm2596_vm0, %v3149_v1, %v3145_v50  ;;  %5171 = vmatprep.subr.mxu0 %v8826_v47  ;;  %vm8827_vm0 = vcmask 261120  }
 0x277   :  { %v3164_v38 = vsel %vm3163_vm8, %v3150_v46, %v3162_v63  ;;  %vm8828_vm10 = vmmov %vm8827_vm0 }
 0x278   :  { %v3166_v5 = vsel %vm2360_vm9, %v3164_v38, -1e+30  ;;  %vm8829_vm11 = vmmov %vm8827_vm0 }
 0x279   :  { %3167 = vmax.xlane.f32.xlu0 %v3166_v5  ;;  %vm8830_vm12 = vmmov %vm8827_vm0 }
 0x27a   :  { %vm8831_vm13 = vmmov %vm8827_vm0 }
 0x27b   :  { %vm8832_vm14 = vmmov %vm8827_vm0 }
 0x27c   :  { %vm8833_vm15 = vmmov %vm8827_vm0 }
 0x27d   :  { %vm8834_vm2 = vmmov %vm8827_vm0 }
 0x27e   :  { %vm8835_vm1 = vmmov %vm8827_vm0 }
 0x27f   :  { %vm8836_vm9 = vmmov %vm8827_vm0 }
 0x302   :  { %v3168_v29 = vpop.xlane.xlu0 %3167 }
 0x303   :  { %v3169_v13 = vsub.f32 %v3166_v5, %v3168_v29  ;;  %v5258_v5 = vld [vmem:[%s8661_s0 + $0x8] sm:$0xff] }
 0x305   :  { %v3170_v30 = vmul.f32 1.442695, %v3169_v13  ;;  %v5259_v13 = vld [vmem:[%s8661_s0] sm:$0xff] }
 0x307   :  { %5238 = vpow2.f32 %v3170_v30 }
 0x314   :  { %v5239_v2 = vpop.eup %5238 }
 0x315   :  { %3172 = vadd.xlane.f32.xlu1 %v5239_v2 }
 0x39e   :  { %v3173_v19 = vpop.xlane.xlu1 %3172 }
 0x39f   :  { %5240 = vrcp.f32 %v3173_v19 }
 0x3ac   :  { %v5241_v28 = vpop.eup %5240 }
 0x3ad   :  { %v3175_v33 = vmul.f32 %v5241_v28, %v3173_v19 }
 0x3af   :  { %v3176_v14 = vsub.f32 2.0, %v3175_v33 }
 0x3b1   :  { %v3177_v62 = vmul.f32 %v5241_v28, %v3176_v14  ;;  %v5261_v28 = vld [vmem:[%s8661_s0 + $0x88] sm:$0xff] }
 0x3b3   :  { %v3178_v15 = vmul.f32 %v5239_v2, %v3177_v62  ;;  %v5260_v2 = vld [vmem:[%s8661_s0 + $0x80] sm:$0xff] }
 0x3b5   :  { %3179 = vst [vmem:[%s8664_s17] sm:$0xff] %v3178_v15  ;;  %v7662_v55 = vrot.slane %v3178_v15, %v8825_v42  ;;  %v7666_v31 = vrot.slane %v3178_v15, %v3249_v12  ;;  %v7668_v26 = vrot.slane %v3178_v15, %v3316_v54  ;;  %v7675_v61 = vrot.slane %v3178_v15, %v3383_v16  ;;  %v5262_v54 = vld [vmem:[%s8661_s0 + $0x10] sm:$0xff]  ;;  %v5263_v16 = vld [vmem:[%s8661_s0 + $0x108] sm:$0xff] }
 0x3b6   :  { %v7682_v40 = vrot.slane %v3178_v15, %v3450_v32  ;;  %v7689_v59 = vrot.slane %v3178_v15, %v3517_v25  ;;  %v7696_v51 = vrot.slane %v3178_v15, %v3584_v4  ;;  %v7705_v22 = vrot.slane %v3178_v15, %v3651_v23  ;;  %v4161_v15 = vld [vmem:[%s8665_s8 + $0x10] sm:$0xff]  ;;  %v5264_v25 = vld [vmem:[%s8661_s0 + $0x100] sm:$0xff] }
 0x3b7   :  { %3189 = vbcast.lane.b32.xlu1 %v7662_v55, 264  ;;  %3185 = vbcast.lane.b32.xlu0 %v7662_v55, 256  ;;  %v5265_v23 = vld [vmem:[%s8661_s0 + $0x90] sm:$0xff] }
 0x3b8   :  { %5172 = vmatpush3.msra.mxu0 %v4161_v15 }
 0x3b9   :  { %5173 = vmatprep.subr.mxu0 %v8826_v47 }
 0x3bb   :  { %3252 = vbcast.lane.b32.xlu1 %v7666_v31, 256  ;;  %3319 = vbcast.lane.b32.xlu0 %v7668_v26, 256 }
 0x3bf   :  { %3256 = vbcast.lane.b32.xlu1 %v7666_v31, 264  ;;  %3193 = vbcast.lane.b32.xlu0 %v7662_v55, 272 }
 0x3c3   :  { %3323 = vbcast.lane.b32.xlu1 %v7668_v26, 264  ;;  %3386 = vbcast.lane.b32.xlu0 %v7675_v61, 256 }
 0x3c7   :  { %3260 = vbcast.lane.b32.xlu1 %v7666_v31, 272  ;;  %3327 = vbcast.lane.b32.xlu0 %v7668_v26, 272 }
 0x3cb   :  { %3390 = vbcast.lane.b32.xlu1 %v7675_v61, 264  ;;  %3457 = vbcast.lane.b32.xlu0 %v7682_v40, 264 }
 0x3cf   :  { %3453 = vbcast.lane.b32.xlu1 %v7682_v40, 256  ;;  %3264 = vbcast.lane.b32.xlu0 %v7666_v31, 280 }
 0x3d3   :  { %3197 = vbcast.lane.b32.xlu1 %v7662_v55, 280  ;;  %3520 = vbcast.lane.b32.xlu0 %v7689_v59, 256 }
 0x3d7   :  { %3394 = vbcast.lane.b32.xlu1 %v7675_v61, 272  ;;  %3331 = vbcast.lane.b32.xlu0 %v7668_v26, 280 }
 0x3db   :  { %3524 = vbcast.lane.b32.xlu1 %v7689_v59, 264  ;;  %3587 = vbcast.lane.b32.xlu0 %v7696_v51, 256 }
 0x3df   :  { %3461 = vbcast.lane.b32.xlu1 %v7682_v40, 272  ;;  %3201 = vbcast.lane.b32.xlu0 %v7662_v55, 288 }
 0x3e3   :  { %3591 = vbcast.lane.b32.xlu1 %v7696_v51, 264  ;;  %3398 = vbcast.lane.b32.xlu0 %v7675_v61, 280 }
 0x3e7   :  { %3268 = vbcast.lane.b32.xlu1 %v7666_v31, 288  ;;  %3654 = vbcast.lane.b32.xlu0 %v7705_v22, 256 }
 0x3eb   :  { %3528 = vbcast.lane.b32.xlu1 %v7689_v59, 272  ;;  %3335 = vbcast.lane.b32.xlu0 %v7668_v26, 288 }
 0x3ef   :  { %3658 = vbcast.lane.b32.xlu1 %v7705_v22, 264  ;;  %3595 = vbcast.lane.b32.xlu0 %v7696_v51, 272 }
 0x3f3   :  { %3465 = vbcast.lane.b32.xlu1 %v7682_v40, 280  ;;  %3272 = vbcast.lane.b32.xlu0 %v7666_v31, 296 }
 0x3f7   :  { %3205 = vbcast.lane.b32.xlu1 %v7662_v55, 296  ;;  %3532 = vbcast.lane.b32.xlu0 %v7689_v59, 280 }
 0x3fb   :  { %3402 = vbcast.lane.b32.xlu1 %v7675_v61, 288  ;;  %3339 = vbcast.lane.b32.xlu0 %v7668_v26, 296 }
 0x3ff   :  { %3662 = vbcast.lane.b32.xlu1 %v7705_v22, 272  ;;  %3599 = vbcast.lane.b32.xlu0 %v7696_v51, 280 }
 0x403   :  { %3469 = vbcast.lane.b32.xlu1 %v7682_v40, 288  ;;  %3276 = vbcast.lane.b32.xlu0 %v7666_v31, 304 }
 0x407   :  { %3209 = vbcast.lane.b32.xlu1 %v7662_v55, 304  ;;  %3536 = vbcast.lane.b32.xlu0 %v7689_v59, 288 }
 0x40b   :  { %3406 = vbcast.lane.b32.xlu1 %v7675_v61, 296  ;;  %3343 = vbcast.lane.b32.xlu0 %v7668_v26, 304 }
 0x40f   :  { %3666 = vbcast.lane.b32.xlu1 %v7705_v22, 280  ;;  %3603 = vbcast.lane.b32.xlu0 %v7696_v51, 288 }
 0x413   :  { %3473 = vbcast.lane.b32.xlu1 %v7682_v40, 296  ;;  %3280 = vbcast.lane.b32.xlu0 %v7666_v31, 312 }
 0x417   :  { %3213 = vbcast.lane.b32.xlu1 %v7662_v55, 312  ;;  %3540 = vbcast.lane.b32.xlu0 %v7689_v59, 296 }
 0x41b   :  { %3410 = vbcast.lane.b32.xlu1 %v7675_v61, 304  ;;  %3347 = vbcast.lane.b32.xlu0 %v7668_v26, 312 }
 0x41f   :  { %3670 = vbcast.lane.b32.xlu1 %v7705_v22, 288  ;;  %3607 = vbcast.lane.b32.xlu0 %v7696_v51, 296 }
 0x423   :  { %3477 = vbcast.lane.b32.xlu1 %v7682_v40, 304  ;;  %3284 = vbcast.lane.b32.xlu0 %v7666_v31, 320 }
 0x427   :  { %3217 = vbcast.lane.b32.xlu1 %v7662_v55, 320  ;;  %3544 = vbcast.lane.b32.xlu0 %v7689_v59, 304 }
 0x429   :  { %v7741_v41 = vpop.permute.xlu1 %3189  ;;  %v7743_v35 = vpop.permute.xlu0 %3185 }
 0x42a   :  { %v3717_v29 = vmul.f32 %v5258_v5, %v7741_v41  ;;  %v3716_v30 = vmul.f32 %v5259_v13, %v7743_v35  ;;  %v5266_v35 = vld [vmem:[%s8661_s0 + $0x110] sm:$0xff]  ;;  %v5268_v13 = vld [vmem:[%s8661_s0 + $0x188] sm:$0xff] }
 0x42b   :  { %3414 = vbcast.lane.b32.xlu1 %v7675_v61, 312  ;;  %3351 = vbcast.lane.b32.xlu0 %v7668_v26, 320 }
 0x42c   :  { %v3845_v36 = vsel %vm8827_vm0, %v3717_v29, 0.0  ;;  %v3844_v12 = vsel %vm8828_vm10, %v3716_v30, 0.0  ;;  %v5267_v29 = vld [vmem:[%s8661_s0 + $0x180] sm:$0xff]  ;;  %vm8837_vm10 = vmmov %vm8827_vm0 }
 0x42d   :  { %v7747_v9 = vpop.permute.xlu1 %3252  ;;  %v7749_v56 = vpop.permute.xlu0 %3319 }
 0x42e   :  { %v3732_v19 = vmul.f32 %v5260_v2, %v7747_v9  ;;  %v3748_v4 = vmul.f32 %v5264_v25, %v7749_v56 }
 0x42f   :  { %3674 = vbcast.lane.b32.xlu1 %v7705_v22, 296  ;;  %3611 = vbcast.lane.b32.xlu0 %v7696_v51, 304 }
 0x430   :  { %v3881_v56 = vsel %vm8829_vm11, %v3732_v19, 0.0  ;;  %v3918_v2 = vsel %vm8833_vm15, %v3748_v4, 0.0  ;;  %vm8838_vm11 = vmmov %vm8827_vm0 }
 0x431   :  { %v7753_v7 = vpop.permute.xlu1 %3256  ;;  %v7755_v48 = vpop.permute.xlu0 %3193  ;;  %vm8842_vm15 = vmmov %vm8827_vm0 }
 0x432   :  { %v3733_v33 = vmul.f32 %v5261_v28, %v7753_v7  ;;  %v3718_v42 = vmul.f32 %v5262_v54, %v7755_v48  ;;  %v3846_v7 = vadd.f32 %v3845_v36, %v3844_v12  ;;  %v5269_v28 = vld [vmem:[%s8661_s0 + $0x200] sm:$0xff]  ;;  %v5271_v12 = vld [vmem:[%s8661_s0 + $0x18] sm:$0xff] }
 0x433   :  { %3481 = vbcast.lane.b32.xlu1 %v7682_v40, 312  ;;  %3288 = vbcast.lane.b32.xlu0 %v7666_v31, 328 }
 0x434   :  { %v3882_v48 = vsel %vm8830_vm12, %v3733_v33, 0.0  ;;  %v3847_v3 = vsel %vm8831_vm13, %v3718_v42, 0.0  ;;  %vm8839_vm12 = vmmov %vm8827_vm0 }
 0x435   :  { %v7759_v57 = vpop.permute.xlu1 %3323  ;;  %v7761_v53 = vpop.permute.xlu0 %3386  ;;  %vm8840_vm13 = vmmov %vm8827_vm0 }
 0x436   :  { %v3749_v32 = vmul.f32 %v5263_v16, %v7759_v57 }
 0x437   :  { %3221 = vbcast.lane.b32.xlu1 %v7662_v55, 328  ;;  %3548 = vbcast.lane.b32.xlu0 %v7689_v59, 312 }
 0x438   :  { %v3919_v5 = vsel %vm8832_vm14, %v3749_v32, 0.0  ;;  %v5273_v32 = vld [vmem:[%s8661_s0 + $0x208] sm:$0xff]  ;;  %vm8841_vm14 = vmmov %vm8827_vm0 }
 0x439   :  { %v7765_v34 = vpop.permute.xlu1 %3260  ;;  %v7767_v43 = vpop.permute.xlu0 %3327  ;;  %v3920_v16 = vadd.f32 %v3919_v5, %v3918_v2 }
 0x43a   :  { %v3734_v41 = vmul.f32 %v5265_v23, %v7765_v34  ;;  %v3750_v9 = vmul.f32 %v5266_v35, %v7767_v43  ;;  %v3764_v43 = vmul.f32 %v5267_v29, %v7761_v53  ;;  %v5270_v53 = vld [vmem:[%s8661_s0 + $0x98] sm:$0xff] }
 0x43b   :  { %3418 = vbcast.lane.b32.xlu1 %v7675_v61, 320  ;;  %3355 = vbcast.lane.b32.xlu0 %v7668_v26, 328 }
 0x43c   :  { %v3884_v19 = vsel %vm8834_vm2, %v3734_v41, 0.0  ;;  %v3921_v36 = vsel %vm8835_vm1, %v3750_v9, 0.0  ;;  %vm8843_vm2 = vmmov %vm8827_vm0 }
 0x43d   :  { %v7771_v17 = vpop.permute.xlu1 %3390  ;;  %v7773_v58 = vpop.permute.xlu0 %3457  ;;  %vm8844_vm1 = vmmov %vm8827_vm0 }
 0x43e   :  { %v3765_v30 = vmul.f32 %v5268_v13, %v7771_v17  ;;  %v3883_v17 = vadd.f32 %v3882_v48, %v3881_v56  ;;  %v3781_v25 = vmul.f32 %v5273_v32, %v7773_v58  ;;  %v5275_v48 = vld [vmem:[%s8661_s0 + $0x280] sm:$0xff]  ;;  %v5277_v13 = vld [vmem:[%s8661_s0 + $0x210] sm:$0xff] }
 0x43f   :  { %3678 = vbcast.lane.b32.xlu1 %v7705_v22, 304  ;;  %3615 = vbcast.lane.b32.xlu0 %v7696_v51, 312 }
 0x440   :  { %v3885_v41 = vadd.f32 %v3884_v19, %v3883_v17  ;;  %v3956_v35 = vsel %vm8827_vm0, %v3765_v30, 0.0  ;;  %v3993_v2 = vsel %vm8841_vm14, %v3781_v25, 0.0  ;;  %v5278_v19 = vld [vmem:[%s8661_s0 + $0x20] sm:$0xff]  ;;  %vm8850_vm14 = vmmov %vm8827_vm0 }
 0x441   :  { %v7777_v8 = vpop.permute.xlu1 %3453  ;;  %v7779_v52 = vpop.permute.xlu0 %3264 }
 0x442   :  { %v3780_v33 = vmul.f32 %v5269_v28, %v7777_v8  ;;  %v3735_v15 = vmul.f32 %v5270_v53, %v7779_v52  ;;  %v5272_v8 = vld [vmem:[%s8661_s0 + $0x190] sm:$0xff]  ;;  %v3848_v52 = vadd.f32 %v3847_v3, %v3846_v7  ;;  %v3922_v7 = vadd.f32 %v3921_v36, %v3920_v16 }
 0x443   :  { %3485 = vbcast.lane.b32.xlu1 %v7682_v40, 320  ;;  %3292 = vbcast.lane.b32.xlu0 %v7666_v31, 336 }
 0x444   :  { %v3992_v56 = vsel %vm8837_vm10, %v3780_v33, 0.0  ;;  %v3886_v58 = vsel %vm8838_vm11, %v3735_v15, 0.0  ;;  %v5279_v33 = vld [vmem:[%s8661_s0 + $0x308] sm:$0xff]  ;;  %vm8846_vm10 = vmmov %vm8827_vm0 }
 0x445   :  { %v7783_v27 = vpop.permute.xlu1 %3197  ;;  %v7785_v45 = vpop.permute.xlu0 %3520  ;;  %v3887_v17 = vadd.f32 %v3886_v58, %v3885_v41  ;;  %vm8847_vm11 = vmmov %vm8827_vm0 }
 0x446   :  { %v3719_v54 = vmul.f32 %v5271_v12, %v7783_v27  ;;  %v3955_v27 = vsel %vm8836_vm9, %v3764_v43, 0.0  ;;  %v3796_v3 = vmul.f32 %v5275_v48, %v7785_v45  ;;  %v5280_v12 = vld [vmem:[%s8661_s0 + $0x198] sm:$0xff]  ;;  %vm8845_vm9 = vmmov %vm8827_vm0 }
 0x447   :  { %3225 = vbcast.lane.b32.xlu1 %v7662_v55, 336  ;;  %3552 = vbcast.lane.b32.xlu0 %v7689_v59, 320  ;;  %v3957_v30 = vadd.f32 %v3956_v35, %v3955_v27  ;;  %v5283_v27 = vld [vmem:[%s8661_s0 + $0x290] sm:$0xff] }
 0x448   :  { %v3849_v5 = vsel %vm8839_vm12, %v3719_v54, 0.0  ;;  %vm8848_vm12 = vmmov %vm8827_vm0 }
 0x449   :  { %v7789_v20 = vpop.permute.xlu1 %3394  ;;  %v7791_v60 = vpop.permute.xlu0 %3331  ;;  %v3850_v54 = vadd.f32 %v3849_v5, %v3848_v52 }
 0x44a   :  { %v3766_v42 = vmul.f32 %v5272_v8, %v7789_v20  ;;  %v5274_v20 = vld [vmem:[%s8661_s0 + $0x118] sm:$0xff]  ;;  %v4029_v8 = vsel %vm8843_vm2, %v3796_v3, 0.0  ;;  %v5286_v3 = vld [vmem:[%s8661_s0 + $0x388] sm:$0xff]  ;;  %vm8852_vm2 = vmmov %vm8827_vm0 }
 0x44b   :  { %3422 = vbcast.lane.b32.xlu1 %v7675_v61, 328  ;;  %3359 = vbcast.lane.b32.xlu0 %v7668_v26, 336  ;;  %v3751_v9 = vmul.f32 %v5274_v20, %v7791_v60  ;;  %v5276_v60 = vld [vmem:[%s8661_s0 + $0x288] sm:$0xff] }
 0x44c   :  { %v3958_v29 = vsel %vm8840_vm13, %v3766_v42, 0.0  ;;  %vm8849_vm13 = vmmov %vm8827_vm0 }
 0x44d   :  { %v7795_v24 = vpop.permute.xlu1 %3524  ;;  %v7797_v10 = vpop.permute.xlu0 %3587  ;;  %v3923_v36 = vsel %vm8842_vm15, %v3751_v9, 0.0  ;;  %v3959_v42 = vadd.f32 %v3958_v29, %v3957_v30  ;;  %v5284_v9 = vld [vmem:[%s8661_s0 + $0x380] sm:$0xff]  ;;  %vm8851_vm15 = vmmov %vm8827_vm0 }
 0x44e   :  { %v3797_v43 = vmul.f32 %v5276_v60, %v7795_v24  ;;  %v3924_v41 = vadd.f32 %v3923_v36, %v3922_v7 }
 0x44f   :  { %3682 = vbcast.lane.b32.xlu1 %v7705_v22, 312  ;;  %3619 = vbcast.lane.b32.xlu0 %v7696_v51, 320 }
 0x450   :  { %v4030_v32 = vsel %vm8844_vm1, %v3797_v43, 0.0  ;;  %vm8853_vm1 = vmmov %vm8827_vm0 }
 0x451   :  { %v7801_v49 = vpop.permute.xlu1 %3461  ;;  %v7803_v18 = vpop.permute.xlu0 %3201  ;;  %v4031_v60 = vadd.f32 %v4030_v32, %v4029_v8  ;;  %v5292_v32 = vld [vmem:[%s8661_s0 + $0x1a0] sm:$0xff] }
 0x452   :  { %v3782_v45 = vmul.f32 %v5277_v13, %v7801_v49  ;;  %v3720_v28 = vmul.f32 %v5278_v19, %v7803_v18  ;;  %v3994_v49 = vadd.f32 %v3993_v2, %v3992_v56  ;;  %v5290_v19 = vld [vmem:[%s8661_s0 + $0xb0] sm:$0xff] }
 0x453   :  { %3489 = vbcast.lane.b32.xlu1 %v7682_v40, 328  ;;  %3296 = vbcast.lane.b32.xlu0 %v7666_v31, 344 }
 0x454   :  { %v3995_v25 = vsel %vm8845_vm9, %v3782_v45, 0.0  ;;  %v3851_v35 = vsel %vm8827_vm0, %v3720_v28, 0.0  ;;  %vm8854_vm9 = vmmov %vm8827_vm0 }
 0x455   :  { %v7810_v6 = vpop.permute.xlu1 %3591  ;;  %v7812_v39 = vpop.permute.xlu0 %3398  ;;  %v8023_v13 = vadd.f32 %v3995_v25, %v3994_v49  ;;  %v3852_v28 = vadd.f32 %v3851_v35, %v3850_v54 }
 0x456   :  { %v3813_v24 = vmul.f32 %v5279_v33, %v7810_v6  ;;  %v3767_v18 = vmul.f32 %v5280_v12, %v7812_v39  ;;  %v5281_v6 = vld [vmem:[%s8661_s0 + $0x300] sm:$0xff] }
 0x457   :  { %3229 = vbcast.lane.b32.xlu1 %v7662_v55, 344  ;;  %3556 = vbcast.lane.b32.xlu0 %v7689_v59, 328  ;;  %v3812_v16 = vmul.f32 %v5281_v6, %v7797_v10  ;;  %v5282_v39 = vld [vmem:[%s8661_s0 + $0xa0] sm:$0xff]  ;;  %v5291_v6 = vld [vmem:[%s8661_s0 + $0x298] sm:$0xff] }
 0x458   :  { %v4067_v20 = vsel %vm8846_vm10, %v3813_v24, 0.0  ;;  %v3960_v48 = vsel %vm8847_vm11, %v3767_v18, 0.0  ;;  %vm8855_vm10 = vmmov %vm8827_vm0 }
 0x459   :  { %v7817_v0 = vpop.permute.xlu1 %3268  ;;  %v7819_v21 = vpop.permute.xlu0 %3654  ;;  %v4066_v43 = vsel %vm8848_vm12, %v3812_v16, 0.0  ;;  %v3961_v24 = vadd.f32 %v3960_v48, %v3959_v42  ;;  %vm8856_vm11 = vmmov %vm8827_vm0 }
 0x45a   :  { %v3736_v52 = vmul.f32 %v5282_v39, %v7817_v0  ;;  %v3828_v56 = vmul.f32 %v5284_v9, %v7819_v21  ;;  %v5287_v21 = vld [vmem:[%s8661_s0 + $0xa8] sm:$0xff]  ;;  %v4068_v33 = vadd.f32 %v4067_v20, %v4066_v43  ;;  %vm8857_vm12 = vmmov %vm8827_vm0 }
 0x45b   :  { %3426 = vbcast.lane.b32.xlu1 %v7675_v61, 336  ;;  %3363 = vbcast.lane.b32.xlu0 %v7668_v26, 344  ;;  %v5295_v9 = vld [vmem:[%s8661_s0 + $0x128] sm:$0xff] }
 0x45c   :  { %v4103_v49 = vsel %vm8851_vm15, %v3828_v56, 0.0  ;;  %vm8860_vm15 = vmmov %vm8827_vm0 }
 0x45d   :  { %v7823_v37 = vpop.permute.xlu1 %3528  ;;  %v7825_v1 = vpop.permute.xlu0 %3335 }
 0x45e   :  { %v3798_v10 = vmul.f32 %v5283_v27, %v7823_v37  ;;  %v5285_v37 = vld [vmem:[%s8661_s0 + $0x120] sm:$0xff] }
 0x45f   :  { %3686 = vbcast.lane.b32.xlu1 %v7705_v22, 320  ;;  %3623 = vbcast.lane.b32.xlu0 %v7696_v51, 328  ;;  %v3752_v7 = vmul.f32 %v5285_v37, %v7825_v1  ;;  %v5288_v1 = vld [vmem:[%s8661_s0 + $0x310] sm:$0xff]  ;;  %v5294_v27 = vld [vmem:[%s8661_s0 + $0x2a0] sm:$0xff] }
 0x460   :  { %v4032_v30 = vsel %vm8850_vm14, %v3798_v10, 0.0  ;;  %vm8859_vm14 = vmmov %vm8827_vm0 }
 0x461   :  { %v7829_v44 = vpop.permute.xlu1 %3658  ;;  %v7831_v11 = vpop.permute.xlu0 %3595  ;;  %v3925_v18 = vsel %vm8852_vm2, %v3752_v7, 0.0  ;;  %v4033_v42 = vadd.f32 %v4032_v30, %v4031_v60  ;;  %v5296_v7 = vld [vmem:[%s8661_s0 + $0x218] sm:$0xff]  ;;  %v5298_v60 = vld [vmem:[%s8661_s0 + $0x1a8] sm:$0xff]  ;;  %vm8861_vm2 = vmmov %vm8827_vm0 }
 0x462   :  { %v3829_v5 = vmul.f32 %v5286_v3, %v7829_v44  ;;  %v3814_v45 = vmul.f32 %v5288_v1, %v7831_v11  ;;  %v3888_v44 = vsel %vm8849_vm13, %v3736_v52, 0.0  ;;  %v3926_v10 = vadd.f32 %v3925_v18, %v3924_v41  ;;  %v5297_v3 = vld [vmem:[%s8661_s0 + $0xb8] sm:$0xff]  ;;  %vm8858_vm13 = vmmov %vm8827_vm0 }
 0x463   :  { %3493 = vbcast.lane.b32.xlu1 %v7682_v40, 336  ;;  %3300 = vbcast.lane.b32.xlu0 %v7666_v31, 352  ;;  %v3889_v54 = vadd.f32 %v3888_v44, %v3887_v17 }
 0x464   :  { %v4104_v8 = vsel %vm8853_vm1, %v3829_v5, 0.0  ;;  %v4069_v16 = vsel %vm8827_vm0, %v3814_v45, 0.0  ;;  %v5299_v45 = vld [vmem:[%s8661_s0 + $0x130] sm:$0xff]  ;;  %vm8862_vm1 = vmmov %vm8827_vm0 }
 0x465   :  { %v7835_v50 = vpop.permute.xlu1 %3465  ;;  %v7837_v46 = vpop.permute.xlu0 %3272  ;;  %v8070_v35 = vadd.f32 %v4104_v8, %v4103_v49  ;;  %v5302_v8 = vld [vmem:[%s8661_s0 + $0x38] sm:$0xff] }
 0x466   :  { %v3737_v29 = vmul.f32 %v5287_v21, %v7837_v46  ;;  %v5289_v46 = vld [vmem:[%s8661_s0 + $0x28] sm:$0xff] }
 0x467   :  { %3233 = vbcast.lane.b32.xlu1 %v7662_v55, 352  ;;  %3560 = vbcast.lane.b32.xlu0 %v7689_v59, 336 }
 0x469   :  { %v7841_v63 = vpop.permute.xlu1 %3205  ;;  %v7843_v38 = vpop.permute.xlu0 %3532 }
 0x46a   :  { %v3721_v2 = vmul.f32 %v5289_v46, %v7841_v63  ;;  %v3890_v63 = vsel %vm8854_vm9, %v3737_v29, 0.0  ;;  %vm8863_vm9 = vmmov %vm8827_vm0 }
 0x46b   :  { %3430 = vbcast.lane.b32.xlu1 %v7675_v61, 344  ;;  %3367 = vbcast.lane.b32.xlu0 %v7668_v26, 352  ;;  %v3891_v20 = vadd.f32 %v3890_v63, %v3889_v54 }
 0x46c   :  { %v3853_v39 = vsel %vm8855_vm10, %v3721_v2, 0.0  ;;  %vm8864_vm10 = vmmov %vm8827_vm0 }
 0x46d   :  { %v7863_v14 = vpop.permute.xlu1 %3402  ;;  %v7865_v62 = vpop.permute.xlu0 %3339  ;;  %v3854_v21 = vadd.f32 %v3853_v39, %v3852_v28 }
 0x46e   :  { %v3768_v25 = vmul.f32 %v5292_v32, %v7863_v14  ;;  %v3753_v56 = vmul.f32 %v5295_v9, %v7865_v62  ;;  %v5305_v32 = vld [vmem:[%s8661_s0 + $0x320] sm:$0xff] }
 0x46f   :  { %3690 = vbcast.lane.b32.xlu1 %v7705_v22, 328  ;;  %3627 = vbcast.lane.b32.xlu0 %v7696_v51, 336 }
 0x470   :  { %v3962_v62 = vsel %vm8858_vm13, %v3768_v25, 0.0  ;;  %v3927_v2 = vsel %vm8862_vm1, %v3753_v56, 0.0  ;;  %vm8867_vm13 = vmmov %vm8827_vm0  ;;  %v5306_v56 = vld [vmem:[%s8661_s0 + $0x220] sm:$0xff] }
 0x471   :  { %v7897_v57 = vpop.permute.xlu1 %3662  ;;  %v7899_v34 = vpop.permute.xlu0 %3599  ;;  %v3963_v49 = vadd.f32 %v3962_v62, %v3961_v24  ;;  %vm8871_vm1 = vmmov %vm8827_vm0 }
 0x473   :  { %3497 = vbcast.lane.b32.xlu1 %v7682_v40, 344  ;;  %3304 = vbcast.lane.b32.xlu0 %v7666_v31, 360 }
 0x475   :  { %v7936_v4 = vpop.permute.xlu1 %3469  ;;  %v7938_v23 = vpop.permute.xlu0 %3276 }
 0x476   :  { %v3738_v11 = vmul.f32 %v5290_v19, %v7938_v23  ;;  %v3799_v23 = vmul.f32 %v5291_v6, %v7843_v38  ;;  %v5293_v38 = vld [vmem:[%s8661_s0 + $0x30] sm:$0xff] }
 0x477   :  { %3237 = vbcast.lane.b32.xlu1 %v7662_v55, 360  ;;  %3564 = vbcast.lane.b32.xlu0 %v7689_v59, 344 }
 0x478   :  { %v3892_v52 = vsel %vm8856_vm11, %v3738_v11, 0.0  ;;  %v4034_v41 = vsel %vm8857_vm12, %v3799_v23, 0.0  ;;  %vm8865_vm11 = vmmov %vm8827_vm0 }
 0x479   :  { %v7973_v53 = vpop.permute.xlu1 %3209  ;;  %v7975_v15 = vpop.permute.xlu0 %3536  ;;  %v3893_v29 = vadd.f32 %v3892_v52, %v3891_v20  ;;  %v4035_v46 = vadd.f32 %v4034_v41, %v4033_v42  ;;  %v5304_v42 = vld [vmem:[%s8661_s0 + $0x398] sm:$0xff]  ;;  %vm8866_vm12 = vmmov %vm8827_vm0 }
 0x47a   :  { %v3722_v17 = vmul.f32 %v5293_v38, %v7973_v53  ;;  %v3800_v14 = vmul.f32 %v5294_v27, %v7975_v15  ;;  %v8078_v53 = vadd.f32 %v4069_v16, %v4068_v33  ;;  %v3783_v15 = vmul.f32 %v5296_v7, %v7835_v50  ;;  %v5308_v7 = vld [vmem:[%s8661_s0 + $0x138] sm:$0xff] }
 0x47b   :  { %3434 = vbcast.lane.b32.xlu1 %v7675_v61, 352  ;;  %3371 = vbcast.lane.b32.xlu0 %v7668_v26, 360  ;;  %v3928_v38 = vadd.f32 %v3927_v2, %v3926_v10  ;;  %v5307_v10 = vld [vmem:[%s8661_s0 + $0x1b0] sm:$0xff] }
 0x47c   :  { %v3855_v50 = vsel %vm8859_vm14, %v3722_v17, 0.0  ;;  %v4036_v1 = vsel %vm8860_vm15, %v3800_v14, 0.0  ;;  %vm8868_vm14 = vmmov %vm8827_vm0 }
 0x47d   :  { %v8005_v58 = vpop.permute.xlu1 %3406  ;;  %v8007_v0 = vpop.permute.xlu0 %3343  ;;  %v3856_v23 = vadd.f32 %v3855_v50, %v3854_v21  ;;  %v4037_v54 = vadd.f32 %v4036_v1, %v4035_v46  ;;  %vm8869_vm15 = vmmov %vm8827_vm0 }
 0x47e   :  { %v3769_v43 = vmul.f32 %v5298_v60, %v8005_v58  ;;  %v3754_v44 = vmul.f32 %v5299_v45, %v8007_v0  ;;  %v5300_v58 = vld [vmem:[%s8661_s0 + $0x390] sm:$0xff]  ;;  %v5301_v0 = vld [vmem:[%s8661_s0 + $0x318] sm:$0xff] }
 0x47f   :  { %3694 = vbcast.lane.b32.xlu1 %v7705_v22, 336  ;;  %3631 = vbcast.lane.b32.xlu0 %v7696_v51, 344  ;;  %v3830_v19 = vmul.f32 %v5300_v58, %v7897_v57  ;;  %v3815_v18 = vmul.f32 %v5301_v0, %v7899_v34  ;;  %v5303_v57 = vld [vmem:[%s8661_s0 + $0x2a8] sm:$0xff]  ;;  %v5310_v58 = vld [vmem:[%s8661_s0 + $0x3a0] sm:$0xff] }
 0x480   :  { %v3964_v24 = vsel %vm8863_vm9, %v3769_v43, 0.0  ;;  %v3929_v16 = vsel %vm8827_vm0, %v3754_v44, 0.0  ;;  %vm8872_vm9 = vmmov %vm8827_vm0 }
 0x481   :  { %v8042_v36 = vpop.permute.xlu1 %3666  ;;  %v8044_v12 = vpop.permute.xlu0 %3603  ;;  %v4106_v17 = vsel %vm8866_vm12, %v3830_v19, 0.0  ;;  %v4071_v9 = vsel %vm8867_vm13, %v3815_v18, 0.0  ;;  %v3930_v21 = vadd.f32 %v3929_v16, %v3928_v38  ;;  %vm8875_vm12 = vmmov %vm8827_vm0 }
 0x482   :  { %v3831_v34 = vmul.f32 %v5304_v42, %v8042_v36  ;;  %v3816_v25 = vmul.f32 %v5305_v32, %v8044_v12  ;;  %v3784_v12 = vmul.f32 %v5306_v56, %v7936_v4  ;;  %v4107_v50 = vadd.f32 %v4106_v17, %v8070_v35  ;;  %vm8876_vm13 = vmmov %vm8827_vm0  ;;  %v5314_v17 = vld [vmem:[%s8661_s0 + $0x40] sm:$0xff] }
 0x483   :  { %3501 = vbcast.lane.b32.xlu1 %v7682_v40, 352  ;;  %3308 = vbcast.lane.b32.xlu0 %v7666_v31, 368  ;;  %v4072_v1 = vadd.f32 %v4071_v9, %v8078_v53 }
 0x484   :  { %v4108_v62 = vsel %vm8869_vm15, %v3831_v34, 0.0  ;;  %v3999_v2 = vsel %vm8827_vm0, %v3784_v12, 0.0  ;;  %vm8878_vm15 = vmmov %vm8827_vm0 }
 0x485   :  { %v8076_v48 = vpop.permute.xlu1 %3473  ;;  %v3281_v37 = vpop.permute.xlu0 %3280 }
 0x486   :  { %v3739_v5 = vmul.f32 %v5297_v3, %v3281_v37  ;;  %v3997_v3 = vsel %vm8868_vm14, %v3783_v15, 0.0  ;;  %vm8877_vm14 = vmmov %vm8827_vm0 }
 0x487   :  { %3241 = vbcast.lane.b32.xlu1 %v7662_v55, 368  ;;  %3568 = vbcast.lane.b32.xlu0 %v7689_v59, 352  ;;  %v3998_v35 = vadd.f32 %v3997_v3, %v8023_v13  ;;  %v4160_v13 = vld [vmem:[%s8665_s8 + $0x8] sm:$0xff]  ;;  %v5317_v3 = vld [vmem:[%s8661_s0 + $0x140] sm:$0xff] }
 0x488   :  { %v3894_v30 = vsel %vm8861_vm2, %v3739_v5, 0.0  ;;  %v3965_v5 = vadd.f32 %v3964_v24, %v3963_v49  ;;  %vm8870_vm2 = vmmov %vm8827_vm0  ;;  %v5313_v24 = vld [vmem:[%s8661_s0 + $0xc0] sm:$0xff]  ;;  %5174 = vmatpush3.msra.mxu0 %v4160_v13 }
 0x489   :  { %v8107_v11 = vadd.f32 %v3894_v30, %v3893_v29  ;;  %v3214_v28 = vpop.permute.xlu1 %3213  ;;  %v3541_v33 = vpop.permute.xlu0 %3540  ;;  %v4073_v4 = vsel %vm8870_vm2, %v3816_v25, 0.0  ;;  %v5309_v29 = vld [vmem:[%s8661_s0 + $0x228] sm:$0xff]  ;;  %5175 = vmatprep.subr.mxu0 %v8826_v47  ;;  %vm8879_vm2 = vmmov %vm8827_vm0 }
 0x48a   :  { %v3723_v63 = vmul.f32 %v5302_v8, %v3214_v28  ;;  %v3801_v6 = vmul.f32 %v5303_v57, %v3541_v33  ;;  %v3785_v60 = vmul.f32 %v5309_v29, %v8076_v48  ;;  %v5311_v48 = vld [vmem:[%s8661_s0 + $0x328] sm:$0xff]  ;;  %v4109_v33 = vadd.f32 %v4108_v62, %v4107_v50 }
 0x48b   :  { %3438 = vbcast.lane.b32.xlu1 %v7675_v61, 360  ;;  %3375 = vbcast.lane.b32.xlu0 %v7668_v26, 368  ;;  %v4074_v53 = vadd.f32 %v4073_v4, %v4072_v1  ;;  %v4000_v8 = vadd.f32 %v3999_v2, %v3998_v35  ;;  %v5318_v29 = vld [vmem:[%s8661_s0 + $0x3a8] sm:$0xff]  ;;  %v5320_v2 = vld [vmem:[%s8661_s0 + $0x238] sm:$0xff] }
 0x48c   :  { %v3857_v39 = vsel %vm8864_vm10, %v3723_v63, 0.0  ;;  %v4038_v52 = vsel %vm8865_vm11, %v3801_v6, 0.0  ;;  %vm8873_vm10 = vmmov %vm8827_vm0 }
 0x48d   :  { %v8134_v36 = vadd.f32 %v3857_v39, %v3856_v23  ;;  %v8136_v27 = vadd.f32 %v4038_v52, %v4037_v54  ;;  %v3411_v14 = vpop.permute.xlu1 %3410  ;;  %v3348_v20 = vpop.permute.xlu0 %3347  ;;  %v4001_v49 = vsel %vm8873_vm10, %v3785_v60, 0.0  ;;  %vm8874_vm11 = vmmov %vm8827_vm0  ;;  %v5312_v54 = vld [vmem:[%s8661_s0 + $0x230] sm:$0xff] }
 0x48e   :  { %v3770_v37 = vmul.f32 %v5307_v10, %v3411_v14  ;;  %v3755_v41 = vmul.f32 %v5308_v7, %v3348_v20  ;;  %v4002_v34 = vadd.f32 %v4001_v49, %v4000_v8  ;;  %v5316_v7 = vld [vmem:[%s8661_s0 + $0x1b8] sm:$0xff]  ;;  %vm8882_vm10 = vmmov %vm8827_vm0 }
 0x48f   :  { %3698 = vbcast.lane.b32.xlu1 %v7705_v22, 344  ;;  %3635 = vbcast.lane.b32.xlu0 %v7696_v51, 352 }
 0x490   :  { %v3966_v43 = vsel %vm8871_vm1, %v3770_v37, 0.0  ;;  %v3931_v15 = vsel %vm8872_vm9, %v3755_v41, 0.0  ;;  %vm8880_vm1 = vmmov %vm8827_vm0 }
 0x491   :  { %v3967_v45 = vadd.f32 %v3966_v43, %v3965_v5  ;;  %v3932_v44 = vadd.f32 %v3931_v15, %v3930_v21  ;;  %v3671_v30 = vpop.permute.xlu1 %3670  ;;  %v3608_v46 = vpop.permute.xlu0 %3607  ;;  %vm8881_vm9 = vmmov %vm8827_vm0  ;;  %v5319_v43 = vld [vmem:[%s8661_s0 + $0x330] sm:$0xff] }
 0x492   :  { %v3832_v19 = vmul.f32 %v5310_v58, %v3671_v30  ;;  %v3817_v28 = vmul.f32 %v5311_v48, %v3608_v46 }
 0x493   :  { %3505 = vbcast.lane.b32.xlu1 %v7682_v40, 360  ;;  %3312 = vbcast.lane.b32.xlu0 %v7666_v31, 376 }
 0x494   :  { %v4110_v0 = vsel %vm8874_vm11, %v3832_v19, 0.0  ;;  %v4075_v18 = vsel %vm8875_vm12, %v3817_v28, 0.0  ;;  %v5321_v19 = vld [vmem:[%s8661_s0 + $0xc8] sm:$0xff]  ;;  %vm8883_vm11 = vmmov %vm8827_vm0 }
 0x495   :  { %v4111_v63 = vadd.f32 %v4110_v0, %v4109_v33  ;;  %v4076_v57 = vadd.f32 %v4075_v18, %v4074_v53  ;;  %v3478_v6 = vpop.permute.xlu1 %3477  ;;  %v3285_v23 = vpop.permute.xlu0 %3284  ;;  %vm8884_vm12 = vmmov %vm8827_vm0  ;;  %v5322_v18 = vld [vmem:[%s8661_s0 + $0x48] sm:$0xff] }
 0x496   :  { %v3786_v31 = vmul.f32 %v5312_v54, %v3478_v6  ;;  %v3740_v42 = vmul.f32 %v5313_v24, %v3285_v23  ;;  %v5324_v24 = vld [vmem:[%s8661_s0 + $0x1c0] sm:$0xff] }
 0x497   :  { %3245 = vbcast.lane.b32.xlu1 %v7662_v55, 376  ;;  %3572 = vbcast.lane.b32.xlu0 %v7689_v59, 360  ;;  %v5315_v55 = vld [vmem:[%s8661_s0 + $0x2b0] sm:$0xff] }
 0x498   :  { %v4003_v16 = vsel %vm8876_vm13, %v3786_v31, 0.0  ;;  %v3896_v32 = vsel %vm8877_vm14, %v3740_v42, 0.0  ;;  %vm8885_vm13 = vmmov %vm8827_vm0  ;;  %v4159_v31 = vld [vmem:[%s8665_s8] sm:$0xff] }
 0x499   :  { %v4004_v25 = vadd.f32 %v4003_v16, %v4002_v34  ;;  %v3897_v39 = vadd.f32 %v3896_v32, %v8107_v11  ;;  %v3218_v52 = vpop.permute.xlu1 %3217  ;;  %v3545_v38 = vpop.permute.xlu0 %3544  ;;  %vm8886_vm14 = vmmov %vm8827_vm0  ;;  %5176 = vmatpush3.msra.mxu0 %v4159_v31  ;;  %v5337_v31 = vld [vmem:[%s8661_s0 + $0xd8] sm:$0xff] }
 0x49a   :  { %v3724_v14 = vmul.f32 %v5314_v17, %v3218_v52  ;;  %v3802_v20 = vmul.f32 %v5315_v55, %v3545_v38  ;;  %5180 = vmatprep.subr.mxu0 %v8826_v47  ;;  %v5326_v17 = vld [vmem:[%s8661_s0 + $0x3b0] sm:$0xff]  ;;  %v5327_v55 = vld [vmem:[%s8661_s0 + $0x338] sm:$0xff] }
 0x49b   :  { %3442 = vbcast.lane.b32.xlu1 %v7675_v61, 368  ;;  %3379 = vbcast.lane.b32.xlu0 %v7668_v26, 376 }
 0x49c   :  { %v3859_v9 = vsel %vm8878_vm15, %v3724_v14, 0.0  ;;  %v4040_v11 = vsel %vm8879_vm2, %v3802_v20, 0.0  ;;  %vm8887_vm15 = vmmov %vm8827_vm0 }
 0x49d   :  { %v3860_v56 = vadd.f32 %v3859_v9, %v8134_v36  ;;  %v4041_v12 = vadd.f32 %v4040_v11, %v8136_v27  ;;  %v3415_v10 = vpop.permute.xlu1 %3414  ;;  %v3352_v37 = vpop.permute.xlu0 %3351  ;;  %vm8888_vm2 = vmmov %vm8827_vm0 }
 0x49e   :  { %v3771_v41 = vmul.f32 %v5316_v7, %v3415_v10  ;;  %v3756_v26 = vmul.f32 %v5317_v3, %v3352_v37  ;;  %v5328_v37 = vld [vmem:[%s8661_s0 + $0x240] sm:$0xff] }
 0x49f   :  { %3702 = vbcast.lane.b32.xlu1 %v7705_v22, 352  ;;  %3639 = vbcast.lane.b32.xlu0 %v7696_v51, 360 }
 0x4a0   :  { %v3968_v36 = vsel %vm8880_vm1, %v3771_v41, 0.0  ;;  %v3933_v27 = vsel %vm8881_vm9, %v3756_v26, 0.0  ;;  %vm8889_vm1 = vmmov %vm8827_vm0  ;;  %v5329_v41 = vld [vmem:[%s8661_s0 + $0xd0] sm:$0xff] }
 0x4a1   :  { %v3969_v5 = vadd.f32 %v3968_v36, %v3967_v45  ;;  %v3934_v21 = vadd.f32 %v3933_v27, %v3932_v44  ;;  %v3675_v62 = vpop.permute.xlu1 %3674  ;;  %v3612_v4 = vpop.permute.xlu0 %3611  ;;  %vm8890_vm9 = vmmov %vm8827_vm0 }
 0x4a2   :  { %v3833_v60 = vmul.f32 %v5318_v29, %v3675_v62  ;;  %v3818_v15 = vmul.f32 %v5319_v43, %v3612_v4  ;;  %v5330_v4 = vld [vmem:[%s8661_s0 + $0x50] sm:$0xff] }
 0x4a3   :  { %3509 = vbcast.lane.b32.xlu1 %v7682_v40, 368  ;;  %3576 = vbcast.lane.b32.xlu0 %v7689_v59, 368 }
 0x4a4   :  { %v4112_v50 = vsel %vm8827_vm0, %v3833_v60, 0.0  ;;  %v4077_v1 = vsel %vm8882_vm10, %v3818_v15, 0.0  ;;  %vm8891_vm10 = vmmov %vm8827_vm0  ;;  %v5331_v60 = vld [vmem:[%s8661_s0 + $0x2c0] sm:$0xff] }
 0x4a5   :  { %v4113_v45 = vadd.f32 %v4112_v50, %v4111_v63  ;;  %v4078_v44 = vadd.f32 %v4077_v1, %v4076_v57  ;;  %v3482_v30 = vpop.permute.xlu1 %3481  ;;  %v3289_v46 = vpop.permute.xlu0 %3288  ;;  %v5323_v63 = vld [vmem:[%s8661_s0 + $0x2b8] sm:$0xff] }
 0x4a6   :  { %v3787_v58 = vmul.f32 %v5320_v2, %v3482_v30  ;;  %v3741_v48 = vmul.f32 %v5321_v19, %v3289_v46  ;;  %v5332_v30 = vld [vmem:[%s8661_s0 + $0x1c8] sm:$0xff]  ;;  %v5333_v2 = vld [vmem:[%s8661_s0 + $0x150] sm:$0xff] }
 0x4a7   :  { %3446 = vbcast.lane.b32.xlu1 %v7675_v61, 376  ;;  %3513 = vbcast.lane.b32.xlu0 %v7682_v40, 376 }
 0x4a8   :  { %v4005_v28 = vsel %vm8883_vm11, %v3787_v58, 0.0  ;;  %v3898_v35 = vsel %vm8884_vm12, %v3741_v48, 0.0  ;;  %vm8892_vm11 = vmmov %vm8827_vm0 }
 0x4a9   :  { %v4006_v33 = vadd.f32 %v4005_v28, %v4004_v25  ;;  %v3899_v53 = vadd.f32 %v3898_v35, %v3897_v39  ;;  %v3222_v49 = vpop.permute.xlu1 %3221  ;;  %v3549_v0 = vpop.permute.xlu0 %3548  ;;  %vm8893_vm12 = vmmov %vm8827_vm0 }
 0x4aa   :  { %v3725_v8 = vmul.f32 %v5322_v18, %v3222_v49  ;;  %v3803_v61 = vmul.f32 %v5323_v63, %v3549_v0  ;;  %v5334_v49 = vld [vmem:[%s8661_s0 + $0x3b8] sm:$0xff]  ;;  %v5335_v18 = vld [vmem:[%s8661_s0 + $0x340] sm:$0xff] }
 0x4ab   :  { %3706 = vbcast.lane.b32.xlu1 %v7705_v22, 360  ;;  %3580 = vbcast.lane.b32.xlu0 %v7689_v59, 376  ;;  %v5325_v59 = vld [vmem:[%s8661_s0 + $0x148] sm:$0xff] }
 0x4ac   :  { %v3861_v40 = vsel %vm8885_vm13, %v3725_v8, 0.0  ;;  %v4042_v57 = vsel %vm8886_vm14, %v3803_v61, 0.0  ;;  %vm8894_vm13 = vmmov %vm8827_vm0 }
 0x4ad   :  { %v3862_v6 = vadd.f32 %v3861_v40, %v3860_v56  ;;  %v4043_v23 = vadd.f32 %v4042_v57, %v4041_v12  ;;  %v3419_v13 = vpop.permute.xlu1 %3418  ;;  %v3356_v54 = vpop.permute.xlu0 %3355  ;;  %vm8895_vm14 = vmmov %vm8827_vm0 }
 0x4ae   :  { %v3772_v42 = vmul.f32 %v5324_v24, %v3419_v13  ;;  %v3757_v34 = vmul.f32 %v5325_v59, %v3356_v54  ;;  %v5336_v13 = vld [vmem:[%s8661_s0 + $0x248] sm:$0xff] }
 0x4af   :  { %3643 = vbcast.lane.b32.xlu1 %v7696_v51, 368  ;;  %3647 = vbcast.lane.b32.xlu0 %v7696_v51, 376 }
 0x4b0   :  { %v3970_v16 = vsel %vm8887_vm15, %v3772_v42, 0.0  ;;  %v3935_v32 = vsel %vm8888_vm2, %v3757_v34, 0.0  ;;  %vm8896_vm15 = vmmov %vm8827_vm0 }
 0x4b1   :  { %v3971_v25 = vadd.f32 %v3970_v16, %v3969_v5  ;;  %v3936_v39 = vadd.f32 %v3935_v32, %v3934_v21  ;;  %v3679_v52 = vpop.permute.xlu1 %3678  ;;  %v3616_v38 = vpop.permute.xlu0 %3615  ;;  %vm8897_vm2 = vmmov %vm8827_vm0 }
 0x4b2   :  { %v3834_v14 = vmul.f32 %v5326_v17, %v3679_v52  ;;  %v3819_v51 = vmul.f32 %v5327_v55, %v3616_v38  ;;  %v5339_v38 = vld [vmem:[%s8661_s0 + $0x2c8] sm:$0xff] }
 0x4b3   :  { %3710 = vbcast.lane.b32.xlu1 %v7705_v22, 368 }
 0x4b4   :  { %v4114_v20 = vsel %vm8889_vm1, %v3834_v14, 0.0  ;;  %v4079_v9 = vsel %vm8890_vm9, %v3819_v51, 0.0  ;;  %vm8898_vm1 = vmmov %vm8827_vm0 }
 0x4b5   :  { %v4115_v11 = vadd.f32 %v4114_v20, %v4113_v45  ;;  %v4080_v56 = vadd.f32 %v4079_v9, %v4078_v44  ;;  %v3486_v12 = vpop.permute.xlu1 %3485  ;;  %v3293_v10 = vpop.permute.xlu0 %3292  ;;  %vm8899_vm9 = vmmov %vm8827_vm0 }
 0x4b6   :  { %v3788_v7 = vmul.f32 %v5328_v37, %v3486_v12  ;;  %v3742_v3 = vmul.f32 %v5329_v41, %v3293_v10  ;;  %v5341_v10 = vld [vmem:[%s8661_s0 + $0x158] sm:$0xff] }
 0x4b7   :  { %3714 = vbcast.lane.b32.xlu1 %v7705_v22, 376 }
 0x4b8   :  { %v4007_v26 = vsel %vm8827_vm0, %v3788_v7, 0.0  ;;  %v3900_v36 = vsel %vm8891_vm10, %v3742_v3, 0.0  ;;  %vm8900_vm10 = vmmov %vm8827_vm0 }
 0x4b9   :  { %v4008_v27 = vadd.f32 %v4007_v26, %v4006_v33  ;;  %v3901_v5 = vadd.f32 %v3900_v36, %v3899_v53  ;;  %v3226_v21 = vpop.permute.xlu1 %3225  ;;  %v3553_v62 = vpop.permute.xlu0 %3552 }
 0x4ba   :  { %v3726_v29 = vmul.f32 %v5330_v4, %v3226_v21  ;;  %v3804_v43 = vmul.f32 %v5331_v60, %v3553_v62  ;;  %v5343_v62 = vld [vmem:[%s8661_s0 + $0x348] sm:$0xff] }
 0x4bc   :  { %v3863_v22 = vsel %vm8892_vm11, %v3726_v29, 0.0  ;;  %v4044_v15 = vsel %vm8893_vm12, %v3804_v43, 0.0  ;;  %vm8901_vm11 = vmmov %vm8827_vm0 }
 0x4bd   :  { %v3864_v50 = vadd.f32 %v3863_v22, %v3862_v6  ;;  %v4045_v1 = vadd.f32 %v4044_v15, %v4043_v23  ;;  %v3423_v45 = vpop.permute.xlu1 %3422  ;;  %v3360_v44 = vpop.permute.xlu0 %3359  ;;  %vm8902_vm12 = vmmov %vm8827_vm0 }
 0x4be   :  { %v3773_v46 = vmul.f32 %v5332_v30, %v3423_v45  ;;  %v3758_v58 = vmul.f32 %v5333_v2, %v3360_v44  ;;  %v5345_v44 = vld [vmem:[%s8661_s0 + $0xe0] sm:$0xff] }
 0x4c0   :  { %v3972_v19 = vsel %vm8894_vm13, %v3773_v46, 0.0  ;;  %v3937_v48 = vsel %vm8895_vm14, %v3758_v58, 0.0  ;;  %vm8903_vm13 = vmmov %vm8827_vm0 }
 0x4c1   :  { %v3973_v28 = vadd.f32 %v3972_v19, %v3971_v25  ;;  %v3938_v35 = vadd.f32 %v3937_v48, %v3936_v39  ;;  %v3683_v33 = vpop.permute.xlu1 %3682  ;;  %v3620_v53 = vpop.permute.xlu0 %3619  ;;  %v5338_v39 = vld [vmem:[%s8661_s0 + $0x58] sm:$0xff]  ;;  %vm8904_vm14 = vmmov %vm8827_vm0 }
 0x4c2   :  { %v3835_v0 = vmul.f32 %v5334_v49, %v3683_v33  ;;  %v3820_v8 = vmul.f32 %v5335_v18, %v3620_v53 }
 0x4c4   :  { %v4116_v63 = vsel %vm8896_vm15, %v3835_v0, 0.0  ;;  %v4081_v61 = vsel %vm8897_vm2, %v3820_v8, 0.0  ;;  %vm8905_vm15 = vmmov %vm8827_vm0  ;;  %v5347_v8 = vld [vmem:[%s8661_s0 + $0x1d8] sm:$0xff] }
 0x4c5   :  { %v4117_v40 = vadd.f32 %v4116_v63, %v4115_v11  ;;  %v4082_v57 = vadd.f32 %v4081_v61, %v4080_v56  ;;  %v3490_v6 = vpop.permute.xlu1 %3489  ;;  %v3297_v23 = vpop.permute.xlu0 %3296  ;;  %v5340_v56 = vld [vmem:[%s8661_s0 + $0x1d0] sm:$0xff]  ;;  %vm8906_vm2 = vmmov %vm8827_vm0 }
 0x4c6   :  { %v3789_v54 = vmul.f32 %v5336_v13, %v3490_v6  ;;  %v3743_v24 = vmul.f32 %v5337_v31, %v3297_v23 }
 0x4c8   :  { %v4009_v42 = vsel %vm8898_vm1, %v3789_v54, 0.0  ;;  %v3902_v59 = vsel %vm8899_vm9, %v3743_v24, 0.0  ;;  %vm8907_vm1 = vmmov %vm8827_vm0 }
 0x4c9   :  { %v4010_v34 = vadd.f32 %v4009_v42, %v4008_v27  ;;  %v3903_v16 = vadd.f32 %v3902_v59, %v3901_v5  ;;  %v3230_v32 = vpop.permute.xlu1 %3229  ;;  %v3557_v25 = vpop.permute.xlu0 %3556  ;;  %v5342_v5 = vld [vmem:[%s8661_s0 + $0x3c0] sm:$0xff]  ;;  %vm8908_vm9 = vmmov %vm8827_vm0 }
 0x4ca   :  { %v3727_v52 = vmul.f32 %v5338_v39, %v3230_v32  ;;  %v3805_v17 = vmul.f32 %v5339_v38, %v3557_v25 }
 0x4cc   :  { %v3865_v14 = vsel %vm8827_vm0, %v3727_v52, 0.0  ;;  %v4046_v55 = vsel %vm8900_vm10, %v3805_v17, 0.0  ;;  %v5348_v17 = vld [vmem:[%s8661_s0 + $0xe8] sm:$0xff]  ;;  %vm8909_vm10 = vmmov %vm8827_vm0 }
 0x4cd   :  { %v3866_v51 = vadd.f32 %v3865_v14, %v3864_v50  ;;  %v8314_v20 = vadd.f32 %v4046_v55, %v4045_v1  ;;  %v3427_v9 = vpop.permute.xlu1 %3426  ;;  %v3364_v11 = vpop.permute.xlu0 %3363  ;;  %v5344_v1 = vld [vmem:[%s8661_s0 + $0x250] sm:$0xff] }
 0x4ce   :  { %v3774_v12 = vmul.f32 %v5340_v56, %v3427_v9  ;;  %v3759_v37 = vmul.f32 %v5341_v10, %v3364_v11  ;;  %v5349_v55 = vld [vmem:[%s8661_s0 + $0xf0] sm:$0xff] }
 0x4d0   :  { %v3974_v7 = vsel %vm8901_vm11, %v3774_v12, 0.0  ;;  %v3939_v41 = vsel %vm8902_vm12, %v3759_v37, 0.0  ;;  %v5350_v12 = vld [vmem:[%s8661_s0 + $0x68] sm:$0xff]  ;;  %v5351_v37 = vld [vmem:[%s8661_s0 + $0x2d0] sm:$0xff]  ;;  %vm8910_vm11 = vmmov %vm8827_vm0 }
 0x4d1   :  { %v3975_v3 = vadd.f32 %v3974_v7, %v3973_v28  ;;  %v8324_v26 = vadd.f32 %v3939_v41, %v3938_v35  ;;  %v3687_v36 = vpop.permute.xlu1 %3686  ;;  %v3624_v27 = vpop.permute.xlu0 %3623  ;;  %v5346_v35 = vld [vmem:[%s8661_s0 + $0x60] sm:$0xff]  ;;  %vm8911_vm12 = vmmov %vm8827_vm0 }
 0x4d2   :  { %v3836_v21 = vmul.f32 %v5342_v5, %v3687_v36  ;;  %v3821_v4 = vmul.f32 %v5343_v62, %v3624_v27  ;;  %v5352_v41 = vld [vmem:[%s8661_s0 + $0x160] sm:$0xff]  ;;  %v5353_v27 = vld [vmem:[%s8661_s0 + $0x70] sm:$0xff] }
 0x4d4   :  { %v4118_v29 = vsel %vm8903_vm13, %v3836_v21, 0.0  ;;  %v4083_v60 = vsel %vm8904_vm14, %v3821_v4, 0.0  ;;  %v5354_v21 = vld [vmem:[%s8661_s0 + $0x3c8] sm:$0xff]  ;;  %vm8912_vm13 = vmmov %vm8827_vm0 }
 0x4d5   :  { %v8334_v43 = vadd.f32 %v4118_v29, %v4117_v40  ;;  %v8336_v22 = vadd.f32 %v4083_v60, %v4082_v57  ;;  %v3494_v15 = vpop.permute.xlu1 %3493  ;;  %v3301_v50 = vpop.permute.xlu0 %3300  ;;  %vm8913_vm14 = vmmov %vm8827_vm0 }
 0x4d6   :  { %v3790_v45 = vmul.f32 %v5344_v1, %v3494_v15  ;;  %v3744_v30 = vmul.f32 %v5345_v44, %v3301_v50  ;;  %v5355_v50 = vld [vmem:[%s8661_s0 + $0x168] sm:$0xff] }
 0x4d8   :  { %v4011_v46 = vsel %vm8905_vm15, %v3790_v45, 0.0  ;;  %v3904_v2 = vsel %vm8906_vm2, %v3744_v30, 0.0  ;;  %v5356_v45 = vld [vmem:[%s8661_s0 + $0xf8] sm:$0xff]  ;;  %vm8914_vm15 = vmmov %vm8827_vm0 }
 0x4d9   :  { %v8346_v58 = vadd.f32 %v4011_v46, %v4010_v34  ;;  %v3905_v19 = vadd.f32 %v3904_v2, %v3903_v16  ;;  %v3234_v48 = vpop.permute.xlu1 %3233  ;;  %v3561_v28 = vpop.permute.xlu0 %3560  ;;  %vm8915_vm2 = vmmov %vm8827_vm0 }
 0x4da   :  { %v3728_v33 = vmul.f32 %v5346_v35, %v3234_v48  ;;  %v3806_v7 = vmul.f32 %v5351_v37, %v3561_v28  ;;  %v5358_v35 = vld [vmem:[%s8661_s0 + $0x170] sm:$0xff] }
 0x4dc   :  { %v3867_v53 = vsel %vm8907_vm1, %v3728_v33, 0.0  ;;  %v4048_v30 = vsel %vm8911_vm12, %v3806_v7, 0.0  ;;  %vm8916_vm1 = vmmov %vm8827_vm0 }
 0x4dd   :  { %v3868_v49 = vadd.f32 %v3867_v53, %v3866_v51  ;;  %v3431_v0 = vpop.permute.xlu1 %3430  ;;  %v3368_v18 = vpop.permute.xlu0 %3367  ;;  %vm8920_vm12 = vmmov %vm8827_vm0 }
 0x4de   :  { %v3775_v63 = vmul.f32 %v5347_v8, %v3431_v0 }
 0x4e0   :  { %v3976_v61 = vsel %vm8908_vm9, %v3775_v63, 0.0  ;;  %vm8917_vm9 = vmmov %vm8827_vm0 }
 0x4e1   :  { %v8356_v40 = vadd.f32 %v3976_v61, %v3975_v3  ;;  %v3691_v57 = vpop.permute.xlu1 %3690  ;;  %v3628_v6 = vpop.permute.xlu0 %3627  ;;  %v3760_v3 = vmul.f32 %v5352_v41, %v3368_v18  ;;  %v5359_v18 = vld [vmem:[%s8661_s0 + $0x258] sm:$0xff] }
 0x4e2   :  { %v3837_v62 = vmul.f32 %v5354_v21, %v3691_v57 }
 0x4e3   :  { %v3941_v46 = vsel %vm8912_vm13, %v3760_v3, 0.0  ;;  %vm8921_vm13 = vmmov %vm8827_vm0 }
 0x4e4   :  { %v4120_v0 = vsel %vm8915_vm2, %v3837_v62, 0.0  ;;  %vm8924_vm2 = vmmov %vm8827_vm0 }
 0x4e5   :  { %v3498_v23 = vpop.permute.xlu1 %3497  ;;  %v3305_v13 = vpop.permute.xlu0 %3304 }
 0x4e6   :  { %v3745_v14 = vmul.f32 %v5348_v17, %v3305_v13  ;;  %v3791_v8 = vmul.f32 %v5359_v18, %v3498_v23  ;;  %v5360_v13 = vld [vmem:[%s8661_s0 + $0x2d8] sm:$0xff] }
 0x4e8   :  { %v3906_v56 = vsel %vm8827_vm0, %v3745_v14, 0.0 }
 0x4e9   :  { %v3238_v54 = vpop.permute.xlu1 %3237  ;;  %v3565_v31 = vpop.permute.xlu0 %3564  ;;  %v3907_v4 = vadd.f32 %v3906_v56, %v3905_v19  ;;  %v5357_v19 = vld [vmem:[%s8661_s0 + $0x350] sm:$0xff] }
 0x4ea   :  { %v3729_v10 = vmul.f32 %v5350_v12, %v3238_v54  ;;  %v3822_v48 = vmul.f32 %v5357_v19, %v3628_v6  ;;  %v3807_v54 = vmul.f32 %v5360_v13, %v3565_v31 }
 0x4ec   :  { %v3869_v15 = vsel %vm8910_vm11, %v3729_v10, 0.0  ;;  %v4085_v31 = vsel %vm8917_vm9, %v3822_v48, 0.0  ;;  %vm8919_vm11 = vmmov %vm8827_vm0  ;;  %v4050_v3 = vsel %vm8920_vm12, %v3807_v54, 0.0 }
 0x4ed   :  { %v3435_v24 = vpop.permute.xlu1 %3434  ;;  %v3372_v42 = vpop.permute.xlu0 %3371  ;;  %v3870_v63 = vadd.f32 %v3869_v15, %v3868_v49  ;;  %v5362_v49 = vld [vmem:[%s8661_s0 + $0x78] sm:$0xff]  ;;  %vm8926_vm9 = vmmov %vm8827_vm0 }
 0x4ee   :  { %v3761_v1 = vmul.f32 %v5355_v50, %v3372_v42  ;;  %v5361_v42 = vld [vmem:[%s8661_s0 + $0x1e0] sm:$0xff]  ;;  %vm8929_vm12 = vmmov %vm8827_vm0 }
 0x4ef   :  { %v5366_v50 = vld [vmem:[%s8661_s0 + $0x2e0] sm:$0xff] }
 0x4f1   :  { %v8358_v59 = vpop.permute.xlu1 %3694  ;;  %v8360_v34 = vpop.permute.xlu0 %3631 }
 0x4f5   :  { %v8362_v16 = vpop.permute.xlu1 %3501  ;;  %v3309_v32 = vpop.permute.xlu0 %3308 }
 0x4f6   :  { %v3746_v51 = vmul.f32 %v5349_v55, %v3309_v32  ;;  %v3776_v32 = vmul.f32 %v5361_v42, %v3435_v24  ;;  %v4049_v55 = vadd.f32 %v4048_v30, %v8314_v20  ;;  %v8436_v24 = vadd.f32 %v4120_v0, %v8334_v43  ;;  %v5364_v43 = vld [vmem:[%s8661_s0 + $0x260] sm:$0xff]  ;;  %v5368_v30 = vld [vmem:[%s8661_s0 + $0x358] sm:$0xff] }
 0x4f8   :  { %v3908_v36 = vsel %vm8909_vm10, %v3746_v51, 0.0  ;;  %vm8918_vm10 = vmmov %vm8827_vm0  ;;  %v3978_v20 = vsel %vm8921_vm13, %v3776_v32, 0.0 }
 0x4f9   :  { %v3242_v25 = vpop.permute.xlu1 %3241  ;;  %v8364_v39 = vpop.permute.xlu0 %3568  ;;  %v3909_v2 = vadd.f32 %v3908_v36, %v3907_v4  ;;  %v5363_v36 = vld [vmem:[%s8661_s0 + $0x178] sm:$0xff]  ;;  %vm8930_vm13 = vmmov %vm8827_vm0 }
 0x4fa   :  { %v3730_v5 = vmul.f32 %v5353_v27, %v3242_v25  ;;  %v3943_v25 = vsel %vm8916_vm1, %v3761_v1, 0.0  ;;  %v3808_v1 = vmul.f32 %v5366_v50, %v8364_v39  ;;  %vm8925_vm1 = vmmov %vm8827_vm0 }
 0x4fc   :  { %v3871_v28 = vsel %vm8913_vm14, %v3730_v5, 0.0  ;;  %v3792_v5 = vmul.f32 %v5364_v43, %v8362_v16  ;;  %vm8922_vm14 = vmmov %vm8827_vm0 }
 0x4fd   :  { %v8366_v52 = vpop.permute.xlu1 %3438  ;;  %v3376_v38 = vpop.permute.xlu0 %3375  ;;  %v3872_v17 = vadd.f32 %v3871_v28, %v3870_v63  ;;  %v8468_v28 = vadd.f32 %v4085_v31, %v8336_v22  ;;  %v4052_v22 = vsel %vm8925_vm1, %v3808_v1, 0.0  ;;  %vm8934_vm1 = vmmov %vm8827_vm0 }
 0x4fe   :  { %v3762_v33 = vmul.f32 %v5358_v35, %v3376_v38  ;;  %v3942_v38 = vadd.f32 %v3941_v46, %v8324_v26  ;;  %v4013_v26 = vsel %vm8919_vm11, %v3791_v8, 0.0  ;;  %vm8928_vm11 = vmmov %vm8827_vm0 }
 0x4ff   :  { %v4014_v35 = vadd.f32 %v4013_v26, %v8346_v58 }
 0x500   :  { %v3945_v51 = vsel %vm8827_vm0, %v3762_v33, 0.0  ;;  %v3944_v12 = vadd.f32 %v3943_v25, %v3942_v38  ;;  %v5369_v33 = vld [vmem:[%s8661_s0 + $0x268] sm:$0xff] }
 0x501   :  { %v8374_v9 = vpop.permute.xlu1 %3698  ;;  %v8376_v11 = vpop.permute.xlu0 %3635 }
 0x502   :  { %v3946_v21 = vadd.f32 %v3945_v51, %v3944_v12  ;;  %v5373_v12 = vld [vmem:[%s8661_s0 + $0x3d8] sm:$0xff] }
 0x505   :  { %v8395_v29 = vpop.permute.xlu1 %3505  ;;  %v3313_v60 = vpop.permute.xlu0 %3312 }
 0x506   :  { %v3747_v44 = vmul.f32 %v5356_v45, %v3313_v60  ;;  %v5365_v60 = vld [vmem:[%s8661_s0 + $0x3d0] sm:$0xff]  ;;  %v5367_v45 = vld [vmem:[%s8661_s0 + $0x1e8] sm:$0xff] }
 0x507   :  { %v3838_v15 = vmul.f32 %v5365_v60, %v8358_v59  ;;  %v3777_v16 = vmul.f32 %v5367_v45, %v8366_v52  ;;  %v3823_v59 = vmul.f32 %v5368_v30, %v8360_v34  ;;  %v4051_v52 = vadd.f32 %v4050_v3, %v4049_v55  ;;  %v5377_v60 = vld [vmem:[%s8661_s0 + $0x278] sm:$0xff] }
 0x508   :  { %v3910_v53 = vsel %vm8914_vm15, %v3747_v44, 0.0  ;;  %v3979_v34 = vadd.f32 %v3978_v20, %v8356_v40  ;;  %vm8923_vm15 = vmmov %vm8827_vm0 }
 0x509   :  { %v3911_v61 = vadd.f32 %v3910_v53, %v3909_v2  ;;  %v3246_v57 = vpop.permute.xlu1 %3245  ;;  %v8418_v6 = vpop.permute.xlu0 %3572  ;;  %v3793_v53 = vmul.f32 %v5369_v33, %v8395_v29  ;;  %v4015_v0 = vsel %vm8923_vm15, %v3792_v5, 0.0  ;;  %v8478_v63 = vsel %vm8924_vm2, %v3838_v15, 0.0  ;;  %v5375_v5 = vld [vmem:[%s8661_s0 + $0x360] sm:$0xff]  ;;  %vm8932_vm15 = vmmov %vm8827_vm0 }
 0x50a   :  { %v3731_v23 = vmul.f32 %v5362_v49, %v3246_v57  ;;  %v3980_v58 = vsel %vm8926_vm9, %v3777_v16, 0.0  ;;  %v4087_v29 = vsel %vm8827_vm0, %v3823_v59, 0.0  ;;  %v4016_v25 = vadd.f32 %v4015_v0, %v4014_v35  ;;  %vm8933_vm2 = vmmov %vm8827_vm0 }
 0x50b   :  { %v3912_v14 = vrot.slane %v3911_v61, 4  ;;  %v4053_v55 = vadd.f32 %v4052_v22, %v4051_v52  ;;  %v3981_v31 = vadd.f32 %v3980_v58, %v3979_v34  ;;  %v4088_v34 = vadd.f32 %v4087_v29, %v8468_v28  ;;  %vm8935_vm9 = vmmov %vm8827_vm0 }
 0x50c   :  { %v3873_v56 = vsel %vm8918_vm10, %v3731_v23, 0.0  ;;  %vm8927_vm10 = vmmov %vm8827_vm0  ;;  %v5371_v23 = vld [vmem:[%s8661_s0 + $0x2e8] sm:$0xff] }
 0x50d   :  { %v3913_v10 = vadd.f32 %v3912_v14, %v3911_v61  ;;  %v3874_v37 = vadd.f32 %v3873_v56, %v3872_v17  ;;  %v3443_v7 = vpop.permute.xlu1 %3442  ;;  %v3380_v41 = vpop.permute.xlu0 %3379  ;;  %v5370_v61 = vld [vmem:[%s8661_s0 + $0x1f0] sm:$0xff]  ;;  %v4017_v49 = vsel %vm8927_vm10, %v3793_v53, 0.0  ;;  %v3809_v38 = vmul.f32 %v5371_v23, %v8418_v6  ;;  %vm8936_vm10 = vmmov %vm8827_vm0 }
 0x50e   :  { %v3763_v27 = vmul.f32 %v5363_v36, %v3380_v41  ;;  %v3778_v57 = vmul.f32 %v5370_v61, %v3443_v7  ;;  %v5372_v17 = vld [vmem:[%s8661_s0 + $0x270] sm:$0xff]  ;;  %v4018_v26 = vadd.f32 %v4017_v49, %v4016_v25 }
 0x50f   :  { %v3914_v62 = vrot.slane %v3913_v10, 2  ;;  %v3875_v4 = vrot.slane %v3874_v37, 4  ;;  %v5374_v6 = vld [vmem:[%s8661_s0 + $0x2f0] sm:$0xff] }
 0x510   :  { %v3947_v44 = vsel %vm8922_vm14, %v3763_v27, 0.0  ;;  %vm8931_vm14 = vcmask 1041409  }
 0x511   :  { %v3915_v46 = vadd.f32 %v3914_v62, %v3913_v10  ;;  %v3876_v2 = vadd.f32 %v3875_v4, %v3874_v37  ;;  %v3948_v19 = vadd.f32 %v3947_v44, %v3946_v21  ;;  %v8465_v48 = vpop.permute.xlu1 %3702  ;;  %v3640_v39 = vpop.permute.xlu0 %3639  ;;  %v3839_v10 = vmul.f32 %v5373_v12, %v8374_v9  ;;  %v5376_v62 = vld [vmem:[%s8661_s0 + $0x1f8] sm:$0xff] }
 0x512   :  { %v3982_v37 = vsel %vm8928_vm11, %v3778_v57, 0.0  ;;  %v3824_v9 = vmul.f32 %v5375_v5, %v8376_v11  ;;  %v4054_v21 = vsel %vm8930_vm13, %v3809_v38, 0.0  ;;  %v5378_v11 = vld [vmem:[%s8661_s0 + $0x368] sm:$0xff]  ;;  %vm8937_vm11 = vmmov %vm8827_vm0  ;;  %v5384_v5 = vld [vmem:[%s8661_s0 + $0x3f0] sm:$0xff] }
 0x513   :  { %v3877_v18 = vrot.slane %v3876_v2, 2  ;;  %v3949_v8 = vrot.slane %v3948_v19, 4  ;;  %v3916_v13 = vrot.slane %v3915_v46, 1  ;;  %v3983_v1 = vadd.f32 %v3982_v37, %v3981_v31  ;;  %vm8940_vm13 = vmmov %vm8827_vm0 }
 0x514   :  { %v3825_v44 = vmul.f32 %v5378_v11, %v3640_v39  ;;  %v4089_v0 = vsel %vm8935_vm9, %v3824_v9, 0.0  ;;  %v5379_v39 = vld [vmem:[%s8661_s0 + $0x3e0] sm:$0xff]  ;;  %v4124_v28 = vsel %vm8827_vm0, %v3839_v10, 0.0  ;;  %vm8949_vm9 = vmmov %vm8827_vm0 }
 0x515   :  { %v3878_v40 = vadd.f32 %v3877_v18, %v3876_v2  ;;  %v3950_v54 = vadd.f32 %v3949_v8, %v3948_v19  ;;  %v3510_v42 = vpop.permute.xlu1 %3509  ;;  %v3577_v32 = vpop.permute.xlu0 %3576  ;;  %v3917_v3 = vadd.f32 %v3916_v13, %v3915_v46  ;;  %v4055_v2 = vadd.f32 %v4054_v21, %v4053_v55  ;;  %v5380_v8 = vld [vmem:[%s8661_s0 + $0x2f8] sm:$0xff]  ;;  %v5382_v55 = vld [vmem:[%s8661_s0 + $0x370] sm:$0xff] }
 0x516   :  { %v3794_v14 = vmul.f32 %v5372_v17, %v3510_v42  ;;  %v3810_v41 = vmul.f32 %v5374_v6, %v3577_v32  ;;  %v3840_v18 = vmul.f32 %v5379_v39, %v8465_v48  ;;  %v4091_v29 = vsel %vm8936_vm10, %v3825_v44, 0.0  ;;  %vm8950_vm10 = vmmov %vm8827_vm0 }
 0x517   :  { %v3879_v51 = vrot.slane %v3878_v40, 1  ;;  %v3951_v56 = vrot.slane %v3950_v54, 2  ;;  %v4090_v42 = vadd.f32 %v4089_v0, %v4088_v34  ;;  %v4123_v17 = vadd.f32 %v8478_v63, %v8436_v24 }
 0x518   :  { %v4019_v7 = vsel %vm8929_vm12, %v3794_v14, 0.0  ;;  %v4056_v30 = vsel %vm8932_vm15, %v3810_v41, 0.0  ;;  %vm8939_vm12 = vmmov %vm8827_vm0 }
 0x519   :  { %v3880_v20 = vadd.f32 %v3879_v51, %v3878_v40  ;;  %v3952_v36 = vadd.f32 %v3951_v56, %v3950_v54  ;;  %v3447_v27 = vpop.permute.xlu1 %3446  ;;  %v3514_v43 = vpop.permute.xlu0 %3513  ;;  %v4020_v16 = vadd.f32 %v4019_v7, %v4018_v26  ;;  %v4057_v61 = vadd.f32 %v4056_v30, %v4055_v2  ;;  %v5381_v40 = vld [vmem:[%s8661_s0 + $0x3e8] sm:$0xff]  ;;  %v5383_v51 = vld [vmem:[%s8661_s0 + $0x378] sm:$0xff]  ;;  %vm8942_vm15 = vmmov %vm8827_vm0 }
 0x51a   :  { %v3779_v4 = vmul.f32 %v5376_v62, %v3447_v27  ;;  %v3795_v15 = vmul.f32 %v5377_v60, %v3514_v43  ;;  %v4092_v12 = vadd.f32 %v4091_v29, %v4090_v42  ;;  %v4125_v6 = vadd.f32 %v4124_v28, %v4123_v17  ;;  %v5385_v30 = vld [vmem:[%s8661_s0 + $0x3f8] sm:$0xff]  ;;  %v4157_v42 = vld [vmem:[%s8666_s7] sm:$0xff] }
 0x51b   :  { %v4148_v50 = vsel %vm8931_vm14, %v3917_v3, %v3880_v20  ;;  %v3953_v45 = vrot.slane %v3952_v36, 1  ;;  %vm8941_vm14 = vmmov %vm8827_vm0  ;;  %v4445_v17 = vld [vmem:[%s8669_s13 + $0x18] sm:$0xff] }
 0x51c   :  { %v3984_v59 = vsel %vm8933_vm2, %v3779_v4, 0.0  ;;  %v4021_v46 = vsel %vm8934_vm1, %v3795_v15, 0.0  ;;  %vm8943_vm2 = vmmov %vm8827_vm0 }
 0x51d   :  { %v3954_v19 = vadd.f32 %v3953_v45, %v3952_v36  ;;  %v3985_v35 = vadd.f32 %v3984_v59, %v3983_v1  ;;  %v4022_v52 = vadd.f32 %v4021_v46, %v4020_v16  ;;  %v3707_v33 = vpop.permute.xlu1 %3706  ;;  %v3581_v53 = vpop.permute.xlu0 %3580  ;;  %vm8948_vm1 = vmmov %vm8827_vm0 }
 0x51e   :  { %v3811_v22 = vmul.f32 %v5380_v8, %v3581_v53  ;;  %v3841_v54 = vmul.f32 %v5381_v40, %v3707_v33 }
 0x51f   :  { %v4149_v58 = vsel %vm3153_vm3, %v3954_v19, %v4148_v50  ;;  %v3986_v57 = vrot.slane %v3985_v35, 4  ;;  %v4023_v13 = vrot.slane %v4022_v52, 4  ;;  %vm8938_vm3 = vmmov %vm8827_vm0 }
 0x520   :  { %v4058_v48 = vsel %vm8937_vm11, %v3811_v22, 0.0  ;;  %v4126_v14 = vsel %vm8938_vm3, %v3840_v18, 0.0  ;;  %v4128_v41 = vsel %vm8939_vm12, %v3841_v54, 0.0  ;;  %v4158_v54 = vld [vmem:[%s8666_s7 + $0x8] sm:$0xff]  ;;  %vm4433_vm11 = vcmask 7168  }
 0x521   :  { %v3987_v32 = vadd.f32 %v3986_v57, %v3985_v35  ;;  %v4024_v25 = vadd.f32 %v4023_v13, %v4022_v52  ;;  %v4059_v49 = vadd.f32 %v4058_v48, %v4057_v61  ;;  %v3644_v23 = vpop.permute.xlu1 %3643  ;;  %v3648_v38 = vpop.permute.xlu0 %3647  ;;  %v4127_v27 = vadd.f32 %v4126_v14, %v4125_v6  ;;  %v5386_v14 = vld [vmem:[%s8660_s2] sm:$0xff]  ;;  %4435 = vst.msk [vmem:[#allocation5] sm:$0xff] %vm4433_vm11, %v8826_v47 }
 0x522   :  { %v3826_v31 = vmul.f32 %v5382_v55, %v3644_v23  ;;  %v3827_v56 = vmul.f32 %v5383_v51, %v3648_v38  ;;  %v4318_v23 = vld [vmem:[%s8668_s9 + $0x8] sm:$0xff]  ;;  %v4317_v38 = vld [vmem:[%s8668_s9] sm:$0xff]  ;;  %v4444_v55 = vld [vmem:[%s8669_s13 + $0x10] sm:$0xff] }
 0x523   :  { %v3988_v10 = vrot.slane %v3987_v32, 2  ;;  %v4025_v37 = vrot.slane %v4024_v25, 2  ;;  %v4060_v7 = vrot.slane %v4059_v49, 4  ;;  %v4129_v15 = vadd.f32 %v4128_v41, %v4127_v27  ;;  %v4442_v51 = vld [vmem:[%s8669_s13] sm:$0xff] }
 0x524   :  { %v4093_v24 = vsel %vm8940_vm13, %v3826_v31, 0.0  ;;  %v4095_v43 = vsel %vm8941_vm14, %v3827_v56, 0.0  ;;  %v4443_v31 = vld [vmem:[%s8669_s13 + $0x8] sm:$0xff]  ;;  %v4792_v41 = vld [vmem:[%s8670_s11] ss:$0 sm:$0xff]  ;;  %s5390_s13 = smov 64  }
 0x525   :  { %v3989_v63 = vadd.f32 %v3988_v10, %v3987_v32  ;;  %v4026_v26 = vadd.f32 %v4025_v37, %v4024_v25  ;;  %v4061_v3 = vadd.f32 %v4060_v7, %v4059_v49  ;;  %v4094_v20 = vadd.f32 %v4093_v24, %v4092_v12  ;;  %v3711_v36 = vpop.permute.xlu1 %3710  ;;  %v185_v32 = vld [vmem:[%s8667_s1] sm:$0xff]  ;;  %v4320_v25 = vld [vmem:[%s8668_s9 + $0x18] sm:$0xff]  ;;  %v4319_v49 = vld [vmem:[%s8668_s9 + $0x10] sm:$0xff]  ;;  %s5391_s11 = smov 32  }
 0x526   :  { %v3842_v9 = vmul.f32 %v5384_v5, %v3711_v36  ;;  %v4791_v36 = vld [vmem:[%s8671_s10] ss:$0 sm:$0xff] }
 0x527   :  { %v3990_v21 = vrot.slane %v3989_v63, 1  ;;  %v4027_v62 = vrot.slane %v4026_v26, 1  ;;  %v4062_v4 = vrot.slane %v4061_v3, 2  ;;  %v4096_v60 = vadd.f32 %v4095_v43, %v4094_v20 }
 0x528   :  { %v4130_v50 = vsel %vm8942_vm15, %v3842_v9, 0.0 }
 0x529   :  { %v3991_v1 = vadd.f32 %v3990_v21, %v3989_v63  ;;  %v4028_v45 = vadd.f32 %v4027_v62, %v4026_v26  ;;  %v4063_v16 = vadd.f32 %v4062_v4, %v4061_v3  ;;  %v4097_v11 = vrot.slane %v4096_v60, 4  ;;  %v3715_v44 = vpop.permute.xlu1 %3714 }
 0x52a   :  { %v3843_v59 = vmul.f32 %v5385_v30, %v3715_v44  ;;  %v4131_v35 = vadd.f32 %v4130_v50, %v4129_v15  ;;  %v4437_v44 = vld [vmem:[%s8672_s12] sm:$0xff] }
 0x52b   :  { %v4150_v46 = vsel %vm3155_vm4, %v3991_v1, %v4149_v58  ;;  %v4064_v2 = vrot.slane %v4063_v16, 1  ;;  %v4098_v19 = vadd.f32 %v4097_v11, %v4096_v60  ;;  %vm8944_vm4 = vmmov %vm8827_vm0  ;;  %v4438_v11 = vld [vmem:[%s8672_s12 + $0x8] sm:$0xff] }
 0x52c   :  { %v4151_v52 = vsel %vm3157_vm5, %v4028_v45, %v4150_v46  ;;  %v4132_v33 = vsel %vm8943_vm2, %v3843_v59, 0.0  ;;  %vm8945_vm5 = vmmov %vm8827_vm0  ;;  %v4440_v45 = vld [vmem:[%s8672_s12 + $0x18] sm:$0xff] }
 0x52d   :  { %v4065_v53 = vadd.f32 %v4064_v2, %v4063_v16  ;;  %v4099_v34 = vrot.slane %v4098_v19, 2  ;;  %v4133_v0 = vadd.f32 %v4132_v33, %v4131_v35  ;;  %v4439_v16 = vld [vmem:[%s8672_s12 + $0x10] sm:$0xff] }
 0x52f   :  { %v4100_v39 = vadd.f32 %v4099_v34, %v4098_v19  ;;  %v4134_v18 = vrot.slane %v4133_v0, 4  ;;  %v4152_v8 = vsel %vm3159_vm6, %v4065_v53, %v4151_v52  ;;  %vm8946_vm6 = vmmov 0  }
 0x530   :  { %v5393_v53 = vmov -inf  }
 0x531   :  { %v4101_v22 = vrot.slane %v4100_v39, 1  ;;  %v4135_v61 = vadd.f32 %v4134_v18, %v4133_v0  ;;  %4434 = vst.msk [vmem:[#allocation4] sm:$0xff] %vm4433_vm11, %v5393_v53  ;;  %v4797_v0 = vld [vmem:[%s8674_s14] ss:$0 sm:$0xff] }
 0x533   :  { %v4102_v57 = vadd.f32 %v4101_v22, %v4100_v39  ;;  %v4136_v13 = vrot.slane %v4135_v61, 2  ;;  %v5394_v22 = vmov 0  }
 0x534   :  { %5236 = vset.pattern.permute.xlu0 %v5394_v22  ;;  %5237 = vset.pattern.permute.xlu1 %v5394_v22 }
 0x535   :  { %v4137_v28 = vadd.f32 %v4136_v13, %v4135_v61  ;;  %v4153_v58 = vsel %vm3161_vm7, %v4102_v57, %v4152_v8  ;;  %vm4235_vm7 = vcmask 130048  }
 0x537   :  { %v4138_v29 = vrot.slane %v4137_v28, 1 }
 0x538   :  { %v4608_v61 = vld [vmem:[#allocation4] sm:$0xff] }
 0x539   :  { %v4139_v40 = vadd.f32 %v4138_v29, %v4137_v28 }
 0x53b   :  { %v4154_v48 = vsel %vm3163_vm8, %v4139_v40, %v4153_v58  ;;  %vm8947_vm8 = vmmov %vm8827_vm0 }
 0x53c   :  { %4156 = vst.msk [vmem:[#allocation2] sm:$0xff] %vm8944_vm4, %v4154_v48  ;;  %5178 = vmatmul.mubr.msk.f32.vlgmr.msra.gmra.mxu0 %vm8945_vm5, %v4154_v48 }
 0x53d   :  { %5181 = vmatpush3.msra.mxu0 %v4158_v54  ;;  %5184 = vmatprep.mubr.msk.f32.mxu0 %vm8946_vm6, %v8826_v47 }
 0x53e   :  { %5182 = vmatprep.subr.mxu0 %v8826_v47 }
 0x53f   :  { %5183 = vmatpush3.msra.mxu0 %v4157_v42  ;;  %v4610_v42 = vld [vmem:[#allocation5] sm:$0xff] }
 0x540   :  { %5187 = vmatprep.subr.mxu0 %v8826_v47  ;;  %5185 = vmatmul.mubr.msk.f32.vlgmr.msra.gmra.mxu0 %vm4235_vm7, %v185_v32 }
 0x541   :  { %5188 = vmatpush3.msra.mxu0 %v4320_v25  ;;  %5195 = vmatprep.mubr.msk.f32.mxu0 %vm8946_vm6, %v8826_v47 }
 0x542   :  { %5189 = vmatprep.subr.mxu0 %v8826_v47 }
 0x543   :  { %5190 = vmatpush3.msra.mxu0 %v4319_v49  ;;  %v4441_v56 = vld [vmem:[#allocation2] sm:$0xff] }
 0x544   :  { %5191 = vmatprep.subr.mxu0 %v8826_v47 }
 0x545   :  { %5192 = vmatpush3.msra.mxu0 %v4318_v23 }
 0x546   :  { %5193 = vmatprep.subr.mxu0 %v8826_v47 }
 0x547   :  { %5194 = vmatpush3.msra.mxu0 %v4317_v38 }
 0x548   :  { %5196 = vmatmul.mubr.msk.f32.vlgmr.msra.gmra.mxu0 %vm8947_vm8, %v5386_v14  ;;  %5198 = vmatprep.subr.mxu0 %v8826_v47 }
 0x549   :  { %5199 = vmatpush3.msra.mxu0 %v4445_v17  ;;  %5206 = vmatprep.mubr.msk.f32.mxu0 %vm8946_vm6, %v8826_v47 }
 0x54a   :  { %5200 = vmatprep.subr.mxu0 %v8826_v47 }
 0x54b   :  { %5201 = vmatpush3.msra.mxu0 %v4444_v55 }
 0x54c   :  { %5202 = vmatprep.subr.mxu0 %v8826_v47 }
 0x54d   :  { %5203 = vmatpush3.msra.mxu0 %v4443_v31 }
 0x54e   :  { %5204 = vmatprep.subr.mxu0 %v8826_v47 }
 0x54f   :  { %5205 = vmatpush3.msra.mxu0 %v4442_v51 }
 0x550   :  { %5207 = vmatmul.mubr.msk.f32.vlgmr.msra.gmra.mxu0 %vm8948_vm1, %v4441_v56  ;;  %5209 = vmatprep.subr.mxu0 %v8826_v47 }
 0x551   :  { %5217 = vmatprep.mubr.msk.f32.mxu0 %vm8946_vm6, %v8826_v47  ;;  %5210 = vmatpush3.msra.mxu0 %v4440_v45 }
 0x552   :  { %5211 = vmatprep.subr.mxu0 %v8826_v47 }
 0x553   :  { %5212 = vmatpush3.msra.mxu0 %v4439_v16 }
 0x554   :  { %5213 = vmatprep.subr.mxu0 %v8826_v47 }
 0x555   :  { %5214 = vmatpush3.msra.mxu0 %v4438_v11 }
 0x556   :  { %5215 = vmatprep.subr.mxu0 %v8826_v47 }
 0x557   :  { %5216 = vmatpush3.msra.mxu0 %v4437_v44 }
 0x5fc   :  { %v4231_v12 = vpop.f32.mrf.mxu0 }
 0x5fe   :  { %v5179_v10 = vpop.f32.mrf.mxu0 }
 0x600   :  { %v4305_v37 = vpop.f32.mrf.mxu0 }
 0x601   :  { %v4306_v7 = vadd.f32 %v4305_v37, %v4231_v12 }
 0x602   :  { %v5186_v6 = vpop.f32.mrf.mxu0 }
 0x603   :  { %v4316_v27 = vadd.f32 %v4791_v36, %v4306_v7 }
 0x608   :  { %v4394_v24 = vpop.f32.mrf.mxu0 }
 0x609   :  { %v4395_v63 = vadd.f32 %v4792_v41, %v4394_v24 }
 0x60a   :  { %v5197_v26 = vpop.f32.mrf.mxu0 }
 0x60b   :  { %4406 = vrot.lane.b32.xlu0 %v4395_v63, %s5390_s13  ;;  %v4398_v43 = vadd.f32 %v4395_v63, %v4316_v27 }
 0x60d   :  { %v4794_v5 = vmul.f32 -1.442695, %v4398_v43 }
 0x60f   :  { %5242 = vpow2.f32 %v4794_v5 }
 0x610   :  { %v4516_v3 = vpop.f32.mrf.mxu0 }
 0x612   :  { %v5208_v20 = vpop.f32.mrf.mxu0 }
 0x61c   :  { %v5243_v9 = vpop.eup %5242 }
 0x61d   :  { %v4402_v21 = vadd.f32 1.0, %v5243_v9 }
 0x61f   :  { %5244 = vrcp.f32 %v4402_v21 }
 0x62c   :  { %v5245_v62 = vpop.eup %5244 }
 0x62d   :  { %v4416_v59 = vsub.f32 1.0, %v5245_v62 }
 0x67d   :  { %v4407_v4 = vpop.permute.xlu0 %4406 }
 0x67e   :  { %v4409_v60 = vmul.f32 %v5245_v62, %v4407_v4 }
 0x680   :  { %4411 = vrot.lane.b32.xlu1 %v4409_v60, %s5390_s13 }
 0x684   :  { %4422 = vrot.lane.b32.xlu1 %v5386_v14, %s5391_s11 }
 0x6f2   :  { %v4412_v15 = vpop.permute.xlu1 %4411 }
 0x6f3   :  { %v4414_v50 = vadd.f32 %v4412_v15, %v4316_v27 }
 0x6f5   :  { %5246 = vtanh.f32 %v4414_v50 }
 0x6f6   :  { %v4423_v30 = vpop.permute.xlu1 %4422 }
 0x6f7   :  { %v4425_v2 = vmul.f32 %v5245_v62, %v4423_v30 }
 0x702   :  { %v5247_v1 = vpop.eup %5246 }
 0x703   :  { %4418 = vrot.lane.b32.xlu0 %v5247_v1, %s5392_s4 }
 0x775   :  { %v4419_v46 = vpop.permute.xlu0 %4418 }
 0x776   :  { %v4421_v19 = vmul.f32 %v4419_v46, %v4416_v59 }
 0x778   :  { %v4426_v35 = vadd.f32 %v4425_v2, %v4421_v19 }
 0x77a   :  { %4428 = vrot.lane.b32.xlu0 %v4426_v35, %s5392_s4 }
 0x7ec   :  { %v4429_v52 = vpop.permute.xlu0 %4428 }
 0x7ed   :  { %4431 = vst.msk [vmem:[#allocation3] sm:$0xff] %vm8949_vm9, %v4429_v52 }
 0x7ee   :  { %4432 = vst.msk [vmem:[%s8673_s16] sm:$0xff] %vm8827_vm0, %v4429_v52 }
 0x7f4   :  { %v4436_v33 = vld [vmem:[#allocation3] sm:$0xff] }
 0x7f5   :  { %5218 = vmatmul.mubr.msk.f32.vlgmr.msra.gmra.mxu0 %vm8950_vm10, %v4436_v33 }
 0x8b5   :  { %v4589_v34 = vpop.f32.mrf.mxu0 }
 0x8b6   :  { %v4590_v39 = vadd.f32 %v4589_v34, %v4516_v3 }
 0x8b7   :  { %v5219_v18 = vpop.f32.mrf.mxu0 }
 0x8b8   :  { %v4600_v8 = vadd.f32 %v4797_v0, %v4590_v39 }
 0x8ba   :  { %4606 = vmax.xlane.f32.xlu1 %v4600_v8 }
 0x943   :  { %v4607_v57 = vpop.xlane.xlu1 %4606 }
 0x944   :  { %v4609_v13 = vmax.f32 %v4608_v61, %v4607_v57 }
 0x946   :  { %v4611_v28 = vsub.f32 %v4608_v61, %v4609_v13  ;;  %4628 = vst.msk [vmem:[#allocation4] sm:$0xff] %vm4433_vm11, %v4609_v13  ;;  %4617 = vperm.xlu0 %5236, %v4609_v13  }
 0x948   :  { %v4612_v54 = vmul.f32 1.442695, %v4611_v28 }
 0x94d   :  { %v4632_v14 = vld [vmem:[#allocation4] sm:$0xff] }
 0x9c1   :  { %v4618_v47 = vpop.permute.xlu0 %4617 }
 0x9c2   :  { %v4620_v58 = vsub.f32 %v4600_v8, %v4618_v47 }
 0x9c4   :  { %v4621_v29 = vmul.f32 1.442695, %v4620_v58 }
 0x9c6   :  { %5248 = vpow2.f32 %v4621_v29 }
 0x9c7   :  { %5250 = vpow2.f32 %v4612_v54 }
 0x9d3   :  { %v5249_v40 = vpop.eup %5248 }
 0x9d4   :  { %4623 = vadd.xlane.f32.xlu0 %v5249_v40  ;;  %v5251_v48 = vpop.eup %5250 }
 0x9d5   :  { %v4614_v32 = vmul.f32 %v5251_v48, %v4610_v42 }
 0xa5d   :  { %v4624_v25 = vpop.xlane.xlu0 %4623 }
 0xa5e   :  { %v4625_v49 = vadd.f32 %v4624_v25, %v4614_v32 }
 0xa60   :  { %4627 = vst.msk [vmem:[#allocation5] sm:$0xff] %vm4433_vm11, %v4625_v49 }
 0xa67   :  { %v4633_v23 = vld [vmem:[#allocation5] sm:$0xff] }
 0xa68   :  { %5252 = vlog2.f32 %v4633_v23 }
 0xa75   :  { %v5253_v38 = vpop.eup %5252 }
 0xa76   :  { %v4635_v17 = vmul.f32 0.6931472, %v5253_v38 }
 0xa78   :  { %v4636_v55 = vadd.f32 %v4635_v17, %v4632_v14 }
 0xa7a   :  { %4640 = vperm.xlu1 %5237, %v4636_v55  }
 0xaf5   :  { %v4641_v31 = vpop.permute.xlu1 %4640 }
 0xaf6   :  { %v4643_v51 = vsub.f32 %v4600_v8, %v4641_v31 }
 0xaf8   :  { %4644 = vst [vmem:[%s8675_s15] sm:$0xff] %v4643_v51 }

</bundles_post_ra>
